<compile_context>
chip_gen: v7x
topology: tpu7x:2x2x1
jax: 0.10.0
libtpu: 0.0.40
codegen_flags: <defaults>
</compile_context>

<pallas_src>
import jax
import jax.numpy as jnp
from jax.experimental import pallas as pl
from jax.experimental.pallas import tpu as pltpu

EPS = 1e-5
VMEM_LIMIT_BYTES = 32 * 1024 * 1024  # scoped-VMEM request (safe on all gens)


def _conv1x1_bn_kernel(x_ref, w_ref, g_ref, b_ref, o_ref):
    # x_ref: (Cin, M) f32, w_ref: (Ct, Cin) f32, g_ref/b_ref: (Ct, 1) f32,
    # o_ref: (Ct, M) f32   -- Ct = Cout tile, M = N*H*W
    # Cast to bf16 in-kernel (removes a wrapper-side HBM pass over x and w);
    # MXU accumulates in f32 via preferred_element_type.
    xb = x_ref[...].astype(jnp.bfloat16)
    wb = w_ref[...].astype(jnp.bfloat16)
    y = jnp.dot(wb, xb, preferred_element_type=jnp.float32)   # (Ct, M), f32

    m = y.shape[1]
    inv_m = 1.0 / m
    s = jnp.sum(y, axis=1, keepdims=True)                      # (Ct, 1)
    ss = jnp.sum(y * y, axis=1, keepdims=True)                 # (Ct, 1)
    mean = s * inv_m
    # Clamp: E[y^2]-E[y]^2 can go slightly negative in f32 -> NaN in rsqrt.
    var = jnp.maximum(ss * inv_m - mean * mean, 0.0)           # biased variance
    inv = jax.lax.rsqrt(var + EPS)                             # EUP slot

    # Fold BN into a single per-channel scale/offset -> 2 VPU ops per element.
    a = inv * g_ref[...]                                       # (Ct, 1)
    b2 = b_ref[...] - mean * a                                 # (Ct, 1)
    o_ref[...] = (y * a + b2).astype(o_ref.dtype)


def _num_tensorcores():
    """2-way Cout split only pays off with 2 TensorCores (v7x); on single-TC
    v5e/v6e a 2-step grid is just a serial loop with extra per-step overhead."""
    try:
        kind = jax.devices()[0].device_kind.lower()
    except Exception:
        return 1
    return 2 if "v7" in kind else 1


def _vmem_budget_bytes():
    try:
        cap = int(getattr(pltpu.get_tpu_info(), "vmem_capacity_bytes",
                          64 * 1024 * 1024))
    except Exception:
        cap = 64 * 1024 * 1024  # v7x per-TC physical VMEM (smallest generation)
    return min(cap, VMEM_LIMIT_BYTES)


def conv1x1_batchnorm(x, w, gamma, beta):
    """x: (N, Cin, H, W) f32; w: (Cout, Cin, 1, 1) f32; gamma/beta: (Cout,) f32."""
    N, Cin, H, Wd = x.shape
    Cout = w.shape[0]
    M = N * H * Wd
    assert N == 1, "zero-copy NCHW reshape assumes N == 1"
    # TODO(synk): for N > 1, reshape to (N, Cin, H*W), add a batch grid axis and
    # accumulate BN statistics across it (divisor becomes 1/(N*H*W)).

    # Zero-copy views only; dtype casts happen inside the kernel.
    x2d = x.reshape(Cin, M)               # (Cin, M)  f32
    w2d = w.reshape(Cout, Cin)            # (Cout, Cin) f32
    g2d = gamma.reshape(Cout, 1)
    b2d = beta.reshape(Cout, 1)

    # Cout split across the grid (BN stats are per-channel -> independent).
    n_tiles = _num_tensorcores()
    if not (Cout % n_tiles == 0 and (Cout // n_tiles) % 8 == 0):
        n_tiles = 1
    cout_tile = Cout // n_tiles

    # Whole-array (per Cout tile) VMEM footprint: double-buffered f32 blocks
    # plus in-kernel bf16 copies and the f32 matmul result.
    vmem_bytes = (2 * (Cin * M * 4 + cout_tile * Cin * 4 + cout_tile * M * 4
                       + 2 * cout_tile * 4)
                  + Cin * M * 2 + cout_tile * Cin * 2 + cout_tile * M * 4)
    assert vmem_bytes < _vmem_budget_bytes(), (
        "shape too large for whole-array blocks")
    # TODO(synk): implement an M-axis tiling fallback (two-pass BN stats) for
    # spatial sizes whose whole-array blocks exceed the VMEM budget.

    cost = pl.CostEstimate(
        flops=2 * M * Cin * Cout,
        transcendentals=Cout,
        bytes_accessed=Cin * M * 4 + Cout * Cin * 4 + Cout * M * 4 + 2 * Cout * 4,
    )

    # TODO(synk): a Cin (K) pipeline axis would overlap the x DMA with the MXU,
    # but Cin=1056 is not 128-aligned on w's lane axis; padding or transposing
    # w in the wrapper costs a full extra HBM pass that exceeds the gain at
    # this shape.  (Likewise pl.Buffered(1) on the shared x block is only a
    # VMEM-headroom tweak; footprint here is ~4 MiB, far below budget.)
    out2d = pl.pallas_call(
        _conv1x1_bn_kernel,
        out_shape=jax.ShapeDtypeStruct((Cout, M), jnp.float32),
        grid_spec=pltpu.PrefetchScalarGridSpec(
            num_scalar_prefetch=0,
            grid=(n_tiles,),
            in_specs=[
                pl.BlockSpec((Cin, M), lambda i: (0, 0)),          # x (shared)
                pl.BlockSpec((cout_tile, Cin), lambda i: (i, 0)),  # w tile
                pl.BlockSpec((cout_tile, 1), lambda i: (i, 0)),    # gamma tile
                pl.BlockSpec((cout_tile, 1), lambda i: (i, 0)),    # beta tile
            ],
            out_specs=pl.BlockSpec((cout_tile, M), lambda i: (i, 0)),
        ),
        compiler_params=pltpu.CompilerParams(
            dimension_semantics=("parallel",),
            vmem_limit_bytes=VMEM_LIMIT_BYTES,
        ),
        cost_estimate=cost,
    )(x2d, w2d, g2d, b2d)

    # (Cout, M) -> (1, Cout, H, W): pure reshape, no transpose.
    return out2d.reshape(N, Cout, H, Wd)


if __name__ == "__main__":
    key = jax.random.PRNGKey(0)
    kx, kw = jax.random.split(key)

    N, Cin, H, W = 1, 1056, 14, 14
    Cout = 192

    x = jax.random.normal(kx, (N, Cin, H, W), dtype=jnp.float32)
    w = jax.random.normal(kw, (Cout, Cin, 1, 1), dtype=jnp.float32) * 0.02
    gamma = jnp.ones((Cout,), dtype=jnp.float32)   # BatchNorm2d affine init
    beta = jnp.zeros((Cout,), dtype=jnp.float32)

    out = conv1x1_batchnorm(x, w, gamma, beta)
    jax.block_until_ready(out)

    # Pure-JAX f32 reference (conv1x1 + training-mode BatchNorm2d).
    y_ref = jnp.einsum("nchw,oc->nohw", x, w.reshape(Cout, Cin))
    mu = jnp.mean(y_ref, axis=(0, 2, 3), keepdims=True)
    var = jnp.mean((y_ref - mu) ** 2, axis=(0, 2, 3), keepdims=True)
    ref = (y_ref - mu) * jax.lax.rsqrt(var + EPS) * gamma.reshape(1, Cout, 1, 1) \
          + beta.reshape(1, Cout, 1, 1)

    assert out.shape == (N, Cout, H, W)
    assert jnp.allclose(out, ref, atol=2e-2, rtol=2e-2)

    print("KERNEL_OK")
</pallas_src>

<mosaic_0001>
module attributes {stable_mosaic.version = 11 : i64} {
  func.func @_conv1x1_bn_kernel(%arg0: i32, %arg1: memref<1056x196xf32, #tpu.memory_space<vmem>>, %arg2: memref<192x1056xf32, #tpu.memory_space<vmem>>, %arg3: memref<192x1xf32, #tpu.memory_space<vmem>>, %arg4: memref<192x1xf32, #tpu.memory_space<vmem>>, %arg5: memref<192x196xf32, #tpu.memory_space<vmem>>) attributes {dimension_semantics = [#tpu.dimension_semantics<parallel>], iteration_bounds = array<i64: 1>, scalar_prefetch = 0 : i64, scratch_operands = 0 : i64, tpu.core_type = #tpu.core_type<tc>, window_params = [{pipeline_mode = #tpu.pipeline_mode<synchronous>, transform_indices = @transform_0, window_bounds = array<i64: 1056, 196>}, {transform_indices = @transform_1, window_bounds = array<i64: 192, 1056>}, {transform_indices = @transform_2, window_bounds = array<i64: 192, 1>}, {transform_indices = @transform_3, window_bounds = array<i64: 192, 1>}, {transform_indices = @transform_4, window_bounds = array<i64: 192, 196>}]} {
    %c0 = arith.constant 0 : index
    %c0_0 = arith.constant 0 : index
    %0 = vector.load %arg1[%c0, %c0_0] : memref<1056x196xf32, #tpu.memory_space<vmem>>, vector<1056x196xf32>
    %1 = arith.truncf %0 : vector<1056x196xf32> to vector<1056x196xbf16>
    %c0_1 = arith.constant 0 : index
    %c0_2 = arith.constant 0 : index
    %2 = vector.load %arg2[%c0_1, %c0_2] : memref<192x1056xf32, #tpu.memory_space<vmem>>, vector<192x1056xf32>
    %3 = arith.truncf %2 : vector<192x1056xf32> to vector<192x1056xbf16>
    %cst = arith.constant dense<0.000000e+00> : vector<192x196xf32>
    %4 = tpu.matmul %3, %1, %cst {dimension_numbers = #tpu.dot_dimension_numbers<[1], [0], [0], [1], [0, 0, 1, 1], [], []>} : vector<192x1056xbf16>, vector<1056x196xbf16>, vector<192x196xf32> -> vector<192x196xf32>
    %cst_3 = arith.constant dense<0.000000e+00> : vector<192xf32>
    %5 = vector.multi_reduction <add>, %4, %cst_3 [1] : vector<192x196xf32> to vector<192xf32>
    %6 = vector.shape_cast %5 : vector<192xf32> to vector<192x1xf32>
    %7 = arith.mulf %4, %4 : vector<192x196xf32>
    %cst_4 = arith.constant dense<0.000000e+00> : vector<192xf32>
    %8 = vector.multi_reduction <add>, %7, %cst_4 [1] : vector<192x196xf32> to vector<192xf32>
    %9 = vector.shape_cast %8 : vector<192xf32> to vector<192x1xf32>
    %cst_5 = arith.constant 0.00510204071 : f32
    %10 = vector.broadcast %cst_5 : f32 to vector<192x1xf32>
    %11 = arith.mulf %6, %10 : vector<192x1xf32>
    %cst_6 = arith.constant 0.00510204071 : f32
    %12 = vector.broadcast %cst_6 : f32 to vector<192x1xf32>
    %13 = arith.mulf %9, %12 : vector<192x1xf32>
    %14 = arith.mulf %11, %11 : vector<192x1xf32>
    %15 = arith.subf %13, %14 : vector<192x1xf32>
    %cst_7 = arith.constant 0.000000e+00 : f32
    %16 = vector.broadcast %cst_7 : f32 to vector<192x1xf32>
    %17 = arith.maximumf %15, %16 : vector<192x1xf32>
    %cst_8 = arith.constant 9.99999974E-6 : f32
    %18 = vector.broadcast %cst_8 : f32 to vector<192x1xf32>
    %19 = arith.addf %17, %18 : vector<192x1xf32>
    %20 = math.rsqrt %19 : vector<192x1xf32>
    %c0_9 = arith.constant 0 : index
    %c0_10 = arith.constant 0 : index
    %21 = vector.load %arg3[%c0_9, %c0_10] : memref<192x1xf32, #tpu.memory_space<vmem>>, vector<192x1xf32>
    %22 = arith.mulf %20, %21 : vector<192x1xf32>
    %c0_11 = arith.constant 0 : index
    %c0_12 = arith.constant 0 : index
    %23 = vector.load %arg4[%c0_11, %c0_12] : memref<192x1xf32, #tpu.memory_space<vmem>>, vector<192x1xf32>
    %24 = arith.mulf %11, %22 : vector<192x1xf32>
    %25 = arith.subf %23, %24 : vector<192x1xf32>
    %26 = vector.broadcast %22 : vector<192x1xf32> to vector<192x196xf32>
    %27 = arith.mulf %4, %26 : vector<192x196xf32>
    %28 = vector.broadcast %25 : vector<192x1xf32> to vector<192x196xf32>
    %29 = arith.addf %27, %28 : vector<192x196xf32>
    %c0_13 = arith.constant 0 : index
    %c0_14 = arith.constant 0 : index
    %30 = vector.load %arg5[%c0_13, %c0_14] : memref<192x196xf32, #tpu.memory_space<vmem>>, vector<192x196xf32>
    tpu.vector_store %arg5[%c0_13, %c0_14], %29 {strides = array<i32>} : memref<192x196xf32, #tpu.memory_space<vmem>>, vector<192x196xf32>,
    return
  }
  func.func @transform_0(%arg0: i32) -> (i32, i32) {
    %c0_i32 = arith.constant 0 : i32
    %c0_i32_0 = arith.constant 0 : i32
    %c0_i32_1 = arith.constant 0 : i32
    return %c0_i32, %c0_i32_0 : i32, i32
  }
  func.func @transform_1(%arg0: i32) -> (i32, i32) {
    %c0_i32 = arith.constant 0 : i32
    %c0_i32_0 = arith.constant 0 : i32
    return %arg0, %c0_i32 : i32, i32
  }
  func.func @transform_2(%arg0: i32) -> (i32, i32) {
    %c0_i32 = arith.constant 0 : i32
    %c0_i32_0 = arith.constant 0 : i32
    return %arg0, %c0_i32 : i32, i32
  }
  func.func @transform_3(%arg0: i32) -> (i32, i32) {
    %c0_i32 = arith.constant 0 : i32
    %c0_i32_0 = arith.constant 0 : i32
    return %arg0, %c0_i32 : i32, i32
  }
  func.func @transform_4(%arg0: i32) -> (i32, i32) {
    %c0_i32 = arith.constant 0 : i32
    %c0_i32_0 = arith.constant 0 : i32
    return %arg0, %c0_i32 : i32, i32
  }
}

</mosaic_0001>

<bundles_post_ra>
// kernel: tpu_custom_call.1
= control target key start
LH: loop header
LB: loop body
LE: loop exit
PB: predicated region body
PF: predicated region fallthrough
CT: control target
= control target key end

     0   :  { %s5221_s0 = inlined_call_operand.vmem [shape: f32[1056,196], index: 0, kind: input, shape index: {}]   ;;  %s5222_s1 = inlined_call_operand.vmem [shape: f32[192,1056], index: 1, kind: input, shape index: {}]   ;;  %s5223_s2 = inlined_call_operand.vmem [shape: f32[192,1], index: 2, kind: input, shape index: {}]   ;;  %s5224_s3 = inlined_call_operand.vmem [shape: f32[192,1], index: 3, kind: input, shape index: {}]   ;;  %s5225_s4 = inlined_call_operand.hbm [shape: f32[192,196], index: 4, kind: output, shape index: {}]  }
   0x1   :  { %v20_v0 = vld [vmem:[%s5221_s0 + $0x8] sm:$0xff]  ;;  %v22_v1 = vld [vmem:[%s5221_s0 + $0x18] sm:$0xff]  ;;  %v19_v5 = vld [vmem:[%s5221_s0] sm:$0xff] }
   0x2   :  { %v148_v2 = vld [vmem:[%s5221_s0 + $0x408] sm:$0xff]  ;;  %v284_v3 = vpack.c.bf16 %v22_v1, %v20_v0  ;;  %v150_v4 = vld [vmem:[%s5221_s0 + $0x418] sm:$0xff]  ;;  %v21_v6 = vld [vmem:[%s5221_s0 + $0x10] sm:$0xff] }
   0x3   :  { %v348_v7 = vpack.c.bf16 %v150_v4, %v148_v2  ;;  %v283_v8 = vpack.c.bf16 %v21_v6, %v19_v5  ;;  %v147_v9 = vld [vmem:[%s5221_s0 + $0x400] sm:$0xff]  ;;  %v149_v10 = vld [vmem:[%s5221_s0 + $0x410] sm:$0xff]  ;;  %v24_v11 = vld [vmem:[%s5221_s0 + $0x28] sm:$0xff] }
   0x4   :  { %776 = vmatprep.subr.bf16.mxu1 %v284_v3  ;;  %v347_v12 = vpack.c.bf16 %v149_v10, %v147_v9  ;;  %v26_v13 = vld [vmem:[%s5221_s0 + $0x38] sm:$0xff]  ;;  %v152_v14 = vld [vmem:[%s5221_s0 + $0x428] sm:$0xff]  ;;  %v23_v18 = vld [vmem:[%s5221_s0 + $0x20] sm:$0xff] }
   0x5   :  { %v154_v15 = vld [vmem:[%s5221_s0 + $0x438] sm:$0xff]  ;;  %1082 = vmatprep.subr.bf16.mxu0 %v348_v7  ;;  %777 = vmatpush1.bf16.msra.mxu1 %v283_v8  ;;  %v286_v16 = vpack.c.bf16 %v26_v13, %v24_v11  ;;  %v25_v19 = vld [vmem:[%s5221_s0 + $0x30] sm:$0xff]  ;;  %v151_v20 = vld [vmem:[%s5221_s0 + $0x420] sm:$0xff] }
   0x6   :  { %v350_v17 = vpack.c.bf16 %v154_v15, %v152_v14  ;;  %1083 = vmatpush1.bf16.msra.mxu0 %v347_v12  ;;  %v285_v21 = vpack.c.bf16 %v25_v19, %v23_v18  ;;  %v153_v22 = vld [vmem:[%s5221_s0 + $0x430] sm:$0xff]  ;;  %v28_v23 = vld [vmem:[%s5221_s0 + $0x48] sm:$0xff]  ;;  %v30_v24 = vld [vmem:[%s5221_s0 + $0x58] sm:$0xff] }
   0x7   :  { %778 = vmatprep.subr.bf16.mxu1 %v286_v16  ;;  %v349_v25 = vpack.c.bf16 %v153_v22, %v151_v20  ;;  %v288_v26 = vpack.c.bf16 %v30_v24, %v28_v23  ;;  %v156_v27 = vld [vmem:[%s5221_s0 + $0x448] sm:$0xff]  ;;  %v158_v28 = vld [vmem:[%s5221_s0 + $0x458] sm:$0xff]  ;;  %v27_v29 = vld [vmem:[%s5221_s0 + $0x40] sm:$0xff] }
   0x8   :  { %1084 = vmatprep.subr.bf16.mxu0 %v350_v17  ;;  %v352_v30 = vpack.c.bf16 %v158_v28, %v156_v27  ;;  %v29_v31 = vld [vmem:[%s5221_s0 + $0x50] sm:$0xff]  ;;  %v155_v32 = vld [vmem:[%s5221_s0 + $0x440] sm:$0xff]  ;;  %v32_v35 = vld [vmem:[%s5221_s0 + $0x68] sm:$0xff] }
   0x9   :  { %v157_v33 = vld [vmem:[%s5221_s0 + $0x450] sm:$0xff]  ;;  %779 = vmatpush1.bf16.msra.mxu1 %v285_v21  ;;  %v287_v34 = vpack.c.bf16 %v29_v31, %v27_v29  ;;  %v34_v36 = vld [vmem:[%s5221_s0 + $0x78] sm:$0xff]  ;;  %v160_v37 = vld [vmem:[%s5221_s0 + $0x468] sm:$0xff] }
   0xa   :  { %1085 = vmatpush1.bf16.msra.mxu0 %v349_v25  ;;  %780 = vmatprep.subr.bf16.mxu1 %v288_v26  ;;  %v351_v38 = vpack.c.bf16 %v157_v33, %v155_v32  ;;  %v290_v39 = vpack.c.bf16 %v34_v36, %v32_v35  ;;  %v162_v40 = vld [vmem:[%s5221_s0 + $0x478] sm:$0xff]  ;;  %v31_v41 = vld [vmem:[%s5221_s0 + $0x60] sm:$0xff]  ;;  %v33_v42 = vld [vmem:[%s5221_s0 + $0x70] sm:$0xff] }
   0xb   :  { %1086 = vmatprep.subr.bf16.mxu0 %v352_v30  ;;  %v354_v43 = vpack.c.bf16 %v162_v40, %v160_v37  ;;  %v159_v44 = vld [vmem:[%s5221_s0 + $0x460] sm:$0xff]  ;;  %v161_v45 = vld [vmem:[%s5221_s0 + $0x470] sm:$0xff]  ;;  %v36_v46 = vld [vmem:[%s5221_s0 + $0x88] sm:$0xff]  ;;  %v289_v50 = vpack.c.bf16 %v33_v42, %v31_v41 }
   0xc   :  { %v38_v47 = vld [vmem:[%s5221_s0 + $0x98] sm:$0xff]  ;;  %v164_v48 = vld [vmem:[%s5221_s0 + $0x488] sm:$0xff]  ;;  %v353_v51 = vpack.c.bf16 %v161_v45, %v159_v44  ;;  %v35_v53 = vld [vmem:[%s5221_s0 + $0x80] sm:$0xff] }
   0xd   :  { %v166_v49 = vld [vmem:[%s5221_s0 + $0x498] sm:$0xff]  ;;  %781 = vmatpush1.bf16.msra.mxu1 %v287_v34  ;;  %v292_v52 = vpack.c.bf16 %v38_v47, %v36_v46  ;;  %v37_v54 = vld [vmem:[%s5221_s0 + $0x90] sm:$0xff]  ;;  %v163_v55 = vld [vmem:[%s5221_s0 + $0x480] sm:$0xff] }
   0xe   :  { %1087 = vmatpush1.bf16.msra.mxu0 %v351_v38  ;;  %782 = vmatprep.subr.bf16.mxu1 %v290_v39  ;;  %v356_v56 = vpack.c.bf16 %v166_v49, %v164_v48  ;;  %v165_v57 = vld [vmem:[%s5221_s0 + $0x490] sm:$0xff]  ;;  %v40_v58 = vld [vmem:[%s5221_s0 + $0xa8] sm:$0xff]  ;;  %v42_v59 = vld [vmem:[%s5221_s0 + $0xb8] sm:$0xff]  ;;  %v291_v62 = vpack.c.bf16 %v37_v54, %v35_v53 }
   0xf   :  { %1088 = vmatprep.subr.bf16.mxu0 %v354_v43  ;;  %v168_v60 = vld [vmem:[%s5221_s0 + $0x4a8] sm:$0xff]  ;;  %v170_v61 = vld [vmem:[%s5221_s0 + $0x4b8] sm:$0xff]  ;;  %v355_v63 = vpack.c.bf16 %v165_v57, %v163_v55  ;;  %v294_v0 = vpack.c.bf16 %v42_v59, %v40_v58  ;;  %v39_v1 = vld [vmem:[%s5221_s0 + $0xa0] sm:$0xff] }
  0x10   :  { %v41_v2 = vld [vmem:[%s5221_s0 + $0xb0] sm:$0xff]  ;;  %v167_v3 = vld [vmem:[%s5221_s0 + $0x4a0] sm:$0xff]  ;;  %v358_v4 = vpack.c.bf16 %v170_v61, %v168_v60  ;;  %v44_v6 = vld [vmem:[%s5221_s0 + $0xc8] sm:$0xff] }
  0x11   :  { %783 = vmatpush1.bf16.msra.mxu1 %v289_v50  ;;  %v169_v5 = vld [vmem:[%s5221_s0 + $0x4b0] sm:$0xff]  ;;  %v46_v7 = vld [vmem:[%s5221_s0 + $0xd8] sm:$0xff]  ;;  %v172_v8 = vld [vmem:[%s5221_s0 + $0x4c8] sm:$0xff]  ;;  %v293_v10 = vpack.c.bf16 %v41_v2, %v39_v1 }
  0x12   :  { %1089 = vmatpush1.bf16.msra.mxu0 %v353_v51  ;;  %784 = vmatprep.subr.bf16.mxu1 %v292_v52  ;;  %v174_v9 = vld [vmem:[%s5221_s0 + $0x4d8] sm:$0xff]  ;;  %v357_v11 = vpack.c.bf16 %v169_v5, %v167_v3  ;;  %v296_v12 = vpack.c.bf16 %v46_v7, %v44_v6  ;;  %v43_v13 = vld [vmem:[%s5221_s0 + $0xc0] sm:$0xff]  ;;  %v45_v14 = vld [vmem:[%s5221_s0 + $0xd0] sm:$0xff] }
  0x13   :  { %1090 = vmatprep.subr.bf16.mxu0 %v356_v56  ;;  %v171_v15 = vld [vmem:[%s5221_s0 + $0x4c0] sm:$0xff]  ;;  %v360_v16 = vpack.c.bf16 %v174_v9, %v172_v8  ;;  %v173_v17 = vld [vmem:[%s5221_s0 + $0x4d0] sm:$0xff]  ;;  %v48_v18 = vld [vmem:[%s5221_s0 + $0xe8] sm:$0xff]  ;;  %v295_v22 = vpack.c.bf16 %v45_v14, %v43_v13 }
  0x14   :  { %v50_v19 = vld [vmem:[%s5221_s0 + $0xf8] sm:$0xff]  ;;  %v176_v20 = vld [vmem:[%s5221_s0 + $0x4e8] sm:$0xff]  ;;  %v359_v23 = vpack.c.bf16 %v173_v17, %v171_v15  ;;  %v47_v25 = vld [vmem:[%s5221_s0 + $0xe0] sm:$0xff] }
  0x15   :  { %785 = vmatpush1.bf16.msra.mxu1 %v291_v62  ;;  %v178_v21 = vld [vmem:[%s5221_s0 + $0x4f8] sm:$0xff]  ;;  %v298_v24 = vpack.c.bf16 %v50_v19, %v48_v18  ;;  %v49_v26 = vld [vmem:[%s5221_s0 + $0xf0] sm:$0xff]  ;;  %v175_v27 = vld [vmem:[%s5221_s0 + $0x4e0] sm:$0xff] }
  0x16   :  { %1091 = vmatpush1.bf16.msra.mxu0 %v355_v63  ;;  %786 = vmatprep.subr.bf16.mxu1 %v294_v0  ;;  %v362_v28 = vpack.c.bf16 %v178_v21, %v176_v20  ;;  %v177_v29 = vld [vmem:[%s5221_s0 + $0x4f0] sm:$0xff]  ;;  %v52_v30 = vld [vmem:[%s5221_s0 + $0x108] sm:$0xff]  ;;  %v54_v31 = vld [vmem:[%s5221_s0 + $0x118] sm:$0xff]  ;;  %v297_v34 = vpack.c.bf16 %v49_v26, %v47_v25 }
  0x17   :  { %1092 = vmatprep.subr.bf16.mxu0 %v358_v4  ;;  %v180_v32 = vld [vmem:[%s5221_s0 + $0x508] sm:$0xff]  ;;  %v182_v33 = vld [vmem:[%s5221_s0 + $0x518] sm:$0xff]  ;;  %v361_v35 = vpack.c.bf16 %v177_v29, %v175_v27  ;;  %v300_v36 = vpack.c.bf16 %v54_v31, %v52_v30  ;;  %v51_v37 = vld [vmem:[%s5221_s0 + $0x100] sm:$0xff] }
  0x18   :  { %v53_v38 = vld [vmem:[%s5221_s0 + $0x110] sm:$0xff]  ;;  %v179_v39 = vld [vmem:[%s5221_s0 + $0x500] sm:$0xff]  ;;  %v364_v40 = vpack.c.bf16 %v182_v33, %v180_v32  ;;  %v56_v42 = vld [vmem:[%s5221_s0 + $0x128] sm:$0xff] }
  0x19   :  { %787 = vmatpush1.bf16.msra.mxu1 %v293_v10  ;;  %v181_v41 = vld [vmem:[%s5221_s0 + $0x510] sm:$0xff]  ;;  %v58_v43 = vld [vmem:[%s5221_s0 + $0x138] sm:$0xff]  ;;  %v184_v44 = vld [vmem:[%s5221_s0 + $0x528] sm:$0xff]  ;;  %v299_v46 = vpack.c.bf16 %v53_v38, %v51_v37 }
  0x1a   :  { %1093 = vmatpush1.bf16.msra.mxu0 %v357_v11  ;;  %788 = vmatprep.subr.bf16.mxu1 %v296_v12  ;;  %v186_v45 = vld [vmem:[%s5221_s0 + $0x538] sm:$0xff]  ;;  %v363_v47 = vpack.c.bf16 %v181_v41, %v179_v39  ;;  %v302_v48 = vpack.c.bf16 %v58_v43, %v56_v42  ;;  %v55_v49 = vld [vmem:[%s5221_s0 + $0x120] sm:$0xff]  ;;  %v57_v50 = vld [vmem:[%s5221_s0 + $0x130] sm:$0xff] }
  0x1b   :  { %1094 = vmatprep.subr.bf16.mxu0 %v360_v16  ;;  %v183_v51 = vld [vmem:[%s5221_s0 + $0x520] sm:$0xff]  ;;  %v366_v52 = vpack.c.bf16 %v186_v45, %v184_v44  ;;  %v185_v53 = vld [vmem:[%s5221_s0 + $0x530] sm:$0xff]  ;;  %v60_v54 = vld [vmem:[%s5221_s0 + $0x148] sm:$0xff]  ;;  %v301_v58 = vpack.c.bf16 %v57_v50, %v55_v49 }
  0x1c   :  { %v62_v55 = vld [vmem:[%s5221_s0 + $0x158] sm:$0xff]  ;;  %v188_v56 = vld [vmem:[%s5221_s0 + $0x548] sm:$0xff]  ;;  %v365_v59 = vpack.c.bf16 %v185_v53, %v183_v51  ;;  %v59_v61 = vld [vmem:[%s5221_s0 + $0x140] sm:$0xff] }
  0x1d   :  { %789 = vmatpush1.bf16.msra.mxu1 %v295_v22  ;;  %v190_v57 = vld [vmem:[%s5221_s0 + $0x558] sm:$0xff]  ;;  %v304_v60 = vpack.c.bf16 %v62_v55, %v60_v54  ;;  %v61_v62 = vld [vmem:[%s5221_s0 + $0x150] sm:$0xff]  ;;  %v187_v63 = vld [vmem:[%s5221_s0 + $0x540] sm:$0xff] }
  0x1e   :  { %1095 = vmatpush1.bf16.msra.mxu0 %v359_v23  ;;  %790 = vmatprep.subr.bf16.mxu1 %v298_v24  ;;  %v368_v0 = vpack.c.bf16 %v190_v57, %v188_v56  ;;  %v189_v1 = vld [vmem:[%s5221_s0 + $0x550] sm:$0xff]  ;;  %v64_v2 = vld [vmem:[%s5221_s0 + $0x168] sm:$0xff]  ;;  %v66_v3 = vld [vmem:[%s5221_s0 + $0x178] sm:$0xff]  ;;  %v303_v6 = vpack.c.bf16 %v61_v62, %v59_v61 }
  0x1f   :  { %1096 = vmatprep.subr.bf16.mxu0 %v362_v28  ;;  %v192_v4 = vld [vmem:[%s5221_s0 + $0x568] sm:$0xff]  ;;  %v194_v5 = vld [vmem:[%s5221_s0 + $0x578] sm:$0xff]  ;;  %v63_v7 = vld [vmem:[%s5221_s0 + $0x160] sm:$0xff]  ;;  %v367_v10 = vpack.c.bf16 %v189_v1, %v187_v63  ;;  %v306_v11 = vpack.c.bf16 %v66_v3, %v64_v2 }
  0x20   :  { %v65_v8 = vld [vmem:[%s5221_s0 + $0x170] sm:$0xff]  ;;  %v191_v9 = vld [vmem:[%s5221_s0 + $0x560] sm:$0xff]  ;;  %v68_v13 = vld [vmem:[%s5221_s0 + $0x188] sm:$0xff]  ;;  %v370_v15 = vpack.c.bf16 %v194_v5, %v192_v4 }
  0x21   :  { %791 = vmatpush1.bf16.msra.mxu1 %v297_v34  ;;  %v193_v12 = vld [vmem:[%s5221_s0 + $0x570] sm:$0xff]  ;;  %v70_v14 = vld [vmem:[%s5221_s0 + $0x198] sm:$0xff]  ;;  %v196_v16 = vld [vmem:[%s5221_s0 + $0x588] sm:$0xff]  ;;  %v305_v22 = vpack.c.bf16 %v65_v8, %v63_v7 }
  0x22   :  { %1097 = vmatpush1.bf16.msra.mxu0 %v361_v35  ;;  %792 = vmatprep.subr.bf16.mxu1 %v300_v36  ;;  %v198_v17 = vld [vmem:[%s5221_s0 + $0x598] sm:$0xff]  ;;  %v416_v18 = vld [vmem:[%s5222_s1 + $0x8] sm:$0xff]  ;;  %v425_v19 = vld [vmem:[%s5222_s1 + $0x50] sm:$0xff]  ;;  %v369_v25 = vpack.c.bf16 %v193_v12, %v191_v9  ;;  %v308_v26 = vpack.c.bf16 %v70_v14, %v68_v13 }
  0x23   :  { %1098 = vmatprep.subr.bf16.mxu0 %v364_v40  ;;  %v420_v20 = vld [vmem:[%s5222_s1 + $0x28] sm:$0xff]  ;;  %v429_v21 = vld [vmem:[%s5222_s1 + $0x70] sm:$0xff]  ;;  %v632_v23 = vpack.c.bf16 %v425_v19, %v416_v18  ;;  %v67_v27 = vld [vmem:[%s5221_s0 + $0x180] sm:$0xff]  ;;  %v372_v30 = vpack.c.bf16 %v198_v17, %v196_v16 }
  0x24   :  { %v636_v24 = vpack.c.bf16 %v429_v21, %v420_v20  ;;  %v69_v28 = vld [vmem:[%s5221_s0 + $0x190] sm:$0xff]  ;;  %v195_v29 = vld [vmem:[%s5221_s0 + $0x580] sm:$0xff]  ;;  %v72_v32 = vld [vmem:[%s5221_s0 + $0x1a8] sm:$0xff] }
  0x25   :  { %793 = vmatpush1.bf16.msra.mxu1 %v299_v46  ;;  %v197_v31 = vld [vmem:[%s5221_s0 + $0x590] sm:$0xff]  ;;  %v74_v33 = vld [vmem:[%s5221_s0 + $0x1b8] sm:$0xff]  ;;  %808 = vmatprep.mubr.bf16.mxu1 %v632_v23  ;;  %v200_v34 = vld [vmem:[%s5221_s0 + $0x5a8] sm:$0xff]  ;;  %v307_v36 = vpack.c.bf16 %v69_v28, %v67_v27 }
  0x26   :  { %1099 = vmatpush1.bf16.msra.mxu0 %v363_v47  ;;  %794 = vmatprep.subr.bf16.mxu1 %v302_v48  ;;  %v202_v35 = vld [vmem:[%s5221_s0 + $0x5b8] sm:$0xff]  ;;  %v371_v37 = vpack.c.bf16 %v197_v31, %v195_v29  ;;  %v310_v38 = vpack.c.bf16 %v74_v33, %v72_v32  ;;  %v71_v39 = vld [vmem:[%s5221_s0 + $0x1a0] sm:$0xff]  ;;  %v73_v40 = vld [vmem:[%s5221_s0 + $0x1b0] sm:$0xff] }
  0x27   :  { %1100 = vmatprep.subr.bf16.mxu0 %v366_v52  ;;  %1114 = vmatprep.mubr.bf16.mxu0 %v636_v24  ;;  %v199_v41 = vld [vmem:[%s5221_s0 + $0x5a0] sm:$0xff]  ;;  %v374_v42 = vpack.c.bf16 %v202_v35, %v200_v34  ;;  %v201_v43 = vld [vmem:[%s5221_s0 + $0x5b0] sm:$0xff]  ;;  %v76_v44 = vld [vmem:[%s5221_s0 + $0x1c8] sm:$0xff]  ;;  %v309_v48 = vpack.c.bf16 %v73_v40, %v71_v39 }
  0x28   :  { %v78_v45 = vld [vmem:[%s5221_s0 + $0x1d8] sm:$0xff]  ;;  %v204_v46 = vld [vmem:[%s5221_s0 + $0x5c8] sm:$0xff]  ;;  %v373_v49 = vpack.c.bf16 %v201_v43, %v199_v41  ;;  %v75_v51 = vld [vmem:[%s5221_s0 + $0x1c0] sm:$0xff] }
  0x29   :  { %795 = vmatpush1.bf16.msra.mxu1 %v301_v58  ;;  %v206_v47 = vld [vmem:[%s5221_s0 + $0x5d8] sm:$0xff]  ;;  %v312_v50 = vpack.c.bf16 %v78_v45, %v76_v44  ;;  %v77_v52 = vld [vmem:[%s5221_s0 + $0x1d0] sm:$0xff]  ;;  %v203_v53 = vld [vmem:[%s5221_s0 + $0x5c0] sm:$0xff] }
  0x2a   :  { %1101 = vmatpush1.bf16.msra.mxu0 %v365_v59  ;;  %796 = vmatprep.subr.bf16.mxu1 %v304_v60  ;;  %v376_v54 = vpack.c.bf16 %v206_v47, %v204_v46  ;;  %v205_v55 = vld [vmem:[%s5221_s0 + $0x5d0] sm:$0xff]  ;;  %v80_v56 = vld [vmem:[%s5221_s0 + $0x1e8] sm:$0xff]  ;;  %v82_v57 = vld [vmem:[%s5221_s0 + $0x1f8] sm:$0xff]  ;;  %v311_v60 = vpack.c.bf16 %v77_v52, %v75_v51 }
  0x2b   :  { %1102 = vmatprep.subr.bf16.mxu0 %v368_v0  ;;  %v208_v58 = vld [vmem:[%s5221_s0 + $0x5e8] sm:$0xff]  ;;  %v210_v59 = vld [vmem:[%s5221_s0 + $0x5f8] sm:$0xff]  ;;  %v79_v61 = vld [vmem:[%s5221_s0 + $0x1e0] sm:$0xff]  ;;  %v375_v62 = vpack.c.bf16 %v205_v55, %v203_v53  ;;  %v314_v63 = vpack.c.bf16 %v82_v57, %v80_v56 }
  0x2c   :  { %v81_v0 = vld [vmem:[%s5221_s0 + $0x1f0] sm:$0xff]  ;;  %v207_v1 = vld [vmem:[%s5221_s0 + $0x5e0] sm:$0xff]  ;;  %v378_v3 = vpack.c.bf16 %v210_v59, %v208_v58  ;;  %v84_v5 = vld [vmem:[%s5221_s0 + $0x208] sm:$0xff] }
  0x2d   :  { %797 = vmatpush1.bf16.msra.mxu1 %v303_v6  ;;  %v209_v2 = vld [vmem:[%s5221_s0 + $0x5f0] sm:$0xff]  ;;  %v415_v4 = vld [vmem:[%s5222_s1] sm:$0xff]  ;;  %v86_v6 = vld [vmem:[%s5221_s0 + $0x218] sm:$0xff] }
  0x2e   :  { %1103 = vmatpush1.bf16.msra.mxu0 %v367_v10  ;;  %798 = vmatprep.subr.bf16.mxu1 %v306_v11  ;;  %v424_v7 = vld [vmem:[%s5222_s1 + $0x48] sm:$0xff]  ;;  %v214_v9 = vld [vmem:[%s5221_s0 + $0x618] sm:$0xff]  ;;  %v313_v10 = vpack.c.bf16 %v81_v0, %v79_v61  ;;  %v419_v11 = vld [vmem:[%s5222_s1 + $0x20] sm:$0xff]  ;;  %v377_v14 = vpack.c.bf16 %v209_v2, %v207_v1  ;;  %v316_v18 = vpack.c.bf16 %v86_v6, %v84_v5 }
  0x2f   :  { %1104 = vmatprep.subr.bf16.mxu0 %v370_v15  ;;  %v212_v8 = vld [vmem:[%s5221_s0 + $0x608] sm:$0xff]  ;;  %v211_v13 = vld [vmem:[%s5221_s0 + $0x600] sm:$0xff]  ;;  %v213_v15 = vld [vmem:[%s5221_s0 + $0x610] sm:$0xff]  ;;  %v631_v23 = vpack.c.bf16 %v424_v7, %v415_v4 }
  0x30   :  { %v428_v12 = vld [vmem:[%s5222_s1 + $0x68] sm:$0xff]  ;;  %v434_v16 = vld [vmem:[%s5222_s1 + $0x98] sm:$0xff]  ;;  %v443_v17 = vld [vmem:[%s5222_s1 + $0xe0] sm:$0xff]  ;;  %v3245_v19 = vpack.c.bf16 %v214_v9, %v212_v8  ;;  %v3271_v31 = vpack.c.bf16 %v213_v15, %v211_v13 }
  0x31   :  { %799 = vmatpush1.bf16.msra.mxu1 %v305_v22  ;;  %v216_v20 = vld [vmem:[%s5221_s0 + $0x628] sm:$0xff]  ;;  %v438_v21 = vld [vmem:[%s5222_s1 + $0xb8] sm:$0xff]  ;;  %v447_v22 = vld [vmem:[%s5222_s1 + $0x100] sm:$0xff]  ;;  %v635_v27 = vpack.c.bf16 %v428_v12, %v419_v11  ;;  %v641_v28 = vpack.c.bf16 %v443_v17, %v434_v16 }
  0x32   :  { %1105 = vmatpush1.bf16.msra.mxu0 %v369_v25  ;;  %800 = vmatprep.subr.bf16.mxu1 %v308_v26  ;;  %v218_v24 = vld [vmem:[%s5221_s0 + $0x638] sm:$0xff]  ;;  %v83_v25 = vld [vmem:[%s5221_s0 + $0x200] sm:$0xff]  ;;  %v85_v26 = vld [vmem:[%s5221_s0 + $0x210] sm:$0xff]  ;;  %v645_v32 = vpack.c.bf16 %v447_v22, %v438_v21 }
  0x33   :  { %1106 = vmatprep.subr.bf16.mxu0 %v372_v30  ;;  %v88_v29 = vld [vmem:[%s5221_s0 + $0x228] sm:$0xff]  ;;  %v90_v30 = vld [vmem:[%s5221_s0 + $0x238] sm:$0xff]  ;;  %v215_v33 = vld [vmem:[%s5221_s0 + $0x620] sm:$0xff]  ;;  %v3280_v35 = vpack.c.bf16 %v218_v24, %v216_v20  ;;  %v315_v39 = vpack.c.bf16 %v85_v26, %v83_v25 }
  0x34   :  { %v217_v34 = vld [vmem:[%s5221_s0 + $0x630] sm:$0xff]  ;;  %v446_v41 = vld [vmem:[%s5222_s1 + $0xf8] sm:$0xff]  ;;  %v318_v43 = vpack.c.bf16 %v90_v30, %v88_v29  ;;  %v87_v44 = vld [vmem:[%s5221_s0 + $0x220] sm:$0xff] }
  0x35   :  { %801 = vmatpush1.bf16.msra.mxu1 %v307_v36  ;;  %v433_v36 = vld [vmem:[%s5222_s1 + $0x90] sm:$0xff]  ;;  %v219_v46 = vld [vmem:[%s5221_s0 + $0x640] sm:$0xff]  ;;  %v92_v47 = vld [vmem:[%s5221_s0 + $0x248] sm:$0xff] }
  0x36   :  { %1107 = vmatpush1.bf16.msra.mxu0 %v371_v37  ;;  %802 = vmatprep.subr.bf16.mxu1 %v310_v38  ;;  %v442_v37 = vld [vmem:[%s5222_s1 + $0xd8] sm:$0xff]  ;;  %v220_v38 = vld [vmem:[%s5221_s0 + $0x648] sm:$0xff]  ;;  %v437_v40 = vld [vmem:[%s5222_s1 + $0xb0] sm:$0xff] }
  0x37   :  { %1108 = vmatprep.subr.bf16.mxu0 %v374_v42  ;;  %v222_v42 = vld [vmem:[%s5221_s0 + $0x658] sm:$0xff]  ;;  %v89_v45 = vld [vmem:[%s5221_s0 + $0x230] sm:$0xff]  ;;  %v452_v51 = vld [vmem:[%s5222_s1 + $0x128] sm:$0xff]  ;;  %v640_v58 = vpack.c.bf16 %v442_v37, %v433_v36 }
  0x38   :  { %v461_v52 = vld [vmem:[%s5222_s1 + $0x170] sm:$0xff]  ;;  %v3328_v53 = vpack.c.bf16 %v222_v42, %v220_v38  ;;  %v224_v56 = vld [vmem:[%s5221_s0 + $0x668] sm:$0xff]  ;;  %v317_v57 = vpack.c.bf16 %v89_v45, %v87_v44  ;;  %v226_v59 = vld [vmem:[%s5221_s0 + $0x678] sm:$0xff]  ;;  %v2784_v38 = vmov 0  }
  0x39   :  { %803 = vmatpush1.bf16.msra.mxu1 %v309_v48  ;;  %v94_v48 = vld [vmem:[%s5221_s0 + $0x258] sm:$0xff]  ;;  %v465_v55 = vld [vmem:[%s5222_s1 + $0x190] sm:$0xff]  ;;  %v91_v61 = vld [vmem:[%s5221_s0 + $0x240] sm:$0xff]  ;;  %v650_v0 = vpack.c.bf16 %v461_v52, %v452_v51  ;;  %v3364_v7 = vpack.c.bf16 %v226_v59, %v224_v56  ;;  %2711 = vset.pattern.permute.xlu1 %v2784_v38 }
  0x3a   :  { %1109 = vmatpush1.bf16.msra.mxu0 %v373_v49  ;;  %804 = vmatprep.subr.bf16.mxu1 %v312_v50  ;;  %v3316_v49 = vpack.c.bf16 %v217_v34, %v215_v33  ;;  %v221_v50 = vld [vmem:[%s5221_s0 + $0x650] sm:$0xff]  ;;  %v96_v1 = vld [vmem:[%s5221_s0 + $0x268] sm:$0xff]  ;;  %v98_v2 = vld [vmem:[%s5221_s0 + $0x278] sm:$0xff] }
  0x3b   :  { %1110 = vmatprep.subr.bf16.mxu0 %v376_v54  ;;  %v456_v54 = vld [vmem:[%s5222_s1 + $0x148] sm:$0xff]  ;;  %v451_v5 = vld [vmem:[%s5222_s1 + $0x120] sm:$0xff]  ;;  %v225_v9 = vld [vmem:[%s5221_s0 + $0x670] sm:$0xff]  ;;  %v322_v15 = vpack.c.bf16 %v98_v2, %v96_v1  ;;  %2710 = vset.pattern.permute.xlu0 %v2784_v38 }
  0x3c   :  { %v654_v4 = vpack.c.bf16 %v465_v55, %v456_v54  ;;  %v460_v6 = vld [vmem:[%s5222_s1 + $0x168] sm:$0xff]  ;;  %v223_v8 = vld [vmem:[%s5221_s0 + $0x660] sm:$0xff]  ;;  %v97_v17 = vld [vmem:[%s5221_s0 + $0x270] sm:$0xff] }
  0x3d   :  { %805 = vmatpush1.bf16.msra.mxu1 %v311_v60  ;;  %v320_v60 = vpack.c.bf16 %v94_v48, %v92_v47  ;;  %v455_v12 = vld [vmem:[%s5222_s1 + $0x140] sm:$0xff]  ;;  %v464_v13 = vld [vmem:[%s5222_s1 + $0x188] sm:$0xff]  ;;  %v102_v21 = vld [vmem:[%s5221_s0 + $0x298] sm:$0xff]  ;;  %v3400_v22 = vpack.c.bf16 %v225_v9, %v223_v8 }
  0x3e   :  { %1111 = vmatpush1.bf16.msra.mxu0 %v375_v62  ;;  %806 = vmatprep.subr.bf16.mxu1 %v314_v63  ;;  %v93_v62 = vld [vmem:[%s5221_s0 + $0x250] sm:$0xff]  ;;  %v644_v63 = vpack.c.bf16 %v446_v41, %v437_v40  ;;  %v95_v16 = vld [vmem:[%s5221_s0 + $0x260] sm:$0xff]  ;;  %v100_v20 = vld [vmem:[%s5221_s0 + $0x288] sm:$0xff] }
  0x3f   :  { %1112 = vmatprep.subr.bf16.mxu0 %v378_v3  ;;  %v3355_v3 = vpack.c.bf16 %v221_v50, %v219_v46  ;;  %v319_v11 = vpack.c.bf16 %v93_v62, %v91_v61  ;;  %v474_v24 = vld [vmem:[%s5222_s1 + $0x1d8] sm:$0xff]  ;;  %v483_v25 = vld [vmem:[%s5222_s1 + $0x220] sm:$0xff]  ;;  %v232_v29 = vld [vmem:[%s5221_s0 + $0x6a8] sm:$0xff]  ;;  %v321_v30 = vpack.c.bf16 %v97_v17, %v95_v16  ;;  %v324_v34 = vpack.c.bf16 %v102_v21, %v100_v20 }
  0x40   :  { %v234_v33 = vld [vmem:[%s5221_s0 + $0x6b8] sm:$0xff]  ;;  %v99_v36 = vld [vmem:[%s5221_s0 + $0x280] sm:$0xff]  ;;  %v101_v37 = vld [vmem:[%s5221_s0 + $0x290] sm:$0xff] }
  0x41   :  { %807 = vmatpush1.bf16.msra.mxu1 %v313_v10  ;;  %v228_v10 = vld [vmem:[%s5221_s0 + $0x688] sm:$0xff]  ;;  %v106_v42 = vld [vmem:[%s5221_s0 + $0x2b8] sm:$0xff]  ;;  %v469_v45 = vld [vmem:[%s5222_s1 + $0x1b0] sm:$0xff]  ;;  %v3450_v47 = vpack.c.bf16 %v234_v33, %v232_v29  ;;  %v323_v52 = vpack.c.bf16 %v101_v37, %v99_v36 }
  0x42   :  { %1113 = vmatpush1.bf16.msra.mxu0 %v377_v14  ;;  %929 = vmatprep.subr.bf16.mxu1 %v316_v18  ;;  %v230_v14 = vld [vmem:[%s5221_s0 + $0x698] sm:$0xff]  ;;  %v104_v41 = vld [vmem:[%s5221_s0 + $0x2a8] sm:$0xff]  ;;  %v231_v48 = vld [vmem:[%s5221_s0 + $0x6a0] sm:$0xff] }
  0x43   :  { %1235 = vmatprep.subr.bf16.mxu0 %v3245_v19  ;;  %v470_v18 = vld [vmem:[%s5222_s1 + $0x1b8] sm:$0xff]  ;;  %v3412_v26 = vpack.c.bf16 %v230_v14, %v228_v10  ;;  %v233_v50 = vld [vmem:[%s5221_s0 + $0x6b0] sm:$0xff]  ;;  %v236_v51 = vld [vmem:[%s5221_s0 + $0x6c8] sm:$0xff] }
  0x44   :  { %809 = vmatmul.mubr.bf16.vlgmr.msra.gmra.mrb[0].mxu1 %v631_v23  ;;  %v479_v23 = vld [vmem:[%s5222_s1 + $0x200] sm:$0xff]  ;;  %v478_v46 = vld [vmem:[%s5222_s1 + $0x1f8] sm:$0xff]  ;;  %v473_v54 = vld [vmem:[%s5222_s1 + $0x1d0] sm:$0xff]  ;;  %v3495_v2 = vpack.c.bf16 %v233_v50, %v231_v48 }
  0x45   :  { %1115 = vmatmul.mubr.bf16.vlgmr.msra.gmra.mrb[0].mxu0 %v635_v27  ;;  %818 = vmatprep.mubr.bf16.mxu1 %v641_v28  ;;  %v227_v27 = vld [vmem:[%s5221_s0 + $0x680] sm:$0xff]  ;;  %v229_v28 = vld [vmem:[%s5221_s0 + $0x690] sm:$0xff]  ;;  %v659_v40 = vpack.c.bf16 %v479_v23, %v470_v18  ;;  %v482_v55 = vld [vmem:[%s5222_s1 + $0x218] sm:$0xff]  ;;  %v658_v10 = vpack.c.bf16 %v478_v46, %v469_v45 }
  0x46   :  { %1236 = vmatpush1.bf16.msra.mxu0 %v3271_v31  ;;  %1124 = vmatprep.mubr.bf16.mxu0 %v645_v32  ;;  %v649_v32 = vpack.c.bf16 %v460_v6, %v451_v5  ;;  %v3441_v44 = vpack.c.bf16 %v229_v28, %v227_v27  ;;  %v238_v56 = vld [vmem:[%s5221_s0 + $0x6d8] sm:$0xff]  ;;  %v105_v59 = vld [vmem:[%s5221_s0 + $0x2b0] sm:$0xff]  ;;  %v108_v61 = vld [vmem:[%s5221_s0 + $0x2c8] sm:$0xff] }
  0x47   :  { %1237 = vmatprep.subr.bf16.mxu0 %v3280_v35  ;;  %930 = vmatpush1.bf16.msra.mxu1 %v315_v39  ;;  %v653_v39 = vpack.c.bf16 %v464_v13, %v455_v12  ;;  %v110_v62 = vld [vmem:[%s5221_s0 + $0x2d8] sm:$0xff]  ;;  %v501_v1 = vld [vmem:[%s5222_s1 + $0x2b0] sm:$0xff]  ;;  %v235_v5 = vld [vmem:[%s5221_s0 + $0x6c0] sm:$0xff] }
  0x48   :  { %931 = vmatprep.subr.bf16.mxu1 %v318_v43  ;;  %v663_v43 = vpack.c.bf16 %v483_v25, %v474_v24  ;;  %v237_v6 = vld [vmem:[%s5221_s0 + $0x6d0] sm:$0xff]  ;;  %v240_v8 = vld [vmem:[%s5221_s0 + $0x6e8] sm:$0xff]  ;;  %v328_v12 = vpack.c.bf16 %v110_v62, %v108_v61  ;;  %v107_v13 = vld [vmem:[%s5221_s0 + $0x2c0] sm:$0xff] }
  0x49   :  { %v109_v14 = vld [vmem:[%s5221_s0 + $0x2d0] sm:$0xff]  ;;  %v112_v17 = vld [vmem:[%s5221_s0 + $0x2e8] sm:$0xff]  ;;  %v114_v18 = vld [vmem:[%s5221_s0 + $0x2f8] sm:$0xff]  ;;  %v3525_v21 = vpack.c.bf16 %v237_v6, %v235_v5 }
  0x4a   :  { %1238 = vmatpush1.bf16.msra.mxu0 %v3316_v49  ;;  %v487_v23 = vld [vmem:[%s5222_s1 + $0x240] sm:$0xff]  ;;  %v496_v24 = vld [vmem:[%s5222_s1 + $0x288] sm:$0xff]  ;;  %v241_v28 = vld [vmem:[%s5221_s0 + $0x6f0] sm:$0xff]  ;;  %v330_v36 = vpack.c.bf16 %v114_v18, %v112_v17 }
  0x4b   :  { %1239 = vmatprep.subr.bf16.mxu0 %v3328_v53  ;;  %932 = vmatpush1.bf16.msra.mxu1 %v317_v57  ;;  %v326_v57 = vpack.c.bf16 %v106_v42, %v104_v41  ;;  %v239_v27 = vld [vmem:[%s5221_s0 + $0x6e0] sm:$0xff]  ;;  %v244_v29 = vld [vmem:[%s5221_s0 + $0x708] sm:$0xff]  ;;  %v118_v42 = vld [vmem:[%s5221_s0 + $0x318] sm:$0xff] }
  0x4c   :  { %819 = vmatmul.mubr.bf16.gmra.mrb[4].mxu1 %v640_v58  ;;  %933 = vmatprep.subr.bf16.mxu1 %v320_v60  ;;  %v103_v58 = vld [vmem:[%s5221_s0 + $0x2a0] sm:$0xff]  ;;  %v488_v60 = vld [vmem:[%s5222_s1 + $0x248] sm:$0xff]  ;;  %v510_v45 = vld [vmem:[%s5222_s1 + $0x2f8] sm:$0xff]  ;;  %v3579_v48 = vpack.c.bf16 %v241_v28, %v239_v27 }
  0x4d   :  { %1125 = vmatmul.mubr.bf16.gmra.mrb[4].mxu0 %v644_v63  ;;  %828 = vmatprep.mubr.bf16.mxu1 %v650_v0  ;;  %v497_v63 = vld [vmem:[%s5222_s1 + $0x290] sm:$0xff]  ;;  %v492_v0 = vld [vmem:[%s5222_s1 + $0x268] sm:$0xff]  ;;  %v325_v9 = vpack.c.bf16 %v105_v59, %v103_v58  ;;  %v111_v37 = vld [vmem:[%s5221_s0 + $0x2e0] sm:$0xff] }
  0x4e   :  { %1240 = vmatpush1.bf16.msra.mxu0 %v3355_v3  ;;  %1134 = vmatprep.mubr.bf16.mxu0 %v654_v4  ;;  %v3498_v4 = vpack.c.bf16 %v238_v56, %v236_v51  ;;  %v668_v16 = vpack.c.bf16 %v497_v63, %v488_v60  ;;  %v672_v20 = vpack.c.bf16 %v501_v1, %v492_v0  ;;  %v500_v33 = vld [vmem:[%s5222_s1 + $0x2a8] sm:$0xff]  ;;  %v519_v46 = vld [vmem:[%s5222_s1 + $0x340] sm:$0xff]  ;;  %v117_v60 = vld [vmem:[%s5221_s0 + $0x310] sm:$0xff] }
  0x4f   :  { %1241 = vmatprep.subr.bf16.mxu0 %v3364_v7  ;;  %934 = vmatpush1.bf16.msra.mxu1 %v319_v11  ;;  %v242_v11 = vld [vmem:[%s5221_s0 + $0x6f8] sm:$0xff]  ;;  %v116_v41 = vld [vmem:[%s5221_s0 + $0x308] sm:$0xff]  ;;  %v243_v51 = vld [vmem:[%s5221_s0 + $0x700] sm:$0xff]  ;;  %v667_v56 = vpack.c.bf16 %v496_v24, %v487_v23  ;;  %v681_v1 = vpack.c.bf16 %v519_v46, %v510_v45 }
  0x50   :  { %935 = vmatprep.subr.bf16.mxu1 %v322_v15  ;;  %v662_v15 = vpack.c.bf16 %v482_v55, %v473_v54  ;;  %v3534_v25 = vpack.c.bf16 %v242_v11, %v240_v8  ;;  %v248_v54 = vld [vmem:[%s5221_s0 + $0x728] sm:$0xff]  ;;  %v332_v58 = vpack.c.bf16 %v118_v42, %v116_v41  ;;  %v115_v59 = vld [vmem:[%s5221_s0 + $0x300] sm:$0xff]  ;;  %v122_v0 = vld [vmem:[%s5221_s0 + $0x338] sm:$0xff] }
  0x51   :  { %v120_v63 = vld [vmem:[%s5221_s0 + $0x328] sm:$0xff]  ;;  %v505_v6 = vld [vmem:[%s5222_s1 + $0x2d0] sm:$0xff]  ;;  %v514_v8 = vld [vmem:[%s5222_s1 + $0x318] sm:$0xff] }
  0x52   :  { %1242 = vmatpush1.bf16.msra.mxu0 %v3400_v22  ;;  %v249_v11 = vld [vmem:[%s5221_s0 + $0x730] sm:$0xff]  ;;  %v334_v17 = vpack.c.bf16 %v122_v0, %v120_v63  ;;  %v119_v18 = vld [vmem:[%s5221_s0 + $0x320] sm:$0xff]  ;;  %v524_v23 = vld [vmem:[%s5222_s1 + $0x368] sm:$0xff] }
  0x53   :  { %1243 = vmatprep.subr.bf16.mxu0 %v3412_v26  ;;  %936 = vmatpush1.bf16.msra.mxu1 %v321_v30  ;;  %v327_v30 = vpack.c.bf16 %v109_v14, %v107_v13  ;;  %v331_v13 = vpack.c.bf16 %v117_v60, %v115_v59  ;;  %v509_v14 = vld [vmem:[%s5222_s1 + $0x2f0] sm:$0xff]  ;;  %v124_v24 = vld [vmem:[%s5221_s0 + $0x348] sm:$0xff]  ;;  %v126_v27 = vld [vmem:[%s5221_s0 + $0x358] sm:$0xff] }
  0x54   :  { %829 = vmatmul.mubr.bf16.gmra.mrb[8].mxu1 %v649_v32  ;;  %937 = vmatprep.subr.bf16.mxu1 %v324_v34  ;;  %v491_v32 = vld [vmem:[%s5222_s1 + $0x260] sm:$0xff]  ;;  %v246_v34 = vld [vmem:[%s5221_s0 + $0x718] sm:$0xff]  ;;  %v533_v28 = vld [vmem:[%s5222_s1 + $0x3b0] sm:$0xff]  ;;  %v336_v42 = vpack.c.bf16 %v126_v27, %v124_v24 }
  0x55   :  { %1135 = vmatmul.mubr.bf16.gmra.mrb[8].mxu0 %v653_v39  ;;  %838 = vmatprep.mubr.bf16.mxu1 %v659_v40  ;;  %v113_v39 = vld [vmem:[%s5221_s0 + $0x2f0] sm:$0xff]  ;;  %v506_v40 = vld [vmem:[%s5222_s1 + $0x2d8] sm:$0xff]  ;;  %v3582_v50 = vpack.c.bf16 %v246_v34, %v244_v29  ;;  %v671_v61 = vpack.c.bf16 %v500_v33, %v491_v32  ;;  %v528_v29 = vld [vmem:[%s5222_s1 + $0x388] sm:$0xff] }
  0x56   :  { %1144 = vmatprep.mubr.bf16.mxu0 %v663_v43  ;;  %1244 = vmatpush1.bf16.msra.mxu0 %v3441_v44  ;;  %v515_v43 = vld [vmem:[%s5222_s1 + $0x320] sm:$0xff]  ;;  %v329_v55 = vpack.c.bf16 %v113_v39, %v111_v37  ;;  %v256_v37 = vld [vmem:[%s5221_s0 + $0x768] sm:$0xff]  ;;  %v258_v41 = vld [vmem:[%s5221_s0 + $0x778] sm:$0xff] }
  0x57   :  { %1245 = vmatprep.subr.bf16.mxu0 %v3450_v47  ;;  %938 = vmatpush1.bf16.msra.mxu1 %v323_v52  ;;  %v245_v52 = vld [vmem:[%s5221_s0 + $0x710] sm:$0xff]  ;;  %v677_v62 = vpack.c.bf16 %v515_v43, %v506_v40  ;;  %v251_v34 = vld [vmem:[%s5221_s0 + $0x740] sm:$0xff]  ;;  %v676_v40 = vpack.c.bf16 %v514_v8, %v505_v6  ;;  %v3702_v59 = vpack.c.bf16 %v258_v41, %v256_v37  ;;  %v262_v6 = vld [vmem:[%s5221_s0 + $0x798] sm:$0xff] }
  0x58   :  { %939 = vmatprep.subr.bf16.mxu1 %v326_v57  ;;  %v250_v57 = vld [vmem:[%s5221_s0 + $0x738] sm:$0xff]  ;;  %v3609_v5 = vpack.c.bf16 %v245_v52, %v243_v51  ;;  %v123_v43 = vld [vmem:[%s5221_s0 + $0x340] sm:$0xff]  ;;  %v125_v45 = vld [vmem:[%s5221_s0 + $0x350] sm:$0xff]  ;;  %v686_v51 = vpack.c.bf16 %v533_v28, %v524_v23 }
  0x59   :  { %v128_v52 = vld [vmem:[%s5221_s0 + $0x368] sm:$0xff]  ;;  %v255_v60 = vld [vmem:[%s5221_s0 + $0x760] sm:$0xff]  ;;  %v335_v63 = vpack.c.bf16 %v125_v45, %v123_v43  ;;  %v261_v24 = vld [vmem:[%s5221_s0 + $0x790] sm:$0xff] }
  0x5a   :  { %1246 = vmatpush1.bf16.msra.mxu0 %v3495_v2  ;;  %v527_v0 = vld [vmem:[%s5222_s1 + $0x380] sm:$0xff]  ;;  %v264_v28 = vld [vmem:[%s5221_s0 + $0x7a8] sm:$0xff]  ;;  %v133_v37 = vld [vmem:[%s5221_s0 + $0x390] sm:$0xff] }
  0x5b   :  { %1247 = vmatprep.subr.bf16.mxu0 %v3498_v4  ;;  %940 = vmatpush1.bf16.msra.mxu1 %v325_v9  ;;  %v3618_v9 = vpack.c.bf16 %v250_v57, %v248_v54  ;;  %v130_v54 = vld [vmem:[%s5221_s0 + $0x378] sm:$0xff]  ;;  %v523_v57 = vld [vmem:[%s5222_s1 + $0x360] sm:$0xff]  ;;  %v136_v41 = vld [vmem:[%s5221_s0 + $0x3a8] sm:$0xff] }
  0x5c   :  { %839 = vmatmul.mubr.bf16.gmra.mrb[12].mxu1 %v658_v10  ;;  %941 = vmatprep.subr.bf16.mxu1 %v328_v12  ;;  %v247_v10 = vld [vmem:[%s5221_s0 + $0x720] sm:$0xff]  ;;  %v252_v12 = vld [vmem:[%s5221_s0 + $0x748] sm:$0xff]  ;;  %v338_v8 = vpack.c.bf16 %v130_v54, %v128_v52 }
  0x5d   :  { %1145 = vmatmul.mubr.bf16.gmra.mrb[12].mxu0 %v662_v15  ;;  %848 = vmatprep.mubr.bf16.mxu1 %v668_v16  ;;  %v518_v15 = vld [vmem:[%s5222_s1 + $0x338] sm:$0xff]  ;;  %v3663_v32 = vpack.c.bf16 %v249_v11, %v247_v10  ;;  %v127_v10 = vld [vmem:[%s5221_s0 + $0x360] sm:$0xff]  ;;  %v129_v11 = vld [vmem:[%s5221_s0 + $0x370] sm:$0xff] }
  0x5e   :  { %1154 = vmatprep.mubr.bf16.mxu0 %v672_v20  ;;  %1248 = vmatpush1.bf16.msra.mxu0 %v3525_v21  ;;  %v254_v16 = vld [vmem:[%s5221_s0 + $0x758] sm:$0xff]  ;;  %v121_v20 = vld [vmem:[%s5221_s0 + $0x330] sm:$0xff]  ;;  %v680_v46 = vpack.c.bf16 %v518_v15, %v509_v14  ;;  %v551_v15 = vld [vmem:[%s5222_s1 + $0x440] sm:$0xff]  ;;  %v337_v27 = vpack.c.bf16 %v129_v11, %v127_v10 }
  0x5f   :  { %1249 = vmatprep.subr.bf16.mxu0 %v3534_v25  ;;  %942 = vmatpush1.bf16.msra.mxu1 %v327_v30  ;;  %v537_v30 = vld [vmem:[%s5222_s1 + $0x3d0] sm:$0xff]  ;;  %v3666_v33 = vpack.c.bf16 %v254_v16, %v252_v12  ;;  %v333_v39 = vpack.c.bf16 %v121_v20, %v119_v18  ;;  %v542_v12 = vld [vmem:[%s5222_s1 + $0x3f8] sm:$0xff]  ;;  %v259_v23 = vld [vmem:[%s5221_s0 + $0x780] sm:$0xff] }
  0x60   :  { %943 = vmatprep.subr.bf16.mxu1 %v330_v36  ;;  %v253_v36 = vld [vmem:[%s5221_s0 + $0x750] sm:$0xff]  ;;  %v134_v14 = vld [vmem:[%s5221_s0 + $0x398] sm:$0xff]  ;;  %v3777_v45 = vpack.c.bf16 %v261_v24, %v259_v23  ;;  %v263_v54 = vld [vmem:[%s5221_s0 + $0x7a0] sm:$0xff] }
  0x61   :  { %v546_v16 = vld [vmem:[%s5222_s1 + $0x418] sm:$0xff]  ;;  %v569_v11 = vld [vmem:[%s5222_s1 + $0x4d0] sm:$0xff]  ;;  %v139_v24 = vld [vmem:[%s5221_s0 + $0x3c0] sm:$0xff] }
  0x62   :  { %1250 = vmatpush1.bf16.msra.mxu0 %v3579_v48  ;;  %v142_v10 = vld [vmem:[%s5221_s0 + $0x3d8] sm:$0xff]  ;;  %v269_v23 = vld [vmem:[%s5221_s0 + $0x7d0] sm:$0xff] }
  0x63   :  { %1251 = vmatprep.subr.bf16.mxu0 %v3582_v50  ;;  %944 = vmatpush1.bf16.msra.mxu1 %v329_v55  ;;  %v690_v55 = vpack.c.bf16 %v537_v30, %v528_v29  ;;  %v266_v30 = vld [vmem:[%s5221_s0 + $0x7b8] sm:$0xff] }
  0x64   :  { %849 = vmatmul.mubr.bf16.gmra.mrb[16].mxu1 %v667_v56  ;;  %945 = vmatprep.subr.bf16.mxu1 %v332_v58  ;;  %v3693_v56 = vpack.c.bf16 %v253_v36, %v251_v34  ;;  %v532_v58 = vld [vmem:[%s5222_s1 + $0x3a8] sm:$0xff]  ;;  %v131_v36 = vld [vmem:[%s5221_s0 + $0x380] sm:$0xff]  ;;  %v3786_v52 = vpack.c.bf16 %v266_v30, %v264_v28 }
  0x65   :  { %1155 = vmatmul.mubr.bf16.gmra.mrb[16].mxu0 %v671_v61  ;;  %858 = vmatprep.mubr.bf16.mxu1 %v677_v62  ;;  %v257_v61 = vld [vmem:[%s5221_s0 + $0x770] sm:$0xff]  ;;  %v260_v62 = vld [vmem:[%s5221_s0 + $0x788] sm:$0xff]  ;;  %v685_v29 = vpack.c.bf16 %v532_v58, %v523_v57  ;;  %v339_v57 = vpack.c.bf16 %v133_v37, %v131_v36 }
  0x66   :  { %1164 = vmatprep.mubr.bf16.mxu0 %v681_v1  ;;  %1252 = vmatpush1.bf16.msra.mxu0 %v3609_v5  ;;  %v536_v1 = vld [vmem:[%s5222_s1 + $0x3c8] sm:$0xff]  ;;  %v3747_v18 = vpack.c.bf16 %v257_v61, %v255_v60  ;;  %v3750_v20 = vpack.c.bf16 %v262_v6, %v260_v62  ;;  %v545_v60 = vld [vmem:[%s5222_s1 + $0x410] sm:$0xff]  ;;  %v554_v61 = vld [vmem:[%s5222_s1 + $0x458] sm:$0xff] }
  0x67   :  { %1253 = vmatprep.subr.bf16.mxu0 %v3618_v9  ;;  %946 = vmatpush1.bf16.msra.mxu1 %v331_v13  ;;  %v132_v13 = vld [vmem:[%s5221_s0 + $0x388] sm:$0xff]  ;;  %v698_v36 = vpack.c.bf16 %v554_v61, %v545_v60  ;;  %v278_v61 = vld [vmem:[%s5221_s0 + $0x818] sm:$0xff] }
  0x68   :  { %947 = vmatprep.subr.bf16.mxu1 %v334_v17  ;;  %v555_v17 = vld [vmem:[%s5222_s1 + $0x460] sm:$0xff]  ;;  %v340_v34 = vpack.c.bf16 %v134_v14, %v132_v13  ;;  %v268_v58 = vld [vmem:[%s5221_s0 + $0x7c8] sm:$0xff]  ;;  %v573_v13 = vld [vmem:[%s5222_s1 + $0x4f0] sm:$0xff] }
  0x69   :  { %v699_v43 = vpack.c.bf16 %v555_v17, %v546_v16  ;;  %v560_v6 = vld [vmem:[%s5222_s1 + $0x488] sm:$0xff]  ;;  %v267_v17 = vld [vmem:[%s5221_s0 + $0x7c0] sm:$0xff] }
  0x6a   :  { %1254 = vmatpush1.bf16.msra.mxu0 %v3663_v32  ;;  %v272_v30 = vld [vmem:[%s5221_s0 + $0x7e8] sm:$0xff]  ;;  %v704_v37 = vpack.c.bf16 %v569_v11, %v560_v6  ;;  %v578_v6 = vld [vmem:[%s5222_s1 + $0x518] sm:$0xff] }
  0x6b   :  { %1255 = vmatprep.subr.bf16.mxu0 %v3666_v33  ;;  %948 = vmatpush1.bf16.msra.mxu1 %v333_v39  ;;  %v689_v39 = vpack.c.bf16 %v536_v1, %v527_v0  ;;  %v135_v0 = vld [vmem:[%s5221_s0 + $0x3a0] sm:$0xff]  ;;  %v137_v1 = vld [vmem:[%s5221_s0 + $0x3b0] sm:$0xff]  ;;  %v276_v60 = vld [vmem:[%s5221_s0 + $0x808] sm:$0xff] }
  0x6c   :  { %859 = vmatmul.mubr.bf16.gmra.mrb[20].mxu1 %v676_v40  ;;  %949 = vmatprep.subr.bf16.mxu1 %v336_v42  ;;  %v695_v40 = vpack.c.bf16 %v551_v15, %v542_v12  ;;  %v138_v42 = vld [vmem:[%s5221_s0 + $0x3b8] sm:$0xff]  ;;  %v564_v12 = vld [vmem:[%s5222_s1 + $0x4a8] sm:$0xff]  ;;  %v341_v16 = vpack.c.bf16 %v137_v1, %v135_v0  ;;  %v563_v0 = vld [vmem:[%s5222_s1 + $0x4a0] sm:$0xff] }
  0x6d   :  { %1165 = vmatmul.mubr.bf16.gmra.mrb[20].mxu0 %v680_v46  ;;  %868 = vmatprep.mubr.bf16.mxu1 %v686_v51  ;;  %v541_v46 = vld [vmem:[%s5222_s1 + $0x3f0] sm:$0xff]  ;;  %v550_v51 = vld [vmem:[%s5222_s1 + $0x438] sm:$0xff]  ;;  %v342_v62 = vpack.c.bf16 %v138_v42, %v136_v41  ;;  %v708_v41 = vpack.c.bf16 %v573_v13, %v564_v12  ;;  %v3861_v42 = vpack.c.bf16 %v269_v23, %v267_v17  ;;  %v572_v1 = vld [vmem:[%s5222_s1 + $0x4e8] sm:$0xff] }
  0x6e   :  { %1174 = vmatprep.mubr.bf16.mxu0 %v690_v55  ;;  %1256 = vmatpush1.bf16.msra.mxu0 %v3693_v56  ;;  %v265_v55 = vld [vmem:[%s5221_s0 + $0x7b0] sm:$0xff]  ;;  %v582_v11 = vld [vmem:[%s5222_s1 + $0x538] sm:$0xff]  ;;  %v591_v12 = vld [vmem:[%s5222_s1 + $0x580] sm:$0xff]  ;;  %v707_v23 = vpack.c.bf16 %v572_v1, %v563_v0 }
  0x6f   :  { %1257 = vmatprep.subr.bf16.mxu0 %v3702_v59  ;;  %950 = vmatpush1.bf16.msra.mxu1 %v335_v63  ;;  %v270_v63 = vld [vmem:[%s5221_s0 + $0x7d8] sm:$0xff]  ;;  %v3831_v14 = vpack.c.bf16 %v265_v55, %v263_v54  ;;  %v273_v54 = vld [vmem:[%s5221_s0 + $0x7f0] sm:$0xff]  ;;  %v143_v55 = vld [vmem:[%s5221_s0 + $0x3e0] sm:$0xff] }
  0x70   :  { %951 = vmatprep.subr.bf16.mxu1 %v338_v8  ;;  %v140_v8 = vld [vmem:[%s5221_s0 + $0x3c8] sm:$0xff]  ;;  %v3834_v15 = vpack.c.bf16 %v270_v63, %v268_v58  ;;  %v145_v58 = vld [vmem:[%s5221_s0 + $0x3f0] sm:$0xff] }
  0x71   :  { %v344_v28 = vpack.c.bf16 %v142_v10, %v140_v8  ;;  %v568_v63 = vld [vmem:[%s5222_s1 + $0x4c8] sm:$0xff]  ;;  %v587_v8 = vld [vmem:[%s5222_s1 + $0x560] sm:$0xff]  ;;  %v345_v13 = vpack.c.bf16 %v145_v58, %v143_v55 }
  0x72   :  { %1258 = vmatpush1.bf16.msra.mxu0 %v3747_v18  ;;  %v604_v55 = vld [vmem:[%s5222_s1 + $0x5e8] sm:$0xff] }
  0x73   :  { %1259 = vmatprep.subr.bf16.mxu0 %v3750_v20  ;;  %952 = vmatpush1.bf16.msra.mxu1 %v337_v27  ;;  %v694_v27 = vpack.c.bf16 %v550_v51, %v541_v46  ;;  %v271_v51 = vld [vmem:[%s5221_s0 + $0x7e0] sm:$0xff]  ;;  %v608_v58 = vld [vmem:[%s5222_s1 + $0x608] sm:$0xff] }
  0x74   :  { %869 = vmatmul.mubr.bf16.gmra.mrb[24].mxu1 %v685_v29  ;;  %953 = vmatprep.subr.bf16.mxu1 %v340_v34  ;;  %v141_v29 = vld [vmem:[%s5221_s0 + $0x3d0] sm:$0xff]  ;;  %v274_v34 = vld [vmem:[%s5221_s0 + $0x7f8] sm:$0xff]  ;;  %v3903_v10 = vpack.c.bf16 %v273_v54, %v271_v51  ;;  %v595_v54 = vld [vmem:[%s5222_s1 + $0x5a0] sm:$0xff] }
  0x75   :  { %1175 = vmatmul.mubr.bf16.gmra.mrb[24].mxu0 %v689_v39  ;;  %878 = vmatprep.mubr.bf16.mxu1 %v695_v40  ;;  %v144_v39 = vld [vmem:[%s5221_s0 + $0x3e8] sm:$0xff]  ;;  %v146_v40 = vld [vmem:[%s5221_s0 + $0x3f8] sm:$0xff]  ;;  %v3864_v46 = vpack.c.bf16 %v274_v34, %v272_v30  ;;  %v581_v30 = vld [vmem:[%s5222_s1 + $0x530] sm:$0xff]  ;;  %v721_v0 = vpack.c.bf16 %v604_v55, %v595_v54 }
  0x76   :  { %1184 = vmatprep.mubr.bf16.mxu0 %v699_v43  ;;  %1260 = vmatpush1.bf16.msra.mxu0 %v3777_v45  ;;  %v343_v43 = vpack.c.bf16 %v141_v29, %v139_v24  ;;  %v713_v24 = vpack.c.bf16 %v587_v8, %v578_v6  ;;  %v586_v29 = vld [vmem:[%s5222_s1 + $0x558] sm:$0xff] }
  0x77   :  { %1261 = vmatprep.subr.bf16.mxu0 %v3786_v52  ;;  %954 = vmatpush1.bf16.msra.mxu1 %v339_v57  ;;  %v346_v57 = vpack.c.bf16 %v146_v40, %v144_v39  ;;  %v590_v34 = vld [vmem:[%s5222_s1 + $0x578] sm:$0xff]  ;;  %v609_v39 = vld [vmem:[%s5222_s1 + $0x610] sm:$0xff] }
  0x78   :  { %955 = vmatprep.subr.bf16.mxu1 %v342_v62  ;;  %v559_v62 = vld [vmem:[%s5222_s1 + $0x480] sm:$0xff] }
  0x79   :  { %v703_v17 = vpack.c.bf16 %v568_v63, %v559_v62  ;;  %v618_v62 = vld [vmem:[%s5222_s1 + $0x658] sm:$0xff]  ;;  %v627_v63 = vld [vmem:[%s5222_s1 + $0x6a0] sm:$0xff] }
  0x7a   :  { %1262 = vmatpush1.bf16.msra.mxu0 %v3831_v14  ;;  %v735_v8 = vpack.c.bf16 %v627_v63, %v618_v62 }
  0x7b   :  { %1263 = vmatprep.subr.bf16.mxu0 %v3834_v15  ;;  %956 = vmatpush1.bf16.msra.mxu1 %v341_v16  ;;  %v412_v16 = vpack.c.bf16 %v278_v61, %v276_v60  ;;  %v614_v60 = vld [vmem:[%s5222_s1 + $0x638] sm:$0xff]  ;;  %v623_v61 = vld [vmem:[%s5222_s1 + $0x680] sm:$0xff] }
  0x7c   :  { %879 = vmatmul.mubr.bf16.gmra.mrb[28].mxu1 %v694_v27  ;;  %957 = vmatprep.subr.bf16.mxu1 %v344_v28  ;;  %v717_v27 = vpack.c.bf16 %v591_v12, %v582_v11  ;;  %v577_v28 = vld [vmem:[%s5222_s1 + $0x510] sm:$0xff]  ;;  %v731_v6 = vpack.c.bf16 %v623_v61, %v614_v60  ;;  %v622_v12 = vld [vmem:[%s5222_s1 + $0x678] sm:$0xff] }
  0x7d   :  { %1185 = vmatmul.mubr.bf16.gmra.mrb[28].mxu0 %v698_v36  ;;  %888 = vmatprep.mubr.bf16.mxu1 %v704_v37  ;;  %v605_v36 = vld [vmem:[%s5222_s1 + $0x5f0] sm:$0xff]  ;;  %v600_v37 = vld [vmem:[%s5222_s1 + $0x5c8] sm:$0xff]  ;;  %v712_v40 = vpack.c.bf16 %v586_v29, %v577_v28 }
  0x7e   :  { %1194 = vmatprep.mubr.bf16.mxu0 %v708_v41  ;;  %1264 = vmatpush1.bf16.msra.mxu0 %v3861_v42  ;;  %v716_v41 = vpack.c.bf16 %v590_v34, %v581_v30  ;;  %v726_v51 = vpack.c.bf16 %v609_v39, %v600_v37  ;;  %v613_v11 = vld [vmem:[%s5222_s1 + $0x630] sm:$0xff]  ;;  %v430_v39 = vld [vmem:[%s5222_s1 + $0x78] sm:$0xff] }
  0x7f   :  { %958 = vmatpush1.bf16.msra.mxu1 %v343_v43  ;;  %1265 = vmatprep.subr.bf16.mxu0 %v3864_v46  ;;  %v730_v28 = vpack.c.bf16 %v622_v12, %v613_v11  ;;  %v421_v37 = vld [vmem:[%s5222_s1 + $0x30] sm:$0xff] }
  0x80   :  { %959 = vmatprep.subr.bf16.mxu1 %v346_v57  ;;  %v599_v57 = vld [vmem:[%s5222_s1 + $0x5c0] sm:$0xff] }
  0x81   :  { %v725_v1 = vpack.c.bf16 %v608_v58, %v599_v57 }
  0x82   :  { %1266 = vmatpush1.bf16.msra.mxu0 %v3903_v10 }
  0x83   :  { %960 = vmatpush1.bf16.msra.mxu1 %v345_v13  ;;  %1388 = vmatprep.subr.bf16.mxu0 %v412_v16  ;;  %v617_v13 = vld [vmem:[%s5222_s1 + $0x650] sm:$0xff]  ;;  %v626_v16 = vld [vmem:[%s5222_s1 + $0x698] sm:$0xff] }
  0x84   :  { %889 = vmatmul.mubr.bf16.gmra.mrb[32].mxu1 %v703_v17  ;;  %2482 = vmatprep.subr.bf16.mxu1 %v3245_v19  ;;  %v596_v19 = vld [vmem:[%s5222_s1 + $0x5a8] sm:$0xff]  ;;  %v418_v17 = vld [vmem:[%s5222_s1 + $0x18] sm:$0xff]  ;;  %v734_v29 = vpack.c.bf16 %v626_v16, %v617_v13 }
  0x85   :  { %1195 = vmatmul.mubr.bf16.gmra.mrb[32].mxu0 %v707_v23  ;;  %898 = vmatprep.mubr.bf16.mxu1 %v713_v24  ;;  %v722_v43 = vpack.c.bf16 %v605_v36, %v596_v19  ;;  %v427_v23 = vld [vmem:[%s5222_s1 + $0x60] sm:$0xff]  ;;  %v422_v24 = vld [vmem:[%s5222_s1 + $0x38] sm:$0xff]  ;;  %v417_v19 = vld [vmem:[%s5222_s1 + $0x10] sm:$0xff] }
  0x86   :  { %1204 = vmatprep.mubr.bf16.mxu0 %v717_v27  ;;  %v431_v27 = vld [vmem:[%s5222_s1 + $0x80] sm:$0xff]  ;;  %v634_v30 = vpack.c.bf16 %v427_v23, %v418_v17  ;;  %v426_v36 = vld [vmem:[%s5222_s1 + $0x58] sm:$0xff] }
  0x87   :  { %v638_v34 = vpack.c.bf16 %v431_v27, %v422_v24 }
  0x8c   :  { %899 = vmatmul.mubr.bf16.gmra.mrb[36].mxu1 %v712_v40  ;;  %v275_v40 = vld [vmem:[%s5221_s0 + $0x800] sm:$0xff] }
  0x8d   :  { %1205 = vmatmul.mubr.bf16.gmra.mrb[36].mxu0 %v716_v41  ;;  %908 = vmatprep.mubr.bf16.mxu1 %v722_v43  ;;  %v436_v41 = vld [vmem:[%s5222_s1 + $0xa8] sm:$0xff]  ;;  %v445_v43 = vld [vmem:[%s5222_s1 + $0xf0] sm:$0xff] }
  0x8e   :  { %1214 = vmatprep.mubr.bf16.mxu0 %v726_v51 }
  0x94   :  { %909 = vmatmul.mubr.bf16.gmra.mrb[40].mxu1 %v721_v0 }
  0x95   :  { %1215 = vmatmul.mubr.bf16.gmra.mrb[40].mxu0 %v725_v1  ;;  %918 = vmatprep.mubr.bf16.mxu1 %v731_v6 }
  0x96   :  { %1224 = vmatprep.mubr.bf16.mxu0 %v735_v8 }
  0x9c   :  { %919 = vmatmul.mubr.bf16.gmra.mrb[44].mxu1 %v730_v28 }
  0x9d   :  { %1225 = vmatmul.mubr.bf16.gmra.mrb[44].mxu0 %v734_v29  ;;  %961 = vmatprep.mubr.bf16.mxu1 %v634_v30 }
  0x9e   :  { %1267 = vmatprep.mubr.bf16.mxu0 %v638_v34 }
  0x9f   :  { %9 = vsyncpa [#allocation3], 0  ;;  %v277_v51 = vld [vmem:[%s5221_s0 + $0x810] sm:$0xff]  ;;  %v440_v54 = vld [vmem:[%s5222_s1 + $0xc8] sm:$0xff]  ;;  %v633_v57 = vpack.c.bf16 %v426_v36, %v417_v19  ;;  %v637_v61 = vpack.c.bf16 %v430_v39, %v421_v37  ;;  %v643_v62 = vpack.c.bf16 %v445_v43, %v436_v41  ;;  %vm739_vm0 = vcmask 261120  }
  0xa0   :  { %v449_v55 = vld [vmem:[%s5222_s1 + $0x110] sm:$0xff]  ;;  %v280_v58 = vld [vmem:[%s5221_s0 + $0x828] sm:$0xff]  ;;  %v282_v60 = vld [vmem:[%s5221_s0 + $0x838] sm:$0xff]  ;;  %v411_v63 = vpack.c.bf16 %v277_v51, %v275_v40  ;;  %vm1541_vm1 = vcmask 556032  }
  0xa1   :  { %v647_v0 = vpack.c.bf16 %v449_v55, %v440_v54  ;;  %v414_v1 = vpack.c.bf16 %v282_v60, %v280_v58  ;;  %v279_v6 = vld [vmem:[%s5221_s0 + $0x820] sm:$0xff]  ;;  %v281_v8 = vld [vmem:[%s5221_s0 + $0x830] sm:$0xff]  ;;  %v444_v12 = vld [vmem:[%s5222_s1 + $0xe8] sm:$0xff] }
  0xa2   :  { %v435_v11 = vld [vmem:[%s5222_s1 + $0xa0] sm:$0xff]  ;;  %v448_v16 = vld [vmem:[%s5222_s1 + $0x108] sm:$0xff]  ;;  %v454_v17 = vld [vmem:[%s5222_s1 + $0x138] sm:$0xff]  ;;  %v413_v24 = vpack.c.bf16 %v281_v8, %v279_v6 }
  0xa3   :  { %v439_v13 = vld [vmem:[%s5222_s1 + $0xc0] sm:$0xff]  ;;  %v458_v27 = vld [vmem:[%s5222_s1 + $0x158] sm:$0xff]  ;;  %v642_v29 = vpack.c.bf16 %v444_v12, %v435_v11  ;;  %v481_v37 = vld [vmem:[%s5222_s1 + $0x210] sm:$0xff] }
  0xa4   :  { %962 = vmatmul.mubr.bf16.vlgmr.msra.gmra.mrb[0].mxu1 %v633_v57  ;;  %v463_v23 = vld [vmem:[%s5222_s1 + $0x180] sm:$0xff]  ;;  %v646_v30 = vpack.c.bf16 %v448_v16, %v439_v13  ;;  %v462_v36 = vld [vmem:[%s5222_s1 + $0x178] sm:$0xff]  ;;  %v476_v39 = vld [vmem:[%s5222_s1 + $0x1e8] sm:$0xff] }
  0xa5   :  { %1268 = vmatmul.mubr.bf16.vlgmr.msra.gmra.mrb[0].mxu0 %v637_v61  ;;  %971 = vmatprep.mubr.bf16.mxu1 %v643_v62  ;;  %v467_v28 = vld [vmem:[%s5222_s1 + $0x1a0] sm:$0xff]  ;;  %v652_v34 = vpack.c.bf16 %v463_v23, %v454_v17  ;;  %v485_v40 = vld [vmem:[%s5222_s1 + $0x230] sm:$0xff]  ;;  %v494_v58 = vld [vmem:[%s5222_s1 + $0x278] sm:$0xff] }
  0xa6   :  { %1389 = vmatpush1.bf16.msra.mxu0 %v411_v63  ;;  %1277 = vmatprep.mubr.bf16.mxu0 %v647_v0  ;;  %v656_v19 = vpack.c.bf16 %v467_v28, %v458_v27  ;;  %v665_v54 = vpack.c.bf16 %v485_v40, %v476_v39  ;;  %v471_v55 = vld [vmem:[%s5222_s1 + $0x1c0] sm:$0xff]  ;;  %v517_v6 = vld [vmem:[%s5222_s1 + $0x330] sm:$0xff]  ;;  %v512_v8 = vld [vmem:[%s5222_s1 + $0x308] sm:$0xff] }
  0xa7   :  { %2498 = vmatpush1.bf16.msra.mxu1 %v3271_v31  ;;  %1390 = vmatprep.subr.bf16.mxu0 %v414_v1  ;;  %v453_v31 = vld [vmem:[%s5222_s1 + $0x130] sm:$0xff]  ;;  %v499_v57 = vld [vmem:[%s5222_s1 + $0x2a0] sm:$0xff] }
  0xa8   :  { %2483 = vmatprep.subr.bf16.mxu1 %v3280_v35  ;;  %v457_v35 = vld [vmem:[%s5222_s1 + $0x150] sm:$0xff]  ;;  %v651_v41 = vpack.c.bf16 %v462_v36, %v453_v31  ;;  %v503_v60 = vld [vmem:[%s5222_s1 + $0x2c0] sm:$0xff] }
  0xa9   :  { %v674_v0 = vpack.c.bf16 %v503_v60, %v494_v58  ;;  %v489_v1 = vld [vmem:[%s5222_s1 + $0x250] sm:$0xff]  ;;  %v507_v23 = vld [vmem:[%s5222_s1 + $0x2e0] sm:$0xff]  ;;  %v606_v60 = vld [vmem:[%s5222_s1 + $0x5f8] sm:$0xff] }
  0xaa   :  { %1391 = vmatpush1.bf16.msra.mxu0 %v413_v24  ;;  %v521_v11 = vld [vmem:[%s5222_s1 + $0x350] sm:$0xff]  ;;  %v535_v24 = vld [vmem:[%s5222_s1 + $0x3c0] sm:$0xff] }
  0xab   :  { %2499 = vmatpush1.bf16.msra.mxu1 %v3316_v49  ;;  %v466_v49 = vld [vmem:[%s5222_s1 + $0x198] sm:$0xff]  ;;  %v683_v17 = vpack.c.bf16 %v521_v11, %v512_v8  ;;  %v561_v40 = vld [vmem:[%s5222_s1 + $0x490] sm:$0xff] }
  0xac   :  { %972 = vmatmul.mubr.bf16.gmra.mrb[4].mxu1 %v642_v29  ;;  %2484 = vmatprep.subr.bf16.mxu1 %v3328_v53  ;;  %v472_v53 = vld [vmem:[%s5222_s1 + $0x1c8] sm:$0xff]  ;;  %v655_v43 = vpack.c.bf16 %v466_v49, %v457_v35  ;;  %v543_v35 = vld [vmem:[%s5222_s1 + $0x400] sm:$0xff]  ;;  %v597_v58 = vld [vmem:[%s5222_s1 + $0x5b0] sm:$0xff] }
  0xad   :  { %1278 = vmatmul.mubr.bf16.gmra.mrb[4].mxu0 %v646_v30  ;;  %981 = vmatprep.mubr.bf16.mxu1 %v652_v34  ;;  %v661_v51 = vpack.c.bf16 %v481_v37, %v472_v53  ;;  %v525_v30 = vld [vmem:[%s5222_s1 + $0x370] sm:$0xff]  ;;  %v571_v49 = vld [vmem:[%s5222_s1 + $0x4e0] sm:$0xff]  ;;  %v522_v8 = vld [vmem:[%s5222_s1 + $0x358] sm:$0xff] }
  0xae   :  { %1287 = vmatprep.mubr.bf16.mxu0 %v656_v19  ;;  %v553_v34 = vld [vmem:[%s5222_s1 + $0x450] sm:$0xff]  ;;  %v530_v11 = vld [vmem:[%s5222_s1 + $0x398] sm:$0xff] }
  0xaf   :  { %2500 = vmatpush1.bf16.msra.mxu1 %v3355_v3  ;;  %v480_v3 = vld [vmem:[%s5222_s1 + $0x208] sm:$0xff] }
  0xb0   :  { %2485 = vmatprep.subr.bf16.mxu1 %v3364_v7  ;;  %v475_v7 = vld [vmem:[%s5222_s1 + $0x1e0] sm:$0xff]  ;;  %v660_v61 = vpack.c.bf16 %v480_v3, %v471_v55  ;;  %v588_v3 = vld [vmem:[%s5222_s1 + $0x568] sm:$0xff] }
  0xb1   :  { %v579_v55 = vld [vmem:[%s5222_s1 + $0x520] sm:$0xff] }
  0xb3   :  { %2501 = vmatpush1.bf16.msra.mxu1 %v3400_v22  ;;  %v484_v22 = vld [vmem:[%s5222_s1 + $0x228] sm:$0xff] }
  0xb4   :  { %982 = vmatmul.mubr.bf16.gmra.mrb[8].mxu1 %v651_v41  ;;  %2486 = vmatprep.subr.bf16.mxu1 %v3412_v26  ;;  %v490_v26 = vld [vmem:[%s5222_s1 + $0x258] sm:$0xff]  ;;  %v664_v62 = vpack.c.bf16 %v484_v22, %v475_v7  ;;  %v589_v41 = vld [vmem:[%s5222_s1 + $0x570] sm:$0xff]  ;;  %v607_v7 = vld [vmem:[%s5222_s1 + $0x600] sm:$0xff]  ;;  %v714_v22 = vpack.c.bf16 %v588_v3, %v579_v55 }
  0xb5   :  { %1288 = vmatmul.mubr.bf16.gmra.mrb[8].mxu0 %v655_v43  ;;  %991 = vmatprep.mubr.bf16.mxu1 %v661_v51  ;;  %v670_v63 = vpack.c.bf16 %v499_v57, %v490_v26  ;;  %v601_v55 = vld [vmem:[%s5222_s1 + $0x5d0] sm:$0xff]  ;;  %v610_v3 = vld [vmem:[%s5222_s1 + $0x618] sm:$0xff] }
  0xb6   :  { %1297 = vmatprep.mubr.bf16.mxu0 %v665_v54 }
  0xb7   :  { %2502 = vmatpush1.bf16.msra.mxu1 %v3441_v44  ;;  %v498_v44 = vld [vmem:[%s5222_s1 + $0x298] sm:$0xff] }
  0xb8   :  { %2487 = vmatprep.subr.bf16.mxu1 %v3450_v47  ;;  %v493_v47 = vld [vmem:[%s5222_s1 + $0x270] sm:$0xff]  ;;  %v669_v12 = vpack.c.bf16 %v498_v44, %v489_v1  ;;  %v723_v1 = vpack.c.bf16 %v606_v60, %v597_v58  ;;  %v619_v58 = vld [vmem:[%s5222_s1 + $0x660] sm:$0xff]  ;;  %v628_v60 = vld [vmem:[%s5222_s1 + $0x6a8] sm:$0xff] }
  0xbb   :  { %2503 = vmatpush1.bf16.msra.mxu1 %v3495_v2  ;;  %v502_v2 = vld [vmem:[%s5222_s1 + $0x2b8] sm:$0xff] }
  0xbc   :  { %992 = vmatmul.mubr.bf16.gmra.mrb[12].mxu1 %v660_v61  ;;  %2488 = vmatprep.subr.bf16.mxu1 %v3498_v4  ;;  %v508_v4 = vld [vmem:[%s5222_s1 + $0x2e8] sm:$0xff]  ;;  %v673_v13 = vpack.c.bf16 %v502_v2, %v493_v47  ;;  %v495_v61 = vld [vmem:[%s5222_s1 + $0x280] sm:$0xff] }
  0xbd   :  { %1298 = vmatmul.mubr.bf16.gmra.mrb[12].mxu0 %v664_v62  ;;  %1001 = vmatprep.mubr.bf16.mxu1 %v670_v63  ;;  %v679_v16 = vpack.c.bf16 %v517_v6, %v508_v4  ;;  %v504_v62 = vld [vmem:[%s5222_s1 + $0x2c8] sm:$0xff]  ;;  %v615_v2 = vld [vmem:[%s5222_s1 + $0x640] sm:$0xff]  ;;  %v513_v6 = vld [vmem:[%s5222_s1 + $0x310] sm:$0xff] }
  0xbe   :  { %1307 = vmatprep.mubr.bf16.mxu0 %v674_v0  ;;  %v616_v63 = vld [vmem:[%s5222_s1 + $0x648] sm:$0xff]  ;;  %v625_v0 = vld [vmem:[%s5222_s1 + $0x690] sm:$0xff]  ;;  %v675_v44 = vpack.c.bf16 %v504_v62, %v495_v61  ;;  %v630_v62 = vld [vmem:[%s5222_s1 + $0x6b8] sm:$0xff] }
  0xbf   :  { %2504 = vmatpush1.bf16.msra.mxu1 %v3525_v21  ;;  %v516_v21 = vld [vmem:[%s5222_s1 + $0x328] sm:$0xff]  ;;  %v733_v47 = vpack.c.bf16 %v625_v0, %v616_v63  ;;  %v621_v61 = vld [vmem:[%s5222_s1 + $0x670] sm:$0xff]  ;;  %v736_v63 = vpack.c.bf16 %v628_v60, %v619_v58 }
  0xc0   :  { %2489 = vmatprep.subr.bf16.mxu1 %v3534_v25  ;;  %v511_v25 = vld [vmem:[%s5222_s1 + $0x300] sm:$0xff]  ;;  %v678_v27 = vpack.c.bf16 %v516_v21, %v507_v23  ;;  %v624_v4 = vld [vmem:[%s5222_s1 + $0x688] sm:$0xff]  ;;  %v529_v23 = vld [vmem:[%s5222_s1 + $0x390] sm:$0xff]  ;;  %v738_v0 = vpack.c.bf16 %v630_v62, %v621_v61 }
  0xc1   :  { %v538_v21 = vld [vmem:[%s5222_s1 + $0x3d8] sm:$0xff] }
  0xc3   :  { %2505 = vmatpush1.bf16.msra.mxu1 %v3579_v48  ;;  %v520_v48 = vld [vmem:[%s5222_s1 + $0x348] sm:$0xff] }
  0xc4   :  { %1002 = vmatmul.mubr.bf16.gmra.mrb[16].mxu1 %v669_v12  ;;  %2490 = vmatprep.subr.bf16.mxu1 %v3582_v50  ;;  %v526_v50 = vld [vmem:[%s5222_s1 + $0x378] sm:$0xff]  ;;  %v682_v28 = vpack.c.bf16 %v520_v48, %v511_v25  ;;  %v539_v12 = vld [vmem:[%s5222_s1 + $0x3e0] sm:$0xff]  ;;  %v540_v48 = vld [vmem:[%s5222_s1 + $0x3e8] sm:$0xff] }
  0xc5   :  { %1308 = vmatmul.mubr.bf16.gmra.mrb[16].mxu0 %v673_v13  ;;  %1011 = vmatprep.mubr.bf16.mxu1 %v679_v16  ;;  %v688_v29 = vpack.c.bf16 %v535_v24, %v526_v50  ;;  %v732_v13 = vpack.c.bf16 %v624_v4, %v615_v2  ;;  %v684_v16 = vpack.c.bf16 %v522_v8, %v513_v6  ;;  %v531_v25 = vld [vmem:[%s5222_s1 + $0x3a0] sm:$0xff]  ;;  %v548_v50 = vld [vmem:[%s5222_s1 + $0x428] sm:$0xff]  ;;  %v557_v24 = vld [vmem:[%s5222_s1 + $0x470] sm:$0xff] }
  0xc6   :  { %1317 = vmatprep.mubr.bf16.mxu0 %v683_v17  ;;  %v692_v17 = vpack.c.bf16 %v539_v12, %v530_v11 }
  0xc7   :  { %2506 = vmatpush1.bf16.msra.mxu1 %v3609_v5  ;;  %v534_v5 = vld [vmem:[%s5222_s1 + $0x3b8] sm:$0xff] }
  0xc8   :  { %2491 = vmatprep.subr.bf16.mxu1 %v3618_v9  ;;  %v423_v9 = vld [vmem:[%s5222_s1 + $0x40] sm:$0xff]  ;;  %v687_v19 = vpack.c.bf16 %v534_v5, %v525_v30  ;;  %v556_v5 = vld [vmem:[%s5222_s1 + $0x468] sm:$0xff] }
  0xc9   :  { %v547_v30 = vld [vmem:[%s5222_s1 + $0x420] sm:$0xff] }
  0xcb   :  { %2507 = vmatpush1.bf16.msra.mxu1 %v3663_v32  ;;  %v432_v32 = vld [vmem:[%s5222_s1 + $0x88] sm:$0xff] }
  0xcc   :  { %1012 = vmatmul.mubr.bf16.gmra.mrb[20].mxu1 %v678_v27  ;;  %2492 = vmatprep.subr.bf16.mxu1 %v3666_v33  ;;  %v544_v33 = vld [vmem:[%s5222_s1 + $0x408] sm:$0xff]  ;;  %v639_v31 = vpack.c.bf16 %v432_v32, %v423_v9  ;;  %v691_v27 = vpack.c.bf16 %v538_v21, %v529_v23  ;;  %v549_v9 = vld [vmem:[%s5222_s1 + $0x430] sm:$0xff]  ;;  %v558_v32 = vld [vmem:[%s5222_s1 + $0x478] sm:$0xff] }
  0xcd   :  { %1318 = vmatmul.mubr.bf16.gmra.mrb[20].mxu0 %v682_v28  ;;  %1021 = vmatprep.mubr.bf16.mxu1 %v688_v29  ;;  %v697_v36 = vpack.c.bf16 %v553_v34, %v544_v33  ;;  %v693_v28 = vpack.c.bf16 %v540_v48, %v531_v25  ;;  %v701_v29 = vpack.c.bf16 %v557_v24, %v548_v50  ;;  %v566_v33 = vld [vmem:[%s5222_s1 + $0x4b8] sm:$0xff]  ;;  %v575_v34 = vld [vmem:[%s5222_s1 + $0x500] sm:$0xff] }
  0xce   :  { %1420 = vmatprep.mubr.bf16.mxu0 %v2784_v38 }
  0xcf   :  { %2508 = vmatpush1.bf16.msra.mxu1 %v3693_v56  ;;  %v552_v56 = vld [vmem:[%s5222_s1 + $0x448] sm:$0xff] }
  0xd0   :  { %2493 = vmatprep.subr.bf16.mxu1 %v3702_v59  ;;  %v441_v59 = vld [vmem:[%s5222_s1 + $0xd0] sm:$0xff]  ;;  %v696_v53 = vpack.c.bf16 %v552_v56, %v543_v35  ;;  %v574_v56 = vld [vmem:[%s5222_s1 + $0x4f8] sm:$0xff] }
  0xd1   :  { %v565_v35 = vld [vmem:[%s5222_s1 + $0x4b0] sm:$0xff] }
  0xd3   :  { %2509 = vmatpush1.bf16.msra.mxu1 %v3747_v18  ;;  %v450_v18 = vld [vmem:[%s5222_s1 + $0x118] sm:$0xff] }
  0xd4   :  { %1022 = vmatmul.mubr.bf16.gmra.mrb[24].mxu1 %v687_v19  ;;  %2494 = vmatprep.subr.bf16.mxu1 %v3750_v20  ;;  %v562_v20 = vld [vmem:[%s5222_s1 + $0x498] sm:$0xff]  ;;  %v648_v37 = vpack.c.bf16 %v450_v18, %v441_v59  ;;  %v700_v19 = vpack.c.bf16 %v556_v5, %v547_v30  ;;  %v567_v59 = vld [vmem:[%s5222_s1 + $0x4c0] sm:$0xff]  ;;  %v576_v18 = vld [vmem:[%s5222_s1 + $0x508] sm:$0xff] }
  0xd5   :  { %2470 = vmatmul.mubr.msk.bf16.vlgmr.msra.gmra.mrb[0].mxu0 %vm739_vm0, %v639_v31  ;;  %1031 = vmatprep.mubr.bf16.mxu1 %v697_v36  ;;  %v706_v39 = vpack.c.bf16 %v571_v49, %v562_v20  ;;  %v702_v31 = vpack.c.bf16 %v558_v32, %v549_v9  ;;  %v710_v36 = vpack.c.bf16 %v575_v34, %v566_v33  ;;  %v584_v20 = vld [vmem:[%s5222_s1 + $0x548] sm:$0xff]  ;;  %v593_v49 = vld [vmem:[%s5222_s1 + $0x590] sm:$0xff] }
  0xd6   :  { %1430 = vmatprep.mubr.bf16.mxu0 %v2784_v38 }
  0xd7   :  { %2510 = vmatpush1.bf16.msra.mxu1 %v3777_v45  ;;  %v570_v45 = vld [vmem:[%s5222_s1 + $0x4d8] sm:$0xff] }
  0xd8   :  { %2495 = vmatprep.subr.bf16.mxu1 %v3786_v52  ;;  %v459_v52 = vld [vmem:[%s5222_s1 + $0x160] sm:$0xff]  ;;  %v705_v43 = vpack.c.bf16 %v570_v45, %v561_v40  ;;  %v592_v45 = vld [vmem:[%s5222_s1 + $0x588] sm:$0xff] }
  0xd9   :  { %v583_v40 = vld [vmem:[%s5222_s1 + $0x540] sm:$0xff] }
  0xdb   :  { %2511 = vmatpush1.bf16.msra.mxu1 %v3831_v14  ;;  %v468_v14 = vld [vmem:[%s5222_s1 + $0x1a8] sm:$0xff] }
  0xdc   :  { %1032 = vmatmul.mubr.bf16.gmra.mrb[28].mxu1 %v696_v53  ;;  %2496 = vmatprep.subr.bf16.mxu1 %v3834_v15  ;;  %v580_v15 = vld [vmem:[%s5222_s1 + $0x528] sm:$0xff]  ;;  %v657_v51 = vpack.c.bf16 %v468_v14, %v459_v52  ;;  %v709_v53 = vpack.c.bf16 %v574_v56, %v565_v35  ;;  %v585_v52 = vld [vmem:[%s5222_s1 + $0x550] sm:$0xff]  ;;  %v594_v14 = vld [vmem:[%s5222_s1 + $0x598] sm:$0xff] }
  0xdd   :  { %2471 = vmatmul.mubr.msk.bf16.gmra.mrb[4].mxu0 %vm739_vm0, %v648_v37  ;;  %1041 = vmatprep.mubr.bf16.mxu1 %v706_v39  ;;  %v715_v54 = vpack.c.bf16 %v589_v41, %v580_v15  ;;  %v711_v37 = vpack.c.bf16 %v576_v18, %v567_v59  ;;  %v719_v39 = vpack.c.bf16 %v593_v49, %v584_v20  ;;  %v602_v15 = vld [vmem:[%s5222_s1 + $0x5d8] sm:$0xff]  ;;  %v611_v41 = vld [vmem:[%s5222_s1 + $0x620] sm:$0xff] }
  0xde   :  { %1440 = vmatprep.mubr.bf16.mxu0 %v2784_v38 }
  0xdf   :  { %2512 = vmatpush1.bf16.msra.mxu1 %v3861_v42  ;;  %v477_v42 = vld [vmem:[%s5222_s1 + $0x1f0] sm:$0xff] }
  0xe0   :  { %2497 = vmatprep.subr.bf16.mxu1 %v3864_v46  ;;  %v486_v46 = vld [vmem:[%s5222_s1 + $0x238] sm:$0xff] }
  0xe1   :  { %v666_v26 = vpack.c.bf16 %v486_v46, %v477_v42  ;;  %v603_v42 = vld [vmem:[%s5222_s1 + $0x5e0] sm:$0xff]  ;;  %v612_v46 = vld [vmem:[%s5222_s1 + $0x628] sm:$0xff] }
  0xe3   :  { %2513 = vmatpush1.bf16.msra.mxu1 %v3903_v10  ;;  %v598_v10 = vld [vmem:[%s5222_s1 + $0x5b8] sm:$0xff] }
  0xe4   :  { %1042 = vmatmul.mubr.bf16.gmra.mrb[32].mxu1 %v705_v43  ;;  %v724_v57 = vpack.c.bf16 %v607_v7, %v598_v10  ;;  %v718_v43 = vpack.c.bf16 %v592_v45, %v583_v40  ;;  %v620_v10 = vld [vmem:[%s5222_s1 + $0x668] sm:$0xff]  ;;  %v629_v7 = vld [vmem:[%s5222_s1 + $0x6b0] sm:$0xff] }
  0xe5   :  { %2472 = vmatmul.mubr.msk.bf16.gmra.mrb[8].mxu0 %vm739_vm0, %v657_v51  ;;  %1051 = vmatprep.mubr.bf16.mxu1 %v715_v54  ;;  %v720_v51 = vpack.c.bf16 %v594_v14, %v585_v52  ;;  %v728_v54 = vpack.c.bf16 %v611_v41, %v602_v15 }
  0xe6   :  { %1450 = vmatprep.mubr.bf16.mxu0 %v2784_v38 }
  0xec   :  { %1052 = vmatmul.mubr.bf16.gmra.mrb[36].mxu1 %v714_v22  ;;  %v727_v22 = vpack.c.bf16 %v610_v3, %v601_v55 }
  0xed   :  { %2473 = vmatmul.mubr.msk.bf16.gmra.mrb[12].mxu0 %vm739_vm0, %v666_v26  ;;  %1061 = vmatprep.mubr.bf16.mxu1 %v724_v57  ;;  %v729_v26 = vpack.c.bf16 %v612_v46, %v603_v42  ;;  %v737_v57 = vpack.c.bf16 %v629_v7, %v620_v10 }
  0xee   :  { %1460 = vmatprep.mubr.bf16.mxu0 %v2784_v38 }
  0xf4   :  { %1062 = vmatmul.mubr.bf16.gmra.mrb[40].mxu1 %v723_v1 }
  0xf5   :  { %2474 = vmatmul.mubr.msk.bf16.gmra.mrb[16].mxu0 %vm739_vm0, %v675_v44  ;;  %1071 = vmatprep.mubr.bf16.mxu1 %v733_v47 }
  0xf6   :  { %1470 = vmatprep.mubr.bf16.mxu0 %v2784_v38 }
  0xfc   :  { %1072 = vmatmul.mubr.bf16.gmra.mrb[44].mxu1 %v732_v13 }
  0xfd   :  { %2475 = vmatmul.mubr.msk.bf16.gmra.mrb[20].mxu0 %vm739_vm0, %v684_v16  ;;  %1327 = vmatprep.mubr.bf16.mxu1 %v692_v17 }
  0xfe   :  { %1480 = vmatprep.mubr.bf16.mxu0 %v2784_v38 }
 0x104   :  { %1328 = vmatmul.mubr.bf16.vlgmr.msra.gmra.mrb[48].mxu1 %v691_v27 }
 0x105   :  { %2476 = vmatmul.mubr.msk.bf16.gmra.mrb[48].mxu0 %vm739_vm0, %v693_v28  ;;  %1337 = vmatprep.mubr.bf16.mxu1 %v701_v29 }
 0x106   :  { %1490 = vmatprep.mubr.bf16.mxu0 %v2784_v38 }
 0x10c   :  { %1338 = vmatmul.mubr.bf16.gmra.mrb[52].mxu1 %v700_v19 }
 0x10d   :  { %2477 = vmatmul.mubr.msk.bf16.gmra.mrb[52].mxu0 %vm739_vm0, %v702_v31  ;;  %1347 = vmatprep.mubr.bf16.mxu1 %v710_v36 }
 0x10e   :  { %1500 = vmatprep.mubr.bf16.mxu0 %v2784_v38 }
 0x114   :  { %1348 = vmatmul.mubr.bf16.gmra.mrb[56].mxu1 %v709_v53 }
 0x115   :  { %2478 = vmatmul.mubr.msk.bf16.gmra.mrb[56].mxu0 %vm739_vm0, %v711_v37  ;;  %1357 = vmatprep.mubr.bf16.mxu1 %v719_v39 }
 0x116   :  { %1510 = vmatprep.mubr.bf16.mxu0 %v2784_v38 }
 0x11c   :  { %1358 = vmatmul.mubr.bf16.gmra.mrb[60].mxu1 %v718_v43 }
 0x11d   :  { %2479 = vmatmul.mubr.msk.bf16.gmra.mrb[60].mxu0 %vm739_vm0, %v720_v51  ;;  %1367 = vmatprep.mubr.bf16.mxu1 %v728_v54 }
 0x11e   :  { %1520 = vmatprep.mubr.bf16.mxu0 %v2784_v38 }
 0x124   :  { %1368 = vmatmul.mubr.bf16.gmra.mrb[64].mxu1 %v727_v22 }
 0x125   :  { %2480 = vmatmul.mubr.msk.bf16.gmra.mrb[64].mxu0 %vm739_vm0, %v729_v26  ;;  %1377 = vmatprep.mubr.bf16.mxu1 %v737_v57 }
 0x126   :  { %1530 = vmatprep.mubr.bf16.mxu0 %v2784_v38 }
 0x12c   :  { %1378 = vmatmul.mubr.bf16.gmra.mrb[68].mxu1 %v736_v63 }
 0x12d   :  { %2481 = vmatmul.mubr.msk.bf16.gmra.mrb[68].mxu0 %vm739_vm0, %v738_v0 }
 0x148   :  { %v1176_v1 = vpop.f32.mrb[24].mxu0 }
 0x149   :  { %v1178_v44 = vpop.f32.mrb[25].mxu0 }
 0x14a   :  { %v1180_v47 = vpop.f32.mrb[26].mxu0 }
 0x14b   :  { %v1182_v2 = vpop.f32.mrb[27].mxu0 }
 0x150   :  { %v4407_v4 = vpop.f32.mrb[28].mxu0 }
 0x151   :  { %v4409_v38 = vpop.f32.mrb[29].mxu0 }
 0x152   :  { %v4411_v6 = vpop.f32.mrb[30].mxu0 }
 0x153   :  { %v4413_v8 = vpop.f32.mrb[31].mxu0 }
 0x158   :  { %v4415_v11 = vpop.f32.mrb[32].mxu0 }
 0x159   :  { %v4417_v12 = vpop.f32.mrb[33].mxu0 }
 0x15a   :  { %v4419_v13 = vpop.f32.mrb[34].mxu0 }
 0x15b   :  { %v4421_v16 = vpop.f32.mrb[35].mxu0 }
 0x160   :  { %v4423_v17 = vpop.f32.mrb[36].mxu0 }
 0x161   :  { %v4425_v23 = vpop.f32.mrb[37].mxu0 }
 0x162   :  { %v4427_v21 = vpop.f32.mrb[38].mxu0 }
 0x163   :  { %v4429_v25 = vpop.f32.mrb[39].mxu0 }
 0x168   :  { %v4431_v48 = vpop.f32.mrb[40].mxu0 }
 0x169   :  { %v4433_v50 = vpop.f32.mrb[41].mxu0 }
 0x16a   :  { %v4435_v24 = vpop.f32.mrb[42].mxu0 }
 0x16b   :  { %v4437_v27 = vpop.f32.mrb[43].mxu0 }
 0x170   :  { %v4439_v28 = vpop.f32.mrb[44].mxu0 }
 0x171   :  { %v4441_v29 = vpop.f32.mrb[45].mxu0 }
 0x172   :  { %v4443_v30 = vpop.f32.mrb[46].mxu0 }
 0x173   :  { %v4445_v5 = vpop.f32.mrb[47].mxu0 }
 0x177   :  { %v963_v9 = vpop.f32.mrb[0].mxu1 }
 0x178   :  { %v965_v32 = vpop.f32.mrb[1].mxu1 }
 0x179   :  { %v967_v33 = vpop.f32.mrb[2].mxu1 }
 0x17a   :  { %v969_v34 = vpop.f32.mrb[3].mxu1 }
 0x17f   :  { %v973_v19 = vpop.f32.mrb[4].mxu1 }
 0x180   :  { %v975_v31 = vpop.f32.mrb[5].mxu1 }
 0x181   :  { %v977_v36 = vpop.f32.mrb[6].mxu1 }
 0x182   :  { %v4447_v35 = vpop.f32.mrb[7].mxu1 }
 0x187   :  { %v4449_v56 = vpop.f32.mrb[8].mxu1 }
 0x188   :  { %v4451_v59 = vpop.f32.mrb[9].mxu1 }
 0x189   :  { %v4453_v18 = vpop.f32.mrb[10].mxu1 }
 0x18a   :  { %v4455_v20 = vpop.f32.mrb[11].mxu1 }
 0x18f   :  { %v4457_v49 = vpop.f32.mrb[12].mxu1 }
 0x190   :  { %v4459_v53 = vpop.f32.mrb[13].mxu1 }
 0x191   :  { %v4461_v37 = vpop.f32.mrb[14].mxu1 }
 0x192   :  { %v4463_v39 = vpop.f32.mrb[15].mxu1 }
 0x197   :  { %v4465_v40 = vpop.f32.mrb[16].mxu1 }
 0x198   :  { %v4467_v45 = vpop.f32.mrb[17].mxu1 }
 0x199   :  { %v4469_v52 = vpop.f32.mrb[18].mxu1 }
 0x19a   :  { %v4471_v14 = vpop.f32.mrb[19].mxu1 }
 0x19f   :  { %v4473_v15 = vpop.f32.mrb[20].mxu1 }
 0x1a0   :  { %v4475_v41 = vpop.f32.mrb[21].mxu1 }
 0x1a1   :  { %v4477_v43 = vpop.f32.mrb[22].mxu1 }
 0x1a2   :  { %v4479_v51 = vpop.f32.mrb[23].mxu1 }
 0x1a7   :  { %v1023_v54 = vpop.f32.mrb[24].mxu1 }
 0x1a8   :  { %v4481_v55 = vadd.f32 %v1176_v1, %v1023_v54  ;;  %v1422_v3 = vpop.f32.mrb[0].mxu0  ;;  %v1025_v42 = vpop.f32.mrb[25].mxu1 }
 0x1a9   :  { %v4483_v46 = vadd.f32 %v1422_v3, %v963_v9  ;;  %v4485_v10 = vadd.f32 %v1178_v44, %v1025_v42  ;;  %v1424_v7 = vpop.f32.mrb[1].mxu0  ;;  %v1027_v22 = vpop.f32.mrb[26].mxu1 }
 0x1aa   :  { %v4487_v26 = vadd.f32 %v1424_v7, %v965_v32  ;;  %v4489_v57 = vadd.f32 %v1180_v47, %v1027_v22  ;;  %v1426_v58 = vpop.f32.mrb[2].mxu0  ;;  %v1029_v60 = vpop.f32.mrb[27].mxu1 }
 0x1ab   :  { %v4491_v61 = vadd.f32 %v1426_v58, %v967_v33  ;;  %v4493_v62 = vadd.f32 %v1182_v2, %v1029_v60  ;;  %v1428_v63 = vpop.f32.mrb[3].mxu0 }
 0x1ac   :  { %5243 = vst [vmem:[#allocation5_spill] sm:$0xff] %v4487_v26  ;;  %v4495_v0 = vadd.f32 %v1428_v63, %v969_v34  ;;  %v1542_v1 = vsel %vm1541_vm1, %v4487_v26, 0.0  ;;  %v1639_v32 = vmul.f32 %v4487_v26, %v4487_v26 }
 0x1ad   :  { %v1543_v44 = vadd.f32 %v4483_v46, %v1542_v1  ;;  %v1640_v33 = vmul.f32 %v4491_v61, %v4491_v61 }
 0x1ae   :  { %5244 = vst [vmem:[#allocation6_spill] sm:$0xff] %v4495_v0  ;;  %v1641_v9 = vmul.f32 %v4495_v0, %v4495_v0  ;;  %v1546_v47 = vsel %vm1541_vm1, %v4495_v0, 0.0  ;;  %v1686_v0 = vsel %vm1541_vm1, %v1639_v32, 0.0 }
 0x1af   :  { %1544 = vadd.xlane.f32.xlu0 %v1543_v44  ;;  %v1033_v2 = vpop.f32.mrb[28].mxu1  ;;  %v1547_v1 = vadd.f32 %v4491_v61, %v1546_v47  ;;  %v1638_v47 = vmul.f32 %v4483_v46, %v4483_v46 }
 0x1b0   :  { %v4509_v34 = vadd.f32 %v4407_v4, %v1033_v2  ;;  %v1432_v54 = vpop.f32.mrb[4].mxu0  ;;  %v1035_v3 = vpop.f32.mrb[29].mxu1  ;;  %v1690_v42 = vsel %vm1541_vm1, %v1641_v9, 0.0 }
 0x1b1   :  { %v4512_v7 = vadd.f32 %v1432_v54, %v973_v19  ;;  %v4515_v22 = vadd.f32 %v4409_v38, %v1035_v3  ;;  %v1434_v58 = vpop.f32.mrb[5].mxu0  ;;  %v1037_v60 = vpop.f32.mrb[30].mxu1  ;;  %v1691_v63 = vadd.f32 %v1690_v42, %v1640_v33 }
 0x1b2   :  { %v4518_v44 = vadd.f32 %v1434_v58, %v975_v31  ;;  %v4521_v26 = vadd.f32 %v4411_v6, %v1037_v60  ;;  %v1436_v4 = vpop.f32.mrb[6].mxu0  ;;  %v1039_v2 = vpop.f32.mrb[31].mxu1 }
 0x1b3   :  { %v4524_v9 = vadd.f32 %v1436_v4, %v977_v36  ;;  %v1438_v19 = vpop.f32.mrb[7].mxu0  ;;  %1692 = vadd.xlane.f32.xlu1 %v1691_v63  ;;  %1548 = vadd.xlane.f32.xlu0 %v1547_v1  ;;  %v4527_v38 = vadd.f32 %v4413_v8, %v1039_v2  ;;  %v1687_v36 = vadd.f32 %v1686_v0, %v1638_v47 }
 0x1b4   :  { %v4532_v31 = vadd.f32 %v1438_v19, %v4447_v35  ;;  %v1550_v6 = vsel %vm1541_vm1, %v4518_v44, 0.0  ;;  %v1643_v32 = vmul.f32 %v4518_v44, %v4518_v44  ;;  %v1642_v42 = vmul.f32 %v4512_v7, %v4512_v7 }
 0x1b5   :  { %v1551_v33 = vadd.f32 %v4512_v7, %v1550_v6 }
 0x1b6   :  { %v1694_v54 = vsel %vm1541_vm1, %v1643_v32, 0.0  ;;  %v1554_v8 = vsel %vm1541_vm1, %v4532_v31, 0.0  ;;  %v1645_v3 = vmul.f32 %v4532_v31, %v4532_v31 }
 0x1b7   :  { %1688 = vadd.xlane.f32.xlu0 %v1687_v36  ;;  %1552 = vadd.xlane.f32.xlu1 %v1551_v33  ;;  %v1043_v35 = vpop.f32.mrb[32].mxu1  ;;  %v1695_v19 = vadd.f32 %v1694_v54, %v1642_v42  ;;  %v1555_v47 = vadd.f32 %v4524_v9, %v1554_v8 }
 0x1b8   :  { %v4547_v58 = vadd.f32 %v4415_v11, %v1043_v35  ;;  %v1442_v0 = vpop.f32.mrb[8].mxu0  ;;  %v1045_v60 = vpop.f32.mrb[33].mxu1  ;;  %v1698_v33 = vsel %vm1541_vm1, %v1645_v3, 0.0 }
 0x1b9   :  { %v4550_v63 = vadd.f32 %v1442_v0, %v4449_v56  ;;  %v4553_v1 = vadd.f32 %v4417_v12, %v1045_v60  ;;  %v1444_v4 = vpop.f32.mrb[9].mxu0  ;;  %v1047_v2 = vpop.f32.mrb[34].mxu1 }
 0x1ba   :  { %v4557_v6 = vadd.f32 %v1444_v4, %v4451_v59  ;;  %v4560_v32 = vadd.f32 %v4419_v13, %v1047_v2  ;;  %v1446_v11 = vpop.f32.mrb[10].mxu0  ;;  %v1049_v36 = vpop.f32.mrb[35].mxu1  ;;  %v1644_v59 = vmul.f32 %v4524_v9, %v4524_v9 }
 0x1bb   :  { %v4564_v56 = vadd.f32 %v1446_v11, %v4453_v18  ;;  %v1448_v12 = vpop.f32.mrb[11].mxu0  ;;  %1696 = vadd.xlane.f32.xlu0 %v1695_v19  ;;  %1556 = vadd.xlane.f32.xlu1 %v1555_v47  ;;  %v4567_v54 = vadd.f32 %v4421_v16, %v1049_v36  ;;  %v1646_v60 = vmul.f32 %v4550_v63, %v4550_v63 }
 0x1bc   :  { %v4572_v8 = vadd.f32 %v1448_v12, %v4455_v20  ;;  %v1558_v13 = vsel %vm1541_vm1, %v4557_v6, 0.0  ;;  %v1647_v3 = vmul.f32 %v4557_v6, %v4557_v6  ;;  %v1699_v18 = vadd.f32 %v1698_v33, %v1644_v59 }
 0x1bd   :  { %v1559_v35 = vadd.f32 %v4550_v63, %v1558_v13 }
 0x1be   :  { %v1702_v42 = vsel %vm1541_vm1, %v1647_v3, 0.0  ;;  %v1562_v16 = vsel %vm1541_vm1, %v4572_v8, 0.0  ;;  %v1649_v0 = vmul.f32 %v4572_v8, %v4572_v8 }
 0x1bf   :  { %1700 = vadd.xlane.f32.xlu1 %v1699_v18  ;;  %1560 = vadd.xlane.f32.xlu0 %v1559_v35  ;;  %v1053_v20 = vpop.f32.mrb[36].mxu1  ;;  %v1703_v12 = vadd.f32 %v1702_v42, %v1646_v60  ;;  %v1563_v59 = vadd.f32 %v4564_v56, %v1562_v16 }
 0x1c0   :  { %v4587_v4 = vadd.f32 %v4423_v17, %v1053_v20  ;;  %v1452_v2 = vpop.f32.mrb[12].mxu0  ;;  %v1055_v19 = vpop.f32.mrb[37].mxu1  ;;  %v1706_v35 = vsel %vm1541_vm1, %v1649_v0, 0.0 }
 0x1c1   :  { %v4590_v47 = vadd.f32 %v1452_v2, %v4457_v49  ;;  %v4593_v11 = vadd.f32 %v4425_v23, %v1055_v19  ;;  %v1454_v36 = vpop.f32.mrb[13].mxu0  ;;  %v1057_v33 = vpop.f32.mrb[38].mxu1 }
 0x1c2   :  { %v4597_v13 = vadd.f32 %v1454_v36, %v4459_v53  ;;  %v4600_v3 = vadd.f32 %v4427_v21, %v1057_v33  ;;  %v1456_v17 = vpop.f32.mrb[14].mxu0  ;;  %v1059_v18 = vpop.f32.mrb[39].mxu1  ;;  %v1648_v53 = vmul.f32 %v4564_v56, %v4564_v56 }
 0x1c3   :  { %v4604_v49 = vadd.f32 %v1456_v17, %v4461_v37  ;;  %v1458_v23 = vpop.f32.mrb[15].mxu0  ;;  %1704 = vadd.xlane.f32.xlu0 %v1703_v12  ;;  %1564 = vadd.xlane.f32.xlu1 %v1563_v59  ;;  %v4607_v42 = vadd.f32 %v4429_v25, %v1059_v18  ;;  %v1650_v19 = vmul.f32 %v4590_v47, %v4590_v47 }
 0x1c4   :  { %v4612_v16 = vadd.f32 %v1458_v23, %v4463_v39  ;;  %v1566_v21 = vsel %vm1541_vm1, %v4597_v13, 0.0  ;;  %v1651_v0 = vmul.f32 %v4597_v13, %v4597_v13  ;;  %v1707_v37 = vadd.f32 %v1706_v35, %v1648_v53 }
 0x1c5   :  { %v1567_v20 = vadd.f32 %v4590_v47, %v1566_v21 }
 0x1c6   :  { %v1710_v60 = vsel %vm1541_vm1, %v1651_v0, 0.0  ;;  %v1570_v25 = vsel %vm1541_vm1, %v4612_v16, 0.0  ;;  %v1653_v2 = vmul.f32 %v4612_v16, %v4612_v16 }
 0x1c7   :  { %1708 = vadd.xlane.f32.xlu1 %v1707_v37  ;;  %1568 = vadd.xlane.f32.xlu0 %v1567_v20  ;;  %v1063_v39 = vpop.f32.mrb[40].mxu1  ;;  %v1711_v23 = vadd.f32 %v1710_v60, %v1650_v19  ;;  %v1571_v53 = vadd.f32 %v4604_v49, %v1570_v25 }
 0x1c8   :  { %v4627_v36 = vadd.f32 %v4431_v48, %v1063_v39  ;;  %v1462_v33 = vpop.f32.mrb[16].mxu0  ;;  %v1065_v12 = vpop.f32.mrb[41].mxu1  ;;  %v1714_v20 = vsel %vm1541_vm1, %v1653_v2, 0.0 }
 0x1c9   :  { %v4630_v59 = vadd.f32 %v1462_v33, %v4465_v40  ;;  %v4633_v17 = vadd.f32 %v4433_v50, %v1065_v12  ;;  %v1464_v18 = vpop.f32.mrb[17].mxu0  ;;  %v1067_v35 = vpop.f32.mrb[42].mxu1 }
 0x1ca   :  { %v4637_v21 = vadd.f32 %v1464_v18, %v4467_v45  ;;  %v4640_v0 = vadd.f32 %v4435_v24, %v1067_v35  ;;  %v1466_v48 = vpop.f32.mrb[18].mxu0  ;;  %v1069_v37 = vpop.f32.mrb[43].mxu1  ;;  %v1652_v45 = vmul.f32 %v4604_v49, %v4604_v49 }
 0x1cb   :  { %v4644_v40 = vadd.f32 %v1466_v48, %v4469_v52  ;;  %v1468_v50 = vpop.f32.mrb[19].mxu0  ;;  %1712 = vadd.xlane.f32.xlu0 %v1711_v23  ;;  %1572 = vadd.xlane.f32.xlu1 %v1571_v53  ;;  %v4647_v60 = vadd.f32 %v4437_v27, %v1069_v37  ;;  %v1654_v12 = vmul.f32 %v4630_v59, %v4630_v59 }
 0x1cc   :  { %v4652_v25 = vadd.f32 %v1468_v50, %v4471_v14  ;;  %v1574_v24 = vsel %vm1541_vm1, %v4637_v21, 0.0  ;;  %v1655_v2 = vmul.f32 %v4637_v21, %v4637_v21  ;;  %v1715_v52 = vadd.f32 %v1714_v20, %v1652_v45 }
 0x1cd   :  { %v1575_v39 = vadd.f32 %v4630_v59, %v1574_v24 }
 0x1ce   :  { %v1718_v19 = vsel %vm1541_vm1, %v1655_v2, 0.0  ;;  %v1578_v27 = vsel %vm1541_vm1, %v4652_v25, 0.0  ;;  %v1657_v33 = vmul.f32 %v4652_v25, %v4652_v25 }
 0x1cf   :  { %1716 = vadd.xlane.f32.xlu1 %v1715_v52  ;;  %1576 = vadd.xlane.f32.xlu0 %v1575_v39  ;;  %v1073_v14 = vpop.f32.mrb[44].mxu1  ;;  %v1719_v50 = vadd.f32 %v1718_v19, %v1654_v12  ;;  %v1579_v45 = vadd.f32 %v4644_v40, %v1578_v27 }
 0x1d0   :  { %v4667_v18 = vadd.f32 %v4439_v28, %v1073_v14  ;;  %v1472_v35 = vpop.f32.mrb[20].mxu0  ;;  %v1075_v23 = vpop.f32.mrb[45].mxu1  ;;  %v1722_v39 = vsel %vm1541_vm1, %v1657_v33, 0.0 }
 0x1d1   :  { %v4670_v53 = vadd.f32 %v1472_v35, %v4473_v15  ;;  %v4673_v48 = vadd.f32 %v4441_v29, %v1075_v23  ;;  %v1474_v37 = vpop.f32.mrb[21].mxu0  ;;  %v1077_v20 = vpop.f32.mrb[46].mxu1 }
 0x1d2   :  { %v4677_v24 = vadd.f32 %v1474_v37, %v4475_v41  ;;  %v4680_v2 = vadd.f32 %v4443_v30, %v1077_v20  ;;  %v1476_v28 = vpop.f32.mrb[22].mxu0  ;;  %v1079_v52 = vpop.f32.mrb[47].mxu1  ;;  %v1656_v41 = vmul.f32 %v4644_v40, %v4644_v40 }
 0x1d3   :  { %v4684_v15 = vadd.f32 %v1476_v28, %v4477_v43  ;;  %v1478_v29 = vpop.f32.mrb[23].mxu0  ;;  %1720 = vadd.xlane.f32.xlu0 %v1719_v50  ;;  %1580 = vadd.xlane.f32.xlu1 %v1579_v45  ;;  %v4687_v19 = vadd.f32 %v4445_v5, %v1079_v52  ;;  %v1658_v23 = vmul.f32 %v4670_v53, %v4670_v53 }
 0x1d4   :  { %5245 = vst [vmem:[#allocation7_spill] sm:$0xff] %v4677_v24  ;;  %v4692_v27 = vadd.f32 %v1478_v29, %v4479_v51  ;;  %v1582_v30 = vsel %vm1541_vm1, %v4677_v24, 0.0  ;;  %v1659_v33 = vmul.f32 %v4677_v24, %v4677_v24  ;;  %v1723_v43 = vadd.f32 %v1722_v39, %v1656_v41 }
 0x1d5   :  { %v1583_v14 = vadd.f32 %v4670_v53, %v1582_v30 }
 0x1d6   :  { %v1726_v12 = vsel %vm1541_vm1, %v1659_v33, 0.0  ;;  %v1586_v5 = vsel %vm1541_vm1, %v4692_v27, 0.0  ;;  %v1661_v35 = vmul.f32 %v4692_v27, %v4692_v27 }
 0x1d7   :  { %1724 = vadd.xlane.f32.xlu1 %v1723_v43  ;;  %1584 = vadd.xlane.f32.xlu0 %v1583_v14  ;;  %v1329_v51 = vpop.f32.mrb[48].mxu1  ;;  %v1727_v39 = vadd.f32 %v1726_v12, %v1658_v23  ;;  %v1587_v29 = vadd.f32 %v4684_v15, %v1586_v5  ;;  %v1660_v12 = vmul.f32 %v4684_v15, %v4684_v15 }
 0x1d8   :  { %v2539_v37 = vadd.f32 %v4481_v55, %v1329_v51  ;;  %v1331_v20 = vpop.f32.mrb[49].mxu1  ;;  %v1482_v50 = vpop.f32.mrb[48].mxu0  ;;  %v1730_v14 = vsel %vm1541_vm1, %v1661_v35, 0.0 }
 0x1d9   :  { %v2542_v45 = vadd.f32 %v4485_v10, %v1331_v20  ;;  %v1333_v28 = vpop.f32.mrb[50].mxu1  ;;  %v1484_v52 = vpop.f32.mrb[49].mxu0 }
 0x1da   :  { %v2545_v41 = vadd.f32 %v4489_v57, %v1333_v28  ;;  %v4710_v30 = vadd.f32 %v2539_v37, %v1482_v50  ;;  %v1335_v33 = vpop.f32.mrb[51].mxu1  ;;  %v1486_v43 = vpop.f32.mrb[50].mxu0  ;;  %v1731_v57 = vadd.f32 %v1730_v14, %v1660_v12 }
 0x1db   :  { %v4713_v24 = vadd.f32 %v2542_v45, %v1484_v52  ;;  %1728 = vadd.xlane.f32.xlu0 %v1727_v39  ;;  %1588 = vadd.xlane.f32.xlu1 %v1587_v29  ;;  %v2548_v55 = vadd.f32 %v4493_v62, %v1335_v33  ;;  %v1488_v10 = vpop.f32.mrb[51].mxu0 }
 0x1dc   :  { %v4718_v51 = vadd.f32 %v2545_v41, %v1486_v43  ;;  %v1662_v41 = vmul.f32 %v4710_v30, %v4710_v30 }
 0x1dd   :  { %v4720_v5 = vadd.f32 %v2548_v55, %v1488_v10  ;;  %v1590_v23 = vsel %vm1541_vm1, %v4713_v24, 0.0  ;;  %v1663_v35 = vmul.f32 %v4713_v24, %v4713_v24 }
 0x1de   :  { %v1591_v37 = vadd.f32 %v4710_v30, %v1590_v23 }
 0x1df   :  { %1732 = vadd.xlane.f32.xlu1 %v1731_v57  ;;  %v1339_v20 = vpop.f32.mrb[52].mxu1  ;;  %v1594_v62 = vsel %vm1541_vm1, %v4720_v5, 0.0  ;;  %v1734_v50 = vsel %vm1541_vm1, %v1663_v35, 0.0  ;;  %v1665_v45 = vmul.f32 %v4720_v5, %v4720_v5 }
 0x1e0   :  { %v2551_v28 = vadd.f32 %v4509_v34, %v1339_v20  ;;  %1592 = vadd.xlane.f32.xlu0 %v1591_v37  ;;  %v1341_v52 = vpop.f32.mrb[53].mxu1  ;;  %v1492_v39 = vpop.f32.mrb[52].mxu0  ;;  %v1595_v29 = vadd.f32 %v4718_v51, %v1594_v62  ;;  %v1735_v23 = vadd.f32 %v1734_v50, %v1662_v41 }
 0x1e1   :  { %v2554_v33 = vadd.f32 %v4515_v22, %v1341_v52  ;;  %v1343_v43 = vpop.f32.mrb[54].mxu1  ;;  %v1494_v14 = vpop.f32.mrb[53].mxu0  ;;  %v1738_v34 = vsel %vm1541_vm1, %v1665_v45, 0.0  ;;  %v1664_v22 = vmul.f32 %v4718_v51, %v4718_v51 }
 0x1e2   :  { %v2557_v55 = vadd.f32 %v4521_v26, %v1343_v43  ;;  %v4738_v10 = vadd.f32 %v2551_v28, %v1492_v39  ;;  %v1345_v12 = vpop.f32.mrb[55].mxu1  ;;  %v1496_v57 = vpop.f32.mrb[54].mxu0 }
 0x1e3   :  { %v4741_v35 = vadd.f32 %v2554_v33, %v1494_v14  ;;  %1596 = vadd.xlane.f32.xlu1 %v1595_v29  ;;  %v2560_v37 = vadd.f32 %v4527_v38, %v1345_v12  ;;  %v1498_v20 = vpop.f32.mrb[55].mxu0  ;;  %v1739_v28 = vadd.f32 %v1738_v34, %v1664_v22 }
 0x1e4   :  { %v4746_v62 = vadd.f32 %v2557_v55, %v1496_v57  ;;  %1736 = vadd.xlane.f32.xlu0 %v1735_v23  ;;  %v1666_v12 = vmul.f32 %v4738_v10, %v4738_v10 }
 0x1e5   :  { %v4748_v26 = vadd.f32 %v2560_v37, %v1498_v20  ;;  %v1598_v50 = vsel %vm1541_vm1, %v4741_v35, 0.0  ;;  %v1667_v45 = vmul.f32 %v4741_v35, %v4741_v35 }
 0x1e6   :  { %v1599_v52 = vadd.f32 %v4738_v10, %v1598_v50 }
 0x1e7   :  { %1740 = vadd.xlane.f32.xlu1 %v1739_v28  ;;  %v1349_v38 = vpop.f32.mrb[56].mxu1  ;;  %v1602_v39 = vsel %vm1541_vm1, %v4748_v26, 0.0  ;;  %v1742_v29 = vsel %vm1541_vm1, %v1667_v45, 0.0  ;;  %v1669_v41 = vmul.f32 %v4748_v26, %v4748_v26 }
 0x1e8   :  { %v2563_v33 = vadd.f32 %v4547_v58, %v1349_v38  ;;  %1600 = vadd.xlane.f32.xlu0 %v1599_v52  ;;  %v1351_v43 = vpop.f32.mrb[57].mxu1  ;;  %v1502_v14 = vpop.f32.mrb[56].mxu0  ;;  %v1603_v55 = vadd.f32 %v4746_v62, %v1602_v39  ;;  %v1743_v50 = vadd.f32 %v1742_v29, %v1666_v12 }
 0x1e9   :  { %v2566_v57 = vadd.f32 %v4553_v1, %v1351_v43  ;;  %v1353_v23 = vpop.f32.mrb[58].mxu1  ;;  %v1504_v34 = vpop.f32.mrb[57].mxu0  ;;  %v1746_v58 = vsel %vm1541_vm1, %v1669_v41, 0.0  ;;  %v1668_v1 = vmul.f32 %v4746_v62, %v4746_v62 }
 0x1ea   :  { %v2569_v37 = vadd.f32 %v4560_v32, %v1353_v23  ;;  %v4766_v20 = vadd.f32 %v2563_v33, %v1502_v14  ;;  %v1355_v22 = vpop.f32.mrb[59].mxu1  ;;  %v1506_v28 = vpop.f32.mrb[58].mxu0 }
 0x1eb   :  { %v4769_v45 = vadd.f32 %v2566_v57, %v1504_v34  ;;  %1604 = vadd.xlane.f32.xlu1 %v1603_v55  ;;  %v2572_v52 = vadd.f32 %v4567_v54, %v1355_v22  ;;  %v1508_v38 = vpop.f32.mrb[59].mxu0  ;;  %v1747_v33 = vadd.f32 %v1746_v58, %v1668_v1 }
 0x1ec   :  { %5246 = vst [vmem:[#allocation8_spill] sm:$0xff] %v4766_v20  ;;  %v4774_v39 = vadd.f32 %v2569_v37, %v1506_v28  ;;  %1744 = vadd.xlane.f32.xlu0 %v1743_v50  ;;  %v1670_v22 = vmul.f32 %v4766_v20, %v4766_v20 }
 0x1ed   :  { %5247 = vst [vmem:[#allocation9_spill] sm:$0xff] %v4769_v45  ;;  %v4776_v32 = vadd.f32 %v2572_v52, %v1508_v38  ;;  %v1606_v29 = vsel %vm1541_vm1, %v4769_v45, 0.0  ;;  %v1671_v41 = vmul.f32 %v4769_v45, %v4769_v45 }
 0x1ee   :  { %v1607_v43 = vadd.f32 %v4766_v20, %v1606_v29  ;;  %v2007_v20 = vld [vmem:[%s5224_s3 + $0x48] sm:$0xff] }
 0x1ef   :  { %1748 = vadd.xlane.f32.xlu1 %v1747_v33  ;;  %v1359_v54 = vpop.f32.mrb[60].mxu1  ;;  %v1610_v14 = vsel %vm1541_vm1, %v4776_v32, 0.0  ;;  %v1750_v55 = vsel %vm1541_vm1, %v1671_v41, 0.0  ;;  %v1673_v12 = vmul.f32 %v4776_v32, %v4776_v32 }
 0x1f0   :  { %v2575_v57 = vadd.f32 %v4587_v4, %v1359_v54  ;;  %1608 = vadd.xlane.f32.xlu0 %v1607_v43  ;;  %v1361_v23 = vpop.f32.mrb[61].mxu1  ;;  %v1512_v34 = vpop.f32.mrb[60].mxu0  ;;  %v1611_v37 = vadd.f32 %v4774_v39, %v1610_v14  ;;  %v1751_v29 = vadd.f32 %v1750_v55, %v1670_v22 }
 0x1f1   :  { %v2578_v28 = vadd.f32 %v4593_v11, %v1361_v23  ;;  %v1363_v50 = vpop.f32.mrb[62].mxu1  ;;  %v1514_v58 = vpop.f32.mrb[61].mxu0  ;;  %v1754_v4 = vsel %vm1541_vm1, %v1673_v12, 0.0  ;;  %v1672_v11 = vmul.f32 %v4774_v39, %v4774_v39 }
 0x1f2   :  { %v2581_v52 = vadd.f32 %v4600_v3, %v1363_v50  ;;  %v4794_v38 = vadd.f32 %v2575_v57, %v1512_v34  ;;  %v1365_v1 = vpop.f32.mrb[63].mxu1  ;;  %v1516_v33 = vpop.f32.mrb[62].mxu0 }
 0x1f3   :  { %v4797_v41 = vadd.f32 %v2578_v28, %v1514_v58  ;;  %1612 = vadd.xlane.f32.xlu1 %v1611_v37  ;;  %v2584_v43 = vadd.f32 %v4607_v42, %v1365_v1  ;;  %v1518_v54 = vpop.f32.mrb[63].mxu0  ;;  %v1755_v57 = vadd.f32 %v1754_v4, %v1672_v11 }
 0x1f4   :  { %5248 = vst [vmem:[#allocation10_spill] sm:$0xff] %v4794_v38  ;;  %v4802_v14 = vadd.f32 %v2581_v52, %v1516_v33  ;;  %1752 = vadd.xlane.f32.xlu0 %v1751_v29  ;;  %v1674_v1 = vmul.f32 %v4794_v38, %v4794_v38 }
 0x1f5   :  { %5249 = vst [vmem:[#allocation11_spill] sm:$0xff] %v4797_v41  ;;  %v4804_v3 = vadd.f32 %v2584_v43, %v1518_v54  ;;  %v1614_v55 = vsel %vm1541_vm1, %v4797_v41, 0.0  ;;  %v1675_v12 = vmul.f32 %v4797_v41, %v4797_v41 }
 0x1f6   :  { %5250 = vst [vmem:[#allocation12_spill] sm:$0xff] %v4802_v14  ;;  %v1615_v23 = vadd.f32 %v4794_v38, %v1614_v55 }
 0x1f7   :  { %5251 = vst [vmem:[#allocation13_spill] sm:$0xff] %v4804_v3  ;;  %1756 = vadd.xlane.f32.xlu1 %v1755_v57  ;;  %v1369_v42 = vpop.f32.mrb[64].mxu1  ;;  %v1618_v34 = vsel %vm1541_vm1, %v4804_v3, 0.0  ;;  %v1758_v37 = vsel %vm1541_vm1, %v1675_v12, 0.0  ;;  %v1677_v22 = vmul.f32 %v4804_v3, %v4804_v3 }
 0x1f8   :  { %v2587_v28 = vadd.f32 %v4627_v36, %v1369_v42  ;;  %1616 = vadd.xlane.f32.xlu0 %v1615_v23  ;;  %v1371_v50 = vpop.f32.mrb[65].mxu1  ;;  %v1522_v58 = vpop.f32.mrb[64].mxu0  ;;  %v1619_v52 = vadd.f32 %v4802_v14, %v1618_v34  ;;  %v1759_v55 = vadd.f32 %v1758_v37, %v1674_v1 }
 0x1f9   :  { %v2590_v33 = vadd.f32 %v4633_v17, %v1371_v50  ;;  %v1373_v29 = vpop.f32.mrb[66].mxu1  ;;  %v1524_v4 = vpop.f32.mrb[65].mxu0  ;;  %v1762_v36 = vsel %vm1541_vm1, %v1677_v22, 0.0  ;;  %v1676_v17 = vmul.f32 %v4802_v14, %v4802_v14  ;;  %v2009_v14 = vld [vmem:[%s5224_s3 + $0x58] sm:$0xff] }
 0x1fa   :  { %v2593_v43 = vadd.f32 %v4640_v0, %v1373_v29  ;;  %v4822_v54 = vadd.f32 %v2587_v28, %v1522_v58  ;;  %v1375_v11 = vpop.f32.mrb[67].mxu1  ;;  %v1526_v57 = vpop.f32.mrb[66].mxu0 }
 0x1fb   :  { %v4825_v12 = vadd.f32 %v2590_v33, %v1524_v4  ;;  %1620 = vadd.xlane.f32.xlu1 %v1619_v52  ;;  %v2596_v23 = vadd.f32 %v4647_v60, %v1375_v11  ;;  %v1528_v42 = vpop.f32.mrb[67].mxu0  ;;  %v1763_v28 = vadd.f32 %v1762_v36, %v1676_v17 }
 0x1fc   :  { %5252 = vst [vmem:[#allocation14_spill] sm:$0xff] %v4822_v54  ;;  %v4830_v34 = vadd.f32 %v2593_v43, %v1526_v57  ;;  %1760 = vadd.xlane.f32.xlu0 %v1759_v55  ;;  %v1678_v11 = vmul.f32 %v4822_v54, %v4822_v54 }
 0x1fd   :  { %5253 = vst [vmem:[#allocation15_spill] sm:$0xff] %v4825_v12  ;;  %v4832_v0 = vadd.f32 %v2596_v23, %v1528_v42  ;;  %v1622_v37 = vsel %vm1541_vm1, %v4825_v12, 0.0  ;;  %v1679_v22 = vmul.f32 %v4825_v12, %v4825_v12 }
 0x1fe   :  { %5254 = vst [vmem:[#allocation16_spill] sm:$0xff] %v4830_v34  ;;  %v1623_v50 = vadd.f32 %v4822_v54, %v1622_v37 }
 0x1ff   :  { %5255 = vst [vmem:[#allocation17_spill] sm:$0xff] %v4832_v0  ;;  %1764 = vadd.xlane.f32.xlu1 %v1763_v28  ;;  %v1379_v60 = vpop.f32.mrb[68].mxu1  ;;  %v1626_v58 = vsel %vm1541_vm1, %v4832_v0, 0.0  ;;  %v1766_v52 = vsel %vm1541_vm1, %v1679_v22, 0.0  ;;  %v1681_v1 = vmul.f32 %v4832_v0, %v4832_v0  ;;  %v2001_v0 = vld [vmem:[%s5224_s3 + $0x18] sm:$0xff] }
 0x200   :  { %v2599_v33 = vadd.f32 %v4667_v18, %v1379_v60  ;;  %1624 = vadd.xlane.f32.xlu0 %v1623_v50  ;;  %v1381_v29 = vpop.f32.mrb[69].mxu1  ;;  %v1532_v4 = vpop.f32.mrb[68].mxu0  ;;  %v1627_v43 = vadd.f32 %v4830_v34, %v1626_v58  ;;  %v1767_v37 = vadd.f32 %v1766_v52, %v1678_v11 }
 0x201   :  { %v2602_v57 = vadd.f32 %v4673_v48, %v1381_v29  ;;  %v1383_v55 = vpop.f32.mrb[70].mxu1  ;;  %v1534_v36 = vpop.f32.mrb[69].mxu0  ;;  %v1770_v18 = vsel %vm1541_vm1, %v1681_v1, 0.0  ;;  %v1680_v48 = vmul.f32 %v4830_v34, %v4830_v34 }
 0x202   :  { %v2605_v23 = vadd.f32 %v4680_v2, %v1383_v55  ;;  %v4850_v42 = vadd.f32 %v2599_v33, %v1532_v4  ;;  %v1385_v17 = vpop.f32.mrb[71].mxu1  ;;  %v1536_v28 = vpop.f32.mrb[70].mxu0 }
 0x203   :  { %v4853_v22 = vadd.f32 %v2602_v57, %v1534_v36  ;;  %1628 = vadd.xlane.f32.xlu1 %v1627_v43  ;;  %v2608_v50 = vadd.f32 %v4687_v19, %v1385_v17  ;;  %v1538_v60 = vpop.f32.mrb[71].mxu0  ;;  %v1771_v33 = vadd.f32 %v1770_v18, %v1680_v48 }
 0x204   :  { %5256 = vst [vmem:[#allocation18_spill] sm:$0xff] %v4850_v42  ;;  %v4858_v58 = vadd.f32 %v2605_v23, %v1536_v28  ;;  %1768 = vadd.xlane.f32.xlu0 %v1767_v37  ;;  %v1682_v57 = vmul.f32 %v4850_v42, %v4850_v42 }
 0x205   :  { %5257 = vst [vmem:[#allocation19_spill] sm:$0xff] %v4853_v22  ;;  %v4860_v2 = vadd.f32 %v2608_v50, %v1538_v60  ;;  %v1630_v52 = vsel %vm1541_vm1, %v4853_v22, 0.0  ;;  %v1683_v1 = vmul.f32 %v4853_v22, %v4853_v22 }
 0x206   :  { %5258 = vst [vmem:[#allocation20_spill] sm:$0xff] %v4858_v58  ;;  %v1631_v29 = vadd.f32 %v4850_v42, %v1630_v52  ;;  %v1684_v23 = vmul.f32 %v4858_v58, %v4858_v58 }
 0x207   :  { %5259 = vst [vmem:[#allocation21_spill] sm:$0xff] %v4860_v2  ;;  %1772 = vadd.xlane.f32.xlu1 %v1771_v33  ;;  %v1634_v19 = vsel %vm1541_vm1, %v4860_v2, 0.0  ;;  %v1774_v4 = vsel %vm1541_vm1, %v1683_v1, 0.0  ;;  %v1685_v43 = vmul.f32 %v4860_v2, %v4860_v2 }
 0x208   :  { %1632 = vadd.xlane.f32.xlu0 %v1631_v29  ;;  %v1635_v11 = vadd.f32 %v4858_v58, %v1634_v19  ;;  %v1775_v55 = vadd.f32 %v1774_v4, %v1682_v57 }
 0x209   :  { %v1778_v36 = vsel %vm1541_vm1, %v1685_v43, 0.0 }
 0x20a   :  { %v1779_v17 = vadd.f32 %v1778_v36, %v1684_v23 }
 0x20b   :  { %1636 = vadd.xlane.f32.xlu1 %v1635_v11 }
 0x20c   :  { %1776 = vadd.xlane.f32.xlu0 %v1775_v55 }
 0x20f   :  { %1780 = vadd.xlane.f32.xlu1 %v1779_v17 }
 0x23c   :  { %v1545_v28 = vpop.xlane.xlu0 %1544 }
 0x23d   :  { %v4878_v50 = vmul.f32 0.0051020407, %v1545_v28 }
 0x23f   :  { %v1830_v29 = vmul.f32 %v4878_v50, %v4878_v50 }
 0x240   :  { %v1693_v37 = vpop.xlane.xlu1 %1692  ;;  %v1549_v18 = vpop.xlane.xlu0 %1548 }
 0x241   :  { %v1783_v60 = vmul.f32 0.0051020407, %v1549_v18  ;;  %v1807_v48 = vmul.f32 0.0051020407, %v1693_v37 }
 0x243   :  { %v1831_v33 = vmul.f32 %v1783_v60, %v1783_v60 }
 0x244   :  { %v1689_v52 = vpop.xlane.xlu0 %1688  ;;  %v1553_v1 = vpop.xlane.xlu1 %1552 }
 0x245   :  { %v1855_v19 = vsub.f32 %v1807_v48, %v1831_v33  ;;  %v1806_v4 = vmul.f32 0.0051020407, %v1689_v52  ;;  %v4882_v43 = vmul.f32 0.0051020407, %v1553_v1 }
 0x247   :  { %v1879_v11 = vmax.f32 %v1855_v19, 0.0  ;;  %v1854_v57 = vsub.f32 %v1806_v4, %v1830_v29  ;;  %v1832_v28 = vmul.f32 %v4882_v43, %v4882_v43 }
 0x248   :  { %v1697_v55 = vpop.xlane.xlu0 %1696  ;;  %v1557_v36 = vpop.xlane.xlu1 %1556 }
 0x249   :  { %v1903_v23 = vadd.f32 1e-05, %v1879_v11  ;;  %v1878_v17 = vmax.f32 %v1854_v57, 0.0  ;;  %v1808_v37 = vmul.f32 0.0051020407, %v1697_v55 }
 0x24a   :  { %v4886_v18 = vmul.f32 0.0051020407, %v1557_v36 }
 0x24b   :  { %2712 = vrsqrt.f32 %v1903_v23  ;;  %v1902_v22 = vadd.f32 1e-05, %v1878_v17  ;;  %v1856_v42 = vsub.f32 %v1808_v37, %v1832_v28  ;;  %v1951_v28 = vld [vmem:[%s5223_s2 + $0x8] sm:$0xff] }
 0x24c   :  { %v1833_v48 = vmul.f32 %v4886_v18, %v4886_v18  ;;  %v1701_v33 = vpop.xlane.xlu1 %1700  ;;  %v1561_v52 = vpop.xlane.xlu0 %1560 }
 0x24d   :  { %2714 = vrsqrt.f32 %v1902_v22  ;;  %v1880_v1 = vmax.f32 %v1856_v42, 0.0  ;;  %v1809_v29 = vmul.f32 0.0051020407, %v1701_v33  ;;  %v4890_v19 = vmul.f32 0.0051020407, %v1561_v52 }
 0x24f   :  { %v1904_v4 = vadd.f32 1e-05, %v1880_v1  ;;  %v1857_v11 = vsub.f32 %v1809_v29, %v1833_v48  ;;  %v1834_v36 = vmul.f32 %v4890_v19, %v4890_v19 }
 0x250   :  { %v1705_v57 = vpop.xlane.xlu0 %1704  ;;  %v1565_v12 = vpop.xlane.xlu1 %1564 }
 0x251   :  { %v1881_v55 = vmax.f32 %v1857_v11, 0.0  ;;  %v1810_v23 = vmul.f32 0.0051020407, %v1705_v57  ;;  %v4894_v17 = vmul.f32 0.0051020407, %v1565_v12  ;;  %2716 = vrsqrt.f32 %v1904_v4  ;;  %v1950_v12 = vld [vmem:[%s5223_s2] sm:$0xff] }
 0x253   :  { %v1905_v42 = vadd.f32 1e-05, %v1881_v55  ;;  %v1858_v22 = vsub.f32 %v1810_v23, %v1834_v36  ;;  %v1835_v48 = vmul.f32 %v4894_v17, %v4894_v17  ;;  %v1999_v23 = vld [vmem:[%s5224_s3 + $0x8] sm:$0xff] }
 0x254   :  { %v1709_v37 = vpop.xlane.xlu1 %1708  ;;  %v1569_v33 = vpop.xlane.xlu0 %1568 }
 0x255   :  { %v2713_v52 = vpop.eup %2712  ;;  %2718 = vrsqrt.f32 %v1905_v42  ;;  %v1811_v1 = vmul.f32 0.0051020407, %v1709_v37  ;;  %v1882_v57 = vmax.f32 %v1858_v22, 0.0  ;;  %v4907_v58 = vmul.f32 0.0051020407, %v1569_v33 }
 0x256   :  { %v1975_v29 = vmul.f32 %v2713_v52, %v1951_v28  ;;  %v1998_v28 = vld [vmem:[%s5224_s3] sm:$0xff] }
 0x257   :  { %v2715_v11 = vpop.eup %2714  ;;  %v1859_v54 = vsub.f32 %v1811_v1, %v1835_v48  ;;  %v1906_v22 = vadd.f32 1e-05, %v1882_v57  ;;  %v1953_v57 = vld [vmem:[%s5223_s2 + $0x18] sm:$0xff] }
 0x258   :  { %v2023_v2 = vmul.f32 %v1975_v29, %v1783_v60  ;;  %v1713_v4 = vpop.xlane.xlu0 %1712  ;;  %v1573_v55 = vpop.xlane.xlu1 %1572  ;;  %2077 = vperm.xlu1 %2711, %v1975_v29   ;;  %v1974_v36 = vmul.f32 %v2715_v11, %v1950_v12 }
 0x259   :  { %v1883_v42 = vmax.f32 %v1859_v54, 0.0  ;;  %v4909_v37 = vmul.f32 0.0051020407, %v1573_v55  ;;  %v1812_v48 = vmul.f32 0.0051020407, %v1713_v4  ;;  %v1836_v54 = vmul.f32 %v4907_v58, %v4907_v58 }
 0x25a   :  { %2072 = vperm.xlu0 %2710, %v1974_v36   ;;  %v2022_v60 = vmul.f32 %v1974_v36, %v4878_v50  ;;  %v2047_v29 = vsub.f32 %v1999_v23, %v2023_v2  ;;  %v1952_v50 = vld [vmem:[%s5223_s2 + $0x10] sm:$0xff] }
 0x25b   :  { %v1907_v52 = vadd.f32 1e-05, %v1883_v42  ;;  %v2717_v41 = vpop.eup %2716  ;;  %v1837_v33 = vmul.f32 %v4909_v37, %v4909_v37  ;;  %v1860_v4 = vsub.f32 %v1812_v48, %v1836_v54 }
 0x25c   :  { %v1717_v1 = vpop.xlane.xlu1 %1716  ;;  %v1577_v12 = vpop.xlane.xlu0 %1576  ;;  %v2046_v11 = vsub.f32 %v1998_v28, %v2022_v60  ;;  %v1976_v28 = vmul.f32 %v2717_v41, %v1952_v50 }
 0x25d   :  { %2720 = vrsqrt.f32 %v1907_v52  ;;  %v1813_v55 = vmul.f32 0.0051020407, %v1717_v1  ;;  %v4925_v1 = vmul.f32 0.0051020407, %v1577_v12 }
 0x25e   :  { %2245 = vperm.xlu0 %2710, %v2047_v29   ;;  %2240 = vperm.xlu1 %2711, %v2046_v11   ;;  %2722 = vrsqrt.f32 %v1906_v22  ;;  %v1884_v11 = vmax.f32 %v1860_v4, 0.0  ;;  %v2024_v41 = vmul.f32 %v1976_v28, %v4882_v43 }
 0x25f   :  { %v2719_v2 = vpop.eup %2718  ;;  %v1861_v36 = vsub.f32 %v1813_v55, %v1837_v33  ;;  %v1838_v12 = vmul.f32 %v4925_v1, %v4925_v1 }
 0x260   :  { %v1721_v23 = vpop.xlane.xlu0 %1720  ;;  %v1581_v42 = vpop.xlane.xlu1 %1580  ;;  %v1977_v60 = vmul.f32 %v2719_v2, %v1953_v57  ;;  %v1955_v2 = vld [vmem:[%s5223_s2 + $0x28] sm:$0xff]  ;;  %v1908_v43 = vadd.f32 1e-05, %v1884_v11 }
 0x261   :  { %v1885_v52 = vmax.f32 %v1861_v36, 0.0  ;;  %v4927_v38 = vmul.f32 0.0051020407, %v1581_v42  ;;  %v1814_v48 = vmul.f32 0.0051020407, %v1721_v23 }
 0x262   :  { %2082 = vperm.xlu1 %2711, %v1976_v28   ;;  %v2025_v29 = vmul.f32 %v1977_v60, %v4886_v18  ;;  %v2000_v18 = vld [vmem:[%s5224_s3 + $0x10] sm:$0xff] }
 0x263   :  { %v1909_v22 = vadd.f32 1e-05, %v1885_v52  ;;  %v1839_v50 = vmul.f32 %v4927_v38, %v4927_v38  ;;  %v1862_v4 = vsub.f32 %v1814_v48, %v1838_v12  ;;  %v2048_v28 = vsub.f32 %v2000_v18, %v2024_v41 }
 0x264   :  { %v1725_v54 = vpop.xlane.xlu1 %1724  ;;  %v1585_v33 = vpop.xlane.xlu0 %1584  ;;  %v2049_v55 = vsub.f32 %v2001_v0, %v2025_v29  ;;  %v1954_v29 = vld [vmem:[%s5223_s2 + $0x20] sm:$0xff] }
 0x265   :  { %2724 = vrsqrt.f32 %v1909_v22  ;;  %v1815_v57 = vmul.f32 0.0051020407, %v1725_v54  ;;  %v4947_v34 = vmul.f32 0.0051020407, %v1585_v33  ;;  %v1886_v48 = vmax.f32 %v1862_v4, 0.0 }
 0x266   :  { %2255 = vperm.xlu0 %2710, %v2049_v55   ;;  %2087 = vperm.xlu1 %2711, %v1977_v60   ;;  %v2003_v60 = vld [vmem:[%s5224_s3 + $0x28] sm:$0xff]  ;;  %2726 = vrsqrt.f32 %v1908_v43 }
 0x267   :  { %v2721_v0 = vpop.eup %2720  ;;  %v1863_v36 = vsub.f32 %v1815_v57, %v1839_v50  ;;  %v1840_v33 = vmul.f32 %v4947_v34, %v4947_v34  ;;  %v1910_v4 = vadd.f32 1e-05, %v1886_v48  ;;  %v2005_v48 = vld [vmem:[%s5224_s3 + $0x38] sm:$0xff] }
 0x268   :  { %v1729_v23 = vpop.xlane.xlu0 %1728  ;;  %v1589_v42 = vpop.xlane.xlu1 %1588  ;;  %v1979_v52 = vmul.f32 %v2721_v0, %v1955_v2 }
 0x269   :  { %v2723_v22 = vpop.eup %2722  ;;  %v1887_v54 = vmax.f32 %v1863_v36, 0.0  ;;  %v4949_v45 = vmul.f32 0.0051020407, %v1589_v42  ;;  %v1816_v41 = vmul.f32 0.0051020407, %v1729_v23 }
 0x26a   :  { %2250 = vperm.xlu1 %2711, %v2048_v28   ;;  %v2027_v11 = vmul.f32 %v1979_v52, %v4894_v17  ;;  %v1978_v57 = vmul.f32 %v2723_v22, %v1954_v29  ;;  %v1957_v17 = vld [vmem:[%s5223_s2 + $0x38] sm:$0xff]  ;;  %v2002_v29 = vld [vmem:[%s5224_s3 + $0x20] sm:$0xff] }
 0x26b   :  { %v1911_v55 = vadd.f32 1e-05, %v1887_v54  ;;  %v1841_v18 = vmul.f32 %v4949_v45, %v4949_v45  ;;  %v1864_v36 = vsub.f32 %v1816_v41, %v1840_v33 }
 0x26c   :  { %v1733_v12 = vpop.xlane.xlu1 %1732  ;;  %v2051_v50 = vsub.f32 %v2003_v60, %v2027_v11  ;;  %v2026_v22 = vmul.f32 %v1978_v57, %v4890_v19 }
 0x26d   :  { %2728 = vrsqrt.f32 %v1911_v55  ;;  %v1817_v2 = vmul.f32 0.0051020407, %v1733_v12  ;;  %v1593_v0 = vpop.xlane.xlu0 %1592  ;;  %v1888_v12 = vmax.f32 %v1864_v36, 0.0 }
 0x26e   :  { %2265 = vperm.xlu0 %2710, %v2051_v50   ;;  %2092 = vperm.xlu1 %2711, %v1978_v57   ;;  %v4966_v60 = vmul.f32 0.0051020407, %v1593_v0  ;;  %2730 = vrsqrt.f32 %v1910_v4  ;;  %v2050_v19 = vsub.f32 %v2002_v29, %v2026_v22 }
 0x26f   :  { %v2725_v43 = vpop.eup %2724  ;;  %v1865_v23 = vsub.f32 %v1817_v2, %v1841_v18  ;;  %v1912_v36 = vadd.f32 1e-05, %v1888_v12 }
 0x270   :  { %v1597_v42 = vpop.xlane.xlu1 %1596  ;;  %v1981_v28 = vmul.f32 %v2725_v43, %v1957_v17  ;;  %v2727_v57 = vpop.eup %2726  ;;  %v1842_v0 = vmul.f32 %v4966_v60, %v4966_v60 }
 0x271   :  { %v1889_v54 = vmax.f32 %v1865_v23, 0.0  ;;  %v4968_v11 = vmul.f32 0.0051020407, %v1597_v42  ;;  %v1737_v55 = vpop.xlane.xlu0 %1736 }
 0x272   :  { %2097 = vperm.xlu1 %2711, %v1979_v52   ;;  %v2029_v41 = vmul.f32 %v1981_v28, %v4909_v37  ;;  %v1818_v33 = vmul.f32 0.0051020407, %v1737_v55  ;;  %v1959_v37 = vld [vmem:[%s5223_s2 + $0x48] sm:$0xff]  ;;  %v1956_v52 = vld [vmem:[%s5223_s2 + $0x30] sm:$0xff] }
 0x273   :  { %v1913_v50 = vadd.f32 1e-05, %v1889_v54  ;;  %v1843_v17 = vmul.f32 %v4968_v11, %v4968_v11  ;;  %v1980_v55 = vmul.f32 %v2727_v57, %v1956_v52 }
 0x274   :  { %v1741_v18 = vpop.xlane.xlu1 %1740  ;;  %v2053_v2 = vsub.f32 %v2005_v48, %v2029_v41  ;;  %v1866_v42 = vsub.f32 %v1818_v33, %v1842_v0 }
 0x275   :  { %2732 = vrsqrt.f32 %v1913_v50  ;;  %v1819_v43 = vmul.f32 0.0051020407, %v1741_v18  ;;  %v1601_v23 = vpop.xlane.xlu0 %1600 }
 0x276   :  { %2275 = vperm.xlu0 %2710, %v2053_v2   ;;  %2260 = vperm.xlu1 %2711, %v2050_v19   ;;  %v4984_v41 = vmul.f32 0.0051020407, %v1601_v23  ;;  %2734 = vrsqrt.f32 %v1912_v36  ;;  %v1890_v12 = vmax.f32 %v1866_v42, 0.0 }
 0x277   :  { %v2729_v4 = vpop.eup %2728  ;;  %v1867_v29 = vsub.f32 %v1819_v43, %v1843_v17  ;;  %v2028_v17 = vmul.f32 %v1980_v55, %v4907_v58  ;;  %v1958_v58 = vld [vmem:[%s5223_s2 + $0x40] sm:$0xff] }
 0x278   :  { %v1605_v22 = vpop.xlane.xlu1 %1604  ;;  %v1983_v54 = vmul.f32 %v2729_v4, %v1959_v37  ;;  %v2731_v43 = vpop.eup %2730  ;;  %v1844_v23 = vmul.f32 %v4984_v41, %v4984_v41  ;;  %v1914_v42 = vadd.f32 1e-05, %v1890_v12 }
 0x279   :  { %v1891_v48 = vmax.f32 %v1867_v29, 0.0  ;;  %v4986_v50 = vmul.f32 0.0051020407, %v1605_v22  ;;  %v1745_v18 = vpop.xlane.xlu0 %1744 }
 0x27a   :  { %2117 = vperm.xlu0 %2710, %v1983_v54   ;;  %2102 = vperm.xlu1 %2711, %v1980_v55   ;;  %v2031_v2 = vmul.f32 %v1983_v54, %v4927_v38  ;;  %v1820_v19 = vmul.f32 0.0051020407, %v1745_v18  ;;  %v1961_v38 = vld [vmem:[%s5223_s2 + $0x58] sm:$0xff]  ;;  %v1982_v18 = vmul.f32 %v2731_v43, %v1958_v58 }
 0x27b   :  { %v1915_v33 = vadd.f32 1e-05, %v1891_v48  ;;  %v1845_v37 = vmul.f32 %v4986_v50, %v4986_v50 }
 0x27c   :  { %v1749_v0 = vpop.xlane.xlu1 %1748  ;;  %v2055_v57 = vsub.f32 %v2007_v20, %v2031_v2  ;;  %v2004_v20 = vld [vmem:[%s5224_s3 + $0x30] sm:$0xff]  ;;  %v1868_v29 = vsub.f32 %v1820_v19, %v1844_v23  ;;  %v2030_v23 = vmul.f32 %v1982_v18, %v4925_v1 }
 0x27d   :  { %2736 = vrsqrt.f32 %v1915_v33  ;;  %v1821_v52 = vmul.f32 0.0051020407, %v1749_v0  ;;  %v1609_v4 = vpop.xlane.xlu0 %1608  ;;  %v2052_v48 = vsub.f32 %v2004_v20, %v2028_v17 }
 0x27e   :  { %2285 = vperm.xlu0 %2710, %v2055_v57   ;;  %2107 = vperm.xlu1 %2711, %v1981_v28   ;;  %v5006_v33 = vmul.f32 0.0051020407, %v1609_v4  ;;  %2738 = vrsqrt.f32 %v1914_v42  ;;  %v1892_v12 = vmax.f32 %v1868_v29, 0.0 }
 0x27f   :  { %v2733_v36 = vpop.eup %2732  ;;  %v1869_v22 = vsub.f32 %v1821_v52, %v1845_v37 }
 0x280   :  { %v1613_v54 = vpop.xlane.xlu1 %1612  ;;  %v1985_v55 = vmul.f32 %v2733_v36, %v1961_v38  ;;  %v2735_v37 = vpop.eup %2734  ;;  %v1846_v52 = vmul.f32 %v5006_v33, %v5006_v33  ;;  %v1916_v58 = vadd.f32 1e-05, %v1892_v12 }
 0x281   :  { %v1893_v2 = vmax.f32 %v1869_v22, 0.0  ;;  %v5008_v0 = vmul.f32 0.0051020407, %v1613_v54  ;;  %v1753_v3 = vpop.xlane.xlu0 %1752 }
 0x282   :  { %2127 = vperm.xlu0 %2710, %v1985_v55   ;;  %2270 = vperm.xlu1 %2711, %v2052_v48   ;;  %v2033_v28 = vmul.f32 %v1985_v55, %v4949_v45  ;;  %v1822_v57 = vmul.f32 0.0051020407, %v1753_v3  ;;  %v1963_v45 = vld [vmem:[%s5223_s2 + $0x68] sm:$0xff]  ;;  %v1960_v3 = vld [vmem:[%s5223_s2 + $0x50] sm:$0xff] }
 0x283   :  { %v1917_v19 = vadd.f32 1e-05, %v1893_v2  ;;  %v1847_v4 = vmul.f32 %v5008_v0, %v5008_v0  ;;  %v1984_v55 = vmul.f32 %v2735_v37, %v1960_v3  ;;  %v2008_v3 = vld [vmem:[%s5224_s3 + $0x50] sm:$0xff] }
 0x284   :  { %v1757_v17 = vpop.xlane.xlu1 %1756  ;;  %v2057_v43 = vsub.f32 %v2009_v14, %v2033_v28  ;;  %v2006_v14 = vld [vmem:[%s5224_s3 + $0x40] sm:$0xff]  ;;  %v1870_v36 = vsub.f32 %v1822_v57, %v1846_v52 }
 0x285   :  { %2740 = vrsqrt.f32 %v1917_v19  ;;  %v1823_v38 = vmul.f32 0.0051020407, %v1757_v17  ;;  %v1617_v20 = vpop.xlane.xlu0 %1616  ;;  %v2054_v54 = vsub.f32 %v2006_v14, %v2030_v23  ;;  %v2011_v17 = vld [vmem:[%s5224_s3 + $0x68] sm:$0xff]  ;;  %v2032_v52 = vmul.f32 %v1984_v55, %v4947_v34  ;;  %v1962_v34 = vld [vmem:[%s5223_s2 + $0x60] sm:$0xff] }
 0x286   :  { %2295 = vperm.xlu0 %2710, %v2057_v43   ;;  %2112 = vperm.xlu1 %2711, %v1982_v18   ;;  %v5028_v2 = vmul.f32 0.0051020407, %v1617_v20  ;;  %2742 = vrsqrt.f32 %v1916_v58  ;;  %v1894_v12 = vmax.f32 %v1870_v36, 0.0 }
 0x287   :  { %v2737_v1 = vpop.eup %2736  ;;  %v1871_v42 = vsub.f32 %v1823_v38, %v1847_v4 }
 0x288   :  { %v1621_v29 = vpop.xlane.xlu1 %1620  ;;  %v1987_v22 = vmul.f32 %v2737_v1, %v1963_v45  ;;  %v2739_v4 = vpop.eup %2738  ;;  %v1848_v38 = vmul.f32 %v5028_v2, %v5028_v2  ;;  %v1918_v58 = vadd.f32 1e-05, %v1894_v12 }
 0x289   :  { %v1895_v48 = vmax.f32 %v1871_v42, 0.0  ;;  %v5030_v28 = vmul.f32 0.0051020407, %v1621_v29  ;;  %v1761_v19 = vpop.xlane.xlu0 %1760 }
 0x28a   :  { %2137 = vperm.xlu0 %2710, %v1987_v22   ;;  %2280 = vperm.xlu1 %2711, %v2054_v54   ;;  %v2035_v18 = vmul.f32 %v1987_v22, %v4968_v11  ;;  %v1824_v43 = vmul.f32 0.0051020407, %v1761_v19  ;;  %v1965_v11 = vld [vmem:[%s5223_s2 + $0x78] sm:$0xff]  ;;  %v2056_v54 = vsub.f32 %v2008_v3, %v2032_v52 }
 0x28b   :  { %v1919_v57 = vadd.f32 1e-05, %v1895_v48  ;;  %v1849_v20 = vmul.f32 %v5030_v28, %v5030_v28  ;;  %v1986_v48 = vmul.f32 %v2739_v4, %v1962_v34  ;;  %v2010_v34 = vld [vmem:[%s5224_s3 + $0x60] sm:$0xff] }
 0x28c   :  { %v1765_v23 = vpop.xlane.xlu1 %1764  ;;  %v2059_v37 = vsub.f32 %v2011_v17, %v2035_v18  ;;  %v1872_v36 = vsub.f32 %v1824_v43, %v1848_v38 }
 0x28d   :  { %2744 = vrsqrt.f32 %v1919_v57  ;;  %v1825_v45 = vmul.f32 0.0051020407, %v1765_v23  ;;  %v1625_v14 = vpop.xlane.xlu0 %1624  ;;  %v2013_v23 = vld [vmem:[%s5224_s3 + $0x78] sm:$0xff]  ;;  %v2034_v38 = vmul.f32 %v1986_v48, %v4966_v60  ;;  %v1964_v60 = vld [vmem:[%s5223_s2 + $0x70] sm:$0xff] }
 0x28e   :  { %2305 = vperm.xlu0 %2710, %v2059_v37   ;;  %2122 = vperm.xlu1 %2711, %v1984_v55   ;;  %v5050_v17 = vmul.f32 0.0051020407, %v1625_v14  ;;  %2746 = vrsqrt.f32 %v1918_v58  ;;  %v1896_v12 = vmax.f32 %v1872_v36, 0.0 }
 0x28f   :  { %v2741_v1 = vpop.eup %2740  ;;  %v1873_v42 = vsub.f32 %v1825_v45, %v1849_v20 }
 0x290   :  { %v1629_v29 = vpop.xlane.xlu1 %1628  ;;  %v1989_v22 = vmul.f32 %v2741_v1, %v1965_v11  ;;  %v2743_v20 = vpop.eup %2742  ;;  %v1850_v45 = vmul.f32 %v5050_v17, %v5050_v17  ;;  %v1920_v58 = vadd.f32 1e-05, %v1896_v12 }
 0x291   :  { %v1897_v19 = vmax.f32 %v1873_v42, 0.0  ;;  %v5052_v18 = vmul.f32 0.0051020407, %v1629_v29  ;;  %v1769_v57 = vpop.xlane.xlu0 %1768 }
 0x292   :  { %2147 = vperm.xlu0 %2710, %v1989_v22   ;;  %2290 = vperm.xlu1 %2711, %v2056_v54   ;;  %v2037_v55 = vmul.f32 %v1989_v22, %v4986_v50  ;;  %v1826_v37 = vmul.f32 0.0051020407, %v1769_v57  ;;  %v1967_v50 = vld [vmem:[%s5223_s2 + $0x88] sm:$0xff]  ;;  %v2058_v54 = vsub.f32 %v2010_v34, %v2034_v38  ;;  %v2012_v34 = vld [vmem:[%s5224_s3 + $0x70] sm:$0xff] }
 0x293   :  { %v1921_v43 = vadd.f32 1e-05, %v1897_v19  ;;  %v1851_v14 = vmul.f32 %v5052_v18, %v5052_v18  ;;  %v1988_v19 = vmul.f32 %v2743_v20, %v1964_v60 }
 0x294   :  { %v1773_v52 = vpop.xlane.xlu1 %1772  ;;  %v2061_v4 = vsub.f32 %v2013_v23, %v2037_v55  ;;  %v1874_v36 = vsub.f32 %v1826_v37, %v1850_v45 }
 0x295   :  { %2748 = vrsqrt.f32 %v1921_v43  ;;  %v1827_v11 = vmul.f32 0.0051020407, %v1773_v52  ;;  %v1633_v3 = vpop.xlane.xlu0 %1632  ;;  %v2015_v52 = vld [vmem:[%s5224_s3 + $0x88] sm:$0xff]  ;;  %v2036_v45 = vmul.f32 %v1988_v19, %v4984_v41  ;;  %v1966_v41 = vld [vmem:[%s5223_s2 + $0x80] sm:$0xff] }
 0x296   :  { %2315 = vperm.xlu0 %2710, %v2061_v4   ;;  %2132 = vperm.xlu1 %2711, %v1986_v48   ;;  %v5072_v23 = vmul.f32 0.0051020407, %v1633_v3  ;;  %2750 = vrsqrt.f32 %v1920_v58  ;;  %v1898_v12 = vmax.f32 %v1874_v36, 0.0 }
 0x297   :  { %v2745_v1 = vpop.eup %2744  ;;  %v1875_v42 = vsub.f32 %v1827_v11, %v1851_v14 }
 0x298   :  { %v1637_v29 = vpop.xlane.xlu1 %1636  ;;  %v1991_v22 = vmul.f32 %v2745_v1, %v1967_v50  ;;  %v2747_v14 = vpop.eup %2746  ;;  %v1852_v11 = vmul.f32 %v5072_v23, %v5072_v23  ;;  %v1922_v1 = vadd.f32 1e-05, %v1898_v12 }
 0x299   :  { %v1899_v57 = vmax.f32 %v1875_v42, 0.0  ;;  %v5074_v55 = vmul.f32 0.0051020407, %v1637_v29  ;;  %v1777_v43 = vpop.xlane.xlu0 %1776  ;;  %v2060_v29 = vsub.f32 %v2012_v34, %v2036_v45 }
 0x29a   :  { %2157 = vperm.xlu0 %2710, %v1991_v22   ;;  %2300 = vperm.xlu1 %2711, %v2058_v54   ;;  %v2039_v48 = vmul.f32 %v1991_v22, %v5008_v0  ;;  %v1828_v4 = vmul.f32 0.0051020407, %v1777_v43  ;;  %v1969_v0 = vld [vmem:[%s5223_s2 + $0x98] sm:$0xff]  ;;  %v1990_v22 = vmul.f32 %v2747_v14, %v1966_v41 }
 0x29b   :  { %v1923_v37 = vadd.f32 1e-05, %v1899_v57  ;;  %v1853_v3 = vmul.f32 %v5074_v55, %v5074_v55  ;;  %v2017_v57 = vld [vmem:[%s5224_s3 + $0x98] sm:$0xff] }
 0x29c   :  { %v1781_v38 = vpop.xlane.xlu1 %1780  ;;  %v2063_v20 = vsub.f32 %v2015_v52, %v2039_v48  ;;  %v1876_v58 = vsub.f32 %v1828_v4, %v1852_v11  ;;  %v2038_v12 = vmul.f32 %v1990_v22, %v5006_v33  ;;  %v1971_v4 = vld [vmem:[%s5223_s2 + $0xa8] sm:$0xff] }
 0x29d   :  { %2752 = vrsqrt.f32 %v1923_v37  ;;  %v1829_v50 = vmul.f32 0.0051020407, %v1781_v38  ;;  %v2014_v38 = vld [vmem:[%s5224_s3 + $0x80] sm:$0xff] }
 0x29e   :  { %2325 = vperm.xlu0 %2710, %v2063_v20   ;;  %2142 = vperm.xlu1 %2711, %v1988_v19   ;;  %2754 = vrsqrt.f32 %v1922_v1  ;;  %v1900_v52 = vmax.f32 %v1876_v58, 0.0  ;;  %v2062_v33 = vsub.f32 %v2014_v38, %v2038_v12  ;;  %v1973_v1 = vld [vmem:[%s5223_s2 + $0xb8] sm:$0xff]  ;;  %v1970_v58 = vld [vmem:[%s5223_s2 + $0xa0] sm:$0xff] }
 0x29f   :  { %v2749_v60 = vpop.eup %2748  ;;  %v1877_v36 = vsub.f32 %v1829_v50, %v1853_v3  ;;  %v2019_v3 = vld [vmem:[%s5224_s3 + $0xa8] sm:$0xff] }
 0x2a0   :  { %v1993_v42 = vmul.f32 %v2749_v60, %v1969_v0  ;;  %v2751_v37 = vpop.eup %2750  ;;  %v1924_v45 = vadd.f32 1e-05, %v1900_v52  ;;  %v2016_v60 = vld [vmem:[%s5224_s3 + $0x90] sm:$0xff]  ;;  %v2018_v52 = vld [vmem:[%s5224_s3 + $0xa0] sm:$0xff] }
 0x2a1   :  { %v1901_v54 = vmax.f32 %v1877_v36, 0.0 }
 0x2a2   :  { %2167 = vperm.xlu0 %2710, %v1993_v42   ;;  %2310 = vperm.xlu1 %2711, %v2060_v29   ;;  %v2041_v43 = vmul.f32 %v1993_v42, %v5030_v28  ;;  %v1968_v28 = vld [vmem:[%s5223_s2 + $0x90] sm:$0xff] }
 0x2a3   :  { %v1925_v48 = vadd.f32 1e-05, %v1901_v54  ;;  %v1992_v11 = vmul.f32 %v2751_v37, %v1968_v28 }
 0x2a4   :  { %v2065_v19 = vsub.f32 %v2017_v57, %v2041_v43 }
 0x2a5   :  { %2756 = vrsqrt.f32 %v1925_v48  ;;  %v2040_v34 = vmul.f32 %v1992_v11, %v5028_v2  ;;  %v2021_v2 = vld [vmem:[%s5224_s3 + $0xb8] sm:$0xff]  ;;  %v1972_v48 = vld [vmem:[%s5223_s2 + $0xb0] sm:$0xff]  ;;  %s2785_s2 = smov [#allocation2]  }
 0x2a6   :  { %2335 = vperm.xlu0 %2710, %v2065_v19   ;;  %2152 = vperm.xlu1 %2711, %v1990_v22   ;;  %2758 = vrsqrt.f32 %v1924_v45 }
 0x2a7   :  { %v2753_v20 = vpop.eup %2752  ;;  %v2064_v36 = vsub.f32 %v2016_v60, %v2040_v34 }
 0x2a8   :  { %v1995_v14 = vmul.f32 %v2753_v20, %v1971_v4  ;;  %v2755_v41 = vpop.eup %2754  ;;  %v5260_v20 = vld [vmem:[#allocation6_spill] sm:$0xff] }
 0x2a9   :  { %v1994_v29 = vmul.f32 %v2755_v41, %v1970_v58 }
 0x2aa   :  { %2177 = vperm.xlu0 %2710, %v1995_v14   ;;  %2320 = vperm.xlu1 %2711, %v2062_v33   ;;  %v2043_v50 = vmul.f32 %v1995_v14, %v5052_v18  ;;  %v5261_v33 = vld [vmem:[#allocation5_spill] sm:$0xff] }
 0x2ab   :  { %v2042_v57 = vmul.f32 %v1994_v29, %v5050_v17  ;;  %v2020_v17 = vld [vmem:[%s5224_s3 + $0xb0] sm:$0xff]  ;;  %s2459_s3 = sshll.u32 %s2785_s2, 4  ;;  %s2460_s3 = int_to_ptr.vmem [resolvable:$true] %s2459_s3 }
 0x2ac   :  { %v2067_v0 = vsub.f32 %v2019_v3, %v2043_v50  ;;  %s2760_s15 = scalar_lea.vmem %s2460_s3, 6144  ;;  %p2765_p1 = scmp.lt.s32.totalorder %s2460_s3, %s2460_s3 }
 0x2ad   :  { %v2066_v19 = vsub.f32 %v2018_v52, %v2042_v57  ;;  %p2761_p0 = scmp.ne.s32.totalorder %s2460_s3, %s2760_s15  ;;  %p2766_p2 = scmp.lt.s32.totalorder %s2760_s15, %s2760_s15 }
 0x2ae   :  { %2345 = vperm.xlu0 %2710, %v2067_v0   ;;  %2162 = vperm.xlu1 %2711, %v1992_v11  }
 0x2af   :  { %v2757_v18 = vpop.eup %2756  ;;  %p2767_p3 = por %p2766_p2, %p2765_p1 }
 0x2b0   :  { %v1997_v42 = vmul.f32 %v2757_v18, %v1973_v1  ;;  %v2759_v43 = vpop.eup %2758 }
 0x2b1   :  { %v1996_v12 = vmul.f32 %v2759_v43, %v1972_v48  ;;  %p2768_p4 = pnand %p2767_p3, %p2761_p0 }
 0x2b2   :  { %2330 = vperm.xlu1 %2711, %v2064_v36   ;;  %2187 = vperm.xlu0 %2710, %v1997_v42   ;;  %v2045_v22 = vmul.f32 %v1997_v42, %v5074_v55 }
 0x2b3   :  { %v2044_v37 = vmul.f32 %v1996_v12, %v5072_v23 }
 0x2b4   :  { %v2069_v54 = vsub.f32 %v2021_v2, %v2045_v22 }
 0x2b5   :  { %v2068_v55 = vsub.f32 %v2020_v17, %v2044_v37 }
 0x2b6   :  { %2172 = vperm.xlu1 %2711, %v1994_v29   ;;  %2355 = vperm.xlu0 %2710, %v2069_v54  }
 0x2ba   :  { %2340 = vperm.xlu1 %2711, %v2066_v19  }
 0x2be   :  { %2182 = vperm.xlu1 %2711, %v1996_v12  }
 0x2c2   :  { %2350 = vperm.xlu1 %2711, %v2068_v55  }
 0x2d7   :  { %v2078_v4 = vpop.permute.xlu1 %2077 }
 0x2d8   :  { %v2192_v28 = vmul.f32 %v4491_v61, %v2078_v4  ;;  %v2193_v45 = vmul.f32 %v5260_v20, %v2078_v4 }
 0x2d9   :  { %v2073_v38 = vpop.permute.xlu0 %2072 }
 0x2da   :  { %v2190_v14 = vmul.f32 %v4483_v46, %v2073_v38  ;;  %v2191_v11 = vmul.f32 %v5261_v33, %v2073_v38 }
 0x2dd   :  { %v2246_v3 = vpop.permute.xlu0 %2245  ;;  %v2241_v50 = vpop.permute.xlu1 %2240 }
 0x2de   :  { %v2360_v23 = vadd.f32 %v2246_v3, %v2192_v28  ;;  %v2361_v0 = vadd.f32 %v2246_v3, %v2193_v45  ;;  %v2358_v34 = vadd.f32 %v2241_v50, %v2190_v14  ;;  %v2359_v41 = vadd.f32 %v2241_v50, %v2191_v11 }
 0x2e0   :  { %2408 = vst [vmem:[#allocation2 + $0x10] sm:$0xff] %v2360_v23  ;;  %2409 = vst.msk [vmem:[#allocation2 + $0x18] sm:$0xff] %vm1541_vm1, %v2361_v0 }
 0x2e1   :  { %2406 = vst [vmem:[#allocation2] sm:$0xff] %v2358_v34  ;;  %2407 = vst.msk [vmem:[#allocation2 + $0x8] sm:$0xff] %vm1541_vm1, %v2359_v41  ;;  %v2083_v60 = vpop.permute.xlu1 %2082 }
 0x2e2   :  { %v2194_v18 = vmul.f32 %v4512_v7, %v2083_v60  ;;  %v2195_v36 = vmul.f32 %v4518_v44, %v2083_v60 }
 0x2e5   :  { %v2088_v61 = vpop.permute.xlu1 %2087  ;;  %v2256_v58 = vpop.permute.xlu0 %2255 }
 0x2e6   :  { %v2196_v1 = vmul.f32 %v4524_v9, %v2088_v61  ;;  %v2197_v46 = vmul.f32 %v4532_v31, %v2088_v61 }
 0x2e8   :  { %v2364_v42 = vadd.f32 %v2256_v58, %v2196_v1  ;;  %v2365_v29 = vadd.f32 %v2256_v58, %v2197_v46 }
 0x2e9   :  { %v2251_v2 = vpop.permute.xlu1 %2250 }
 0x2ea   :  { %2412 = vst [vmem:[#allocation2 + $0x30] sm:$0xff] %v2364_v42  ;;  %2413 = vst.msk [vmem:[#allocation2 + $0x38] sm:$0xff] %vm1541_vm1, %v2365_v29  ;;  %v2362_v22 = vadd.f32 %v2251_v2, %v2194_v18  ;;  %v2363_v54 = vadd.f32 %v2251_v2, %v2195_v36 }
 0x2ec   :  { %2410 = vst [vmem:[#allocation2 + $0x20] sm:$0xff] %v2362_v22  ;;  %2411 = vst.msk [vmem:[#allocation2 + $0x28] sm:$0xff] %vm1541_vm1, %v2363_v54 }
 0x2ed   :  { %v2093_v57 = vpop.permute.xlu1 %2092  ;;  %v2266_v9 = vpop.permute.xlu0 %2265 }
 0x2ee   :  { %v2198_v44 = vmul.f32 %v4550_v63, %v2093_v57  ;;  %v2199_v52 = vmul.f32 %v4557_v6, %v2093_v57 }
 0x2f1   :  { %v2098_v43 = vpop.permute.xlu1 %2097 }
 0x2f2   :  { %v2200_v31 = vmul.f32 %v4564_v56, %v2098_v43  ;;  %v2201_v7 = vmul.f32 %v4572_v8, %v2098_v43 }
 0x2f4   :  { %v2368_v48 = vadd.f32 %v2266_v9, %v2200_v31  ;;  %v2369_v19 = vadd.f32 %v2266_v9, %v2201_v7 }
 0x2f5   :  { %v2276_v12 = vpop.permute.xlu0 %2275  ;;  %v2261_v37 = vpop.permute.xlu1 %2260 }
 0x2f6   :  { %2416 = vst [vmem:[#allocation2 + $0x50] sm:$0xff] %v2368_v48  ;;  %2417 = vst.msk [vmem:[#allocation2 + $0x58] sm:$0xff] %vm1541_vm1, %v2369_v19  ;;  %v2366_v17 = vadd.f32 %v2261_v37, %v2198_v44  ;;  %v2367_v55 = vadd.f32 %v2261_v37, %v2199_v52 }
 0x2f8   :  { %2414 = vst [vmem:[#allocation2 + $0x40] sm:$0xff] %v2366_v17  ;;  %2415 = vst.msk [vmem:[#allocation2 + $0x48] sm:$0xff] %vm1541_vm1, %v2367_v55 }
 0x2f9   :  { %v2118_v4 = vpop.permute.xlu0 %2117  ;;  %v2103_v56 = vpop.permute.xlu1 %2102 }
 0x2fa   :  { %v2208_v8 = vmul.f32 %v4644_v40, %v2118_v4  ;;  %v2209_v63 = vmul.f32 %v4652_v25, %v2118_v4  ;;  %v2202_v33 = vmul.f32 %v4590_v47, %v2103_v56  ;;  %v2203_v11 = vmul.f32 %v4597_v13, %v2103_v56 }
 0x2fd   :  { %v2286_v38 = vpop.permute.xlu0 %2285  ;;  %v2108_v6 = vpop.permute.xlu1 %2107 }
 0x2fe   :  { %v2376_v28 = vadd.f32 %v2286_v38, %v2208_v8  ;;  %v2377_v20 = vadd.f32 %v2286_v38, %v2209_v63  ;;  %v2204_v45 = vmul.f32 %v4604_v49, %v2108_v6  ;;  %v2205_v14 = vmul.f32 %v4612_v16, %v2108_v6 }
 0x300   :  { %2424 = vst [vmem:[#allocation2 + $0x90] sm:$0xff] %v2376_v28  ;;  %2425 = vst.msk [vmem:[#allocation2 + $0x98] sm:$0xff] %vm1541_vm1, %v2377_v20  ;;  %v2372_v3 = vadd.f32 %v2276_v12, %v2204_v45  ;;  %v2373_v50 = vadd.f32 %v2276_v12, %v2205_v14  ;;  %v5263_v28 = vld [vmem:[#allocation12_spill] sm:$0xff]  ;;  %v5264_v20 = vld [vmem:[#allocation13_spill] sm:$0xff] }
 0x301   :  { %v2128_v40 = vpop.permute.xlu0 %2127  ;;  %v2271_v23 = vpop.permute.xlu1 %2270 }
 0x302   :  { %2420 = vst [vmem:[#allocation2 + $0x70] sm:$0xff] %v2372_v3  ;;  %2421 = vst.msk [vmem:[#allocation2 + $0x78] sm:$0xff] %vm1541_vm1, %v2373_v50  ;;  %v2370_v25 = vadd.f32 %v2271_v23, %v2202_v33  ;;  %v2371_v0 = vadd.f32 %v2271_v23, %v2203_v11  ;;  %v2212_v49 = vmul.f32 %v4684_v15, %v2128_v40  ;;  %v5266_v50 = vld [vmem:[#allocation9_spill] sm:$0xff] }
 0x303   :  { %v2213_v16 = vmul.f32 %v4692_v27, %v2128_v40 }
 0x304   :  { %2418 = vst [vmem:[#allocation2 + $0x60] sm:$0xff] %v2370_v25  ;;  %2419 = vst.msk [vmem:[#allocation2 + $0x68] sm:$0xff] %vm1541_vm1, %v2371_v0 }
 0x305   :  { %v2296_v47 = vpop.permute.xlu0 %2295  ;;  %v2113_v13 = vpop.permute.xlu1 %2112 }
 0x306   :  { %v2380_v34 = vadd.f32 %v2296_v47, %v2212_v49  ;;  %v2381_v41 = vadd.f32 %v2296_v47, %v2213_v16  ;;  %v2206_v60 = vmul.f32 %v4630_v59, %v2113_v13  ;;  %v2207_v61 = vmul.f32 %v4637_v21, %v2113_v13  ;;  %v5262_v21 = vld [vmem:[#allocation7_spill] sm:$0xff]  ;;  %v5267_v16 = vld [vmem:[#allocation16_spill] sm:$0xff]  ;;  %v5268_v13 = vld [vmem:[#allocation17_spill] sm:$0xff] }
 0x308   :  { %2428 = vst [vmem:[#allocation2 + $0xb0] sm:$0xff] %v2380_v34  ;;  %2429 = vst.msk [vmem:[#allocation2 + $0xb8] sm:$0xff] %vm1541_vm1, %v2381_v41 }
 0x309   :  { %v2138_v1 = vpop.permute.xlu0 %2137  ;;  %v2281_v46 = vpop.permute.xlu1 %2280 }
 0x30a   :  { %v2374_v58 = vadd.f32 %v2281_v46, %v2206_v60  ;;  %v2375_v15 = vadd.f32 %v2281_v46, %v2207_v61  ;;  %v2216_v27 = vmul.f32 %v4718_v51, %v2138_v1  ;;  %v2217_v18 = vmul.f32 %v4720_v5, %v2138_v1  ;;  %v5269_v46 = vld [vmem:[#allocation10_spill] sm:$0xff] }
 0x30c   :  { %2422 = vst [vmem:[#allocation2 + $0x80] sm:$0xff] %v2374_v58  ;;  %2423 = vst.msk [vmem:[#allocation2 + $0x88] sm:$0xff] %vm1541_vm1, %v2375_v15  ;;  %v5270_v15 = vld [vmem:[#allocation11_spill] sm:$0xff] }
 0x30d   :  { %v2306_v36 = vpop.permute.xlu0 %2305  ;;  %v2123_v42 = vpop.permute.xlu1 %2122 }
 0x30e   :  { %v2384_v29 = vadd.f32 %v2306_v36, %v2216_v27  ;;  %v2385_v2 = vadd.f32 %v2306_v36, %v2217_v18  ;;  %v2210_v59 = vmul.f32 %v4670_v53, %v2123_v42  ;;  %v2211_v22 = vmul.f32 %v5262_v21, %v2123_v42  ;;  %v5272_v21 = vld [vmem:[#allocation21_spill] sm:$0xff] }
 0x310   :  { %2432 = vst [vmem:[#allocation2 + $0xd0] sm:$0xff] %v2384_v29  ;;  %2433 = vst.msk [vmem:[#allocation2 + $0xd8] sm:$0xff] %vm1541_vm1, %v2385_v2  ;;  %v5271_v2 = vld [vmem:[#allocation20_spill] sm:$0xff] }
 0x311   :  { %v2148_v54 = vpop.permute.xlu0 %2147  ;;  %v2291_v57 = vpop.permute.xlu1 %2290 }
 0x312   :  { %v2378_v9 = vadd.f32 %v2291_v57, %v2210_v59  ;;  %v2379_v51 = vadd.f32 %v2291_v57, %v2211_v22  ;;  %v2220_v5 = vmul.f32 %v4746_v62, %v2148_v54  ;;  %v2221_v43 = vmul.f32 %v4748_v26, %v2148_v54 }
 0x314   :  { %2426 = vst [vmem:[#allocation2 + $0xa0] sm:$0xff] %v2378_v9  ;;  %2427 = vst.msk [vmem:[#allocation2 + $0xa8] sm:$0xff] %vm1541_vm1, %v2379_v51 }
 0x315   :  { %v2316_v31 = vpop.permute.xlu0 %2315  ;;  %v2133_v7 = vpop.permute.xlu1 %2132 }
 0x316   :  { %v2388_v44 = vadd.f32 %v2316_v31, %v2220_v5  ;;  %v2389_v52 = vadd.f32 %v2316_v31, %v2221_v43  ;;  %v2214_v53 = vmul.f32 %v4710_v30, %v2133_v7  ;;  %v2215_v48 = vmul.f32 %v4713_v24, %v2133_v7  ;;  %v5273_v5 = vld [vmem:[#allocation14_spill] sm:$0xff]  ;;  %v5274_v31 = vld [vmem:[#allocation15_spill] sm:$0xff] }
 0x318   :  { %2436 = vst [vmem:[#allocation2 + $0xf0] sm:$0xff] %v2388_v44  ;;  %2437 = vst.msk [vmem:[#allocation2 + $0xf8] sm:$0xff] %vm1541_vm1, %v2389_v52 }
 0x319   :  { %v2158_v19 = vpop.permute.xlu0 %2157  ;;  %v2301_v12 = vpop.permute.xlu1 %2300 }
 0x31a   :  { %v2382_v37 = vadd.f32 %v2301_v12, %v2214_v53  ;;  %v2383_v62 = vadd.f32 %v2301_v12, %v2215_v48  ;;  %v2224_v26 = vmul.f32 %v4774_v39, %v2158_v19  ;;  %v2225_v17 = vmul.f32 %v4776_v32, %v2158_v19  ;;  %v5275_v19 = vld [vmem:[#allocation18_spill] sm:$0xff] }
 0x31c   :  { %2430 = vst [vmem:[#allocation2 + $0xc0] sm:$0xff] %v2382_v37  ;;  %2431 = vst.msk [vmem:[#allocation2 + $0xc8] sm:$0xff] %vm1541_vm1, %v2383_v62  ;;  %v5276_v37 = vld [vmem:[#allocation19_spill] sm:$0xff] }
 0x31d   :  { %v2326_v55 = vpop.permute.xlu0 %2325  ;;  %v2143_v4 = vpop.permute.xlu1 %2142 }
 0x31e   :  { %v2392_v56 = vadd.f32 %v2326_v55, %v2224_v26  ;;  %v2393_v8 = vadd.f32 %v2326_v55, %v2225_v17  ;;  %v2218_v24 = vmul.f32 %v4738_v10, %v2143_v4  ;;  %v2219_v30 = vmul.f32 %v4741_v35, %v2143_v4  ;;  %v5265_v10 = vld [vmem:[#allocation8_spill] sm:$0xff] }
 0x320   :  { %2440 = vst [vmem:[#allocation2 + $0x110] sm:$0xff] %v2392_v56  ;;  %2441 = vst.msk [vmem:[#allocation2 + $0x118] sm:$0xff] %vm1541_vm1, %v2393_v8 }
 0x321   :  { %v2168_v63 = vpop.permute.xlu0 %2167  ;;  %v2311_v38 = vpop.permute.xlu1 %2310 }
 0x322   :  { %v2386_v6 = vadd.f32 %v2311_v38, %v2218_v24  ;;  %v2387_v39 = vadd.f32 %v2311_v38, %v2219_v30  ;;  %v2228_v32 = vmul.f32 %v5263_v28, %v2168_v63  ;;  %v2229_v45 = vmul.f32 %v5264_v20, %v2168_v63 }
 0x324   :  { %2434 = vst [vmem:[#allocation2 + $0xe0] sm:$0xff] %v2386_v6  ;;  %2435 = vst.msk [vmem:[#allocation2 + $0xe8] sm:$0xff] %vm1541_vm1, %v2387_v39 }
 0x325   :  { %v2336_v14 = vpop.permute.xlu0 %2335  ;;  %v2153_v33 = vpop.permute.xlu1 %2152 }
 0x326   :  { %v2396_v11 = vadd.f32 %v2336_v14, %v2228_v32  ;;  %v2397_v3 = vadd.f32 %v2336_v14, %v2229_v45  ;;  %v2222_v35 = vmul.f32 %v5265_v10, %v2153_v33  ;;  %v2223_v40 = vmul.f32 %v5266_v50, %v2153_v33 }
 0x328   :  { %2444 = vst [vmem:[#allocation2 + $0x130] sm:$0xff] %v2396_v11  ;;  %2445 = vst.msk [vmem:[#allocation2 + $0x138] sm:$0xff] %vm1541_vm1, %v2397_v3 }
 0x329   :  { %v2178_v23 = vpop.permute.xlu0 %2177  ;;  %v2321_v25 = vpop.permute.xlu1 %2320 }
 0x32a   :  { %v2390_v0 = vadd.f32 %v2321_v25, %v2222_v35  ;;  %v2391_v49 = vadd.f32 %v2321_v25, %v2223_v40  ;;  %v2232_v47 = vmul.f32 %v5267_v16, %v2178_v23  ;;  %v2233_v34 = vmul.f32 %v5268_v13, %v2178_v23 }
 0x32c   :  { %2438 = vst [vmem:[#allocation2 + $0x100] sm:$0xff] %v2390_v0  ;;  %2439 = vst.msk [vmem:[#allocation2 + $0x108] sm:$0xff] %vm1541_vm1, %v2391_v49 }
 0x32d   :  { %v2346_v41 = vpop.permute.xlu0 %2345  ;;  %v2163_v60 = vpop.permute.xlu1 %2162 }
 0x32e   :  { %v2400_v61 = vadd.f32 %v2346_v41, %v2232_v47  ;;  %v2401_v1 = vadd.f32 %v2346_v41, %v2233_v34  ;;  %v2226_v58 = vmul.f32 %v5269_v46, %v2163_v60  ;;  %v2227_v27 = vmul.f32 %v5270_v15, %v2163_v60 }
 0x330   :  { %2448 = vst [vmem:[#allocation2 + $0x150] sm:$0xff] %v2400_v61  ;;  %2449 = vst.msk [vmem:[#allocation2 + $0x158] sm:$0xff] %vm1541_vm1, %v2401_v1 }
 0x331   :  { %v2188_v18 = vpop.permute.xlu0 %2187  ;;  %v2331_v36 = vpop.permute.xlu1 %2330 }
 0x332   :  { %v2394_v42 = vadd.f32 %v2331_v36, %v2226_v58  ;;  %v2395_v29 = vadd.f32 %v2331_v36, %v2227_v27  ;;  %v2236_v59 = vmul.f32 %v5271_v2, %v2188_v18  ;;  %v2237_v22 = vmul.f32 %v5272_v21, %v2188_v18 }
 0x334   :  { %2442 = vst [vmem:[#allocation2 + $0x120] sm:$0xff] %v2394_v42  ;;  %2443 = vst.msk [vmem:[#allocation2 + $0x128] sm:$0xff] %vm1541_vm1, %v2395_v29 }
 0x335   :  { %v2356_v54 = vpop.permute.xlu0 %2355  ;;  %v2173_v57 = vpop.permute.xlu1 %2172 }
 0x336   :  { %v2404_v9 = vadd.f32 %v2356_v54, %v2236_v59  ;;  %v2405_v51 = vadd.f32 %v2356_v54, %v2237_v22  ;;  %v2230_v43 = vmul.f32 %v5273_v5, %v2173_v57  ;;  %v2231_v7 = vmul.f32 %v5274_v31, %v2173_v57 }
 0x338   :  { %2452 = vst [vmem:[#allocation2 + $0x170] sm:$0xff] %v2404_v9  ;;  %2453 = vst.msk [vmem:[#allocation2 + $0x178] sm:$0xff] %vm1541_vm1, %v2405_v51 }
 0x339   :  { %v2341_v44 = vpop.permute.xlu1 %2340 }
 0x33a   :  { %v2398_v52 = vadd.f32 %v2341_v44, %v2230_v43  ;;  %v2399_v53 = vadd.f32 %v2341_v44, %v2231_v7 }
 0x33c   :  { %2446 = vst [vmem:[#allocation2 + $0x140] sm:$0xff] %v2398_v52  ;;  %2447 = vst.msk [vmem:[#allocation2 + $0x148] sm:$0xff] %vm1541_vm1, %v2399_v53 }
 0x33d   :  { %v2183_v48 = vpop.permute.xlu1 %2182 }
 0x33e   :  { %v2234_v12 = vmul.f32 %v5275_v19, %v2183_v48  ;;  %v2235_v62 = vmul.f32 %v5276_v37, %v2183_v48 }
 0x341   :  { %v2351_v26 = vpop.permute.xlu1 %2350 }
 0x342   :  { %v2402_v17 = vadd.f32 %v2351_v26, %v2234_v12  ;;  %v2403_v55 = vadd.f32 %v2351_v26, %v2235_v62 }
 0x344   :  { %2450 = vst [vmem:[#allocation2 + $0x160] sm:$0xff] %v2402_v17  ;;  %2451 = vst.msk [vmem:[#allocation2 + $0x168] sm:$0xff] %vm1541_vm1, %v2403_v55 }
 0x345   :  { %2771 = shalt.err (!%p2768_p4)
}
 0x346   :  { %s2772_s18 = scalar_lea.hbm %s5225_s4, 6144 }
 0x347   :  { %p2773_p5 = scmp.ne.s32.totalorder %s5225_s4, %s2772_s18  ;;  %p2776_p6 = scmp.lt.u32.totalorder %s2772_s18, %s5225_s4 }
 0x349   :  { %p2778_p7 = pnand %p2776_p6, %p2773_p5 }
 0x34b   :  { %2781 = shalt.err (!%p2778_p7)
}
 0x34c   :  { %s2786_s23 = smov 256   ;;  %s2787_s24 = smov 16  }
 0x34d   :  { %2465 = dma.vmem_to_hbm [thread:$0]  %s2460_s3, 6144, %s5225_s4, [#allocation3], %s2786_s23, %s2786_s23, %s2787_s24  }
 0x34e   :  { %2782 = dma.done.wait [#allocation3], 6144  }
 0x34f   :  { %2783 = vsyncadd [#allocation3], 4294961152 }
 0x350   :  { %2469 = vsyncpa [#allocation3], 1 }

</bundles_post_ra>
